<compile_context>
chip_gen: v5e
topology: v5e:2x2
jax: 0.10.0
libtpu: 0.0.40
codegen_flags: <defaults>
</compile_context>

<pallas_src>
import functools

import jax
import jax.numpy as jnp
import numpy as np
from jax import lax
from jax.experimental import pallas as pl
from jax.experimental.pallas import tpu as pltpu

_MXU_DTYPE = jnp.bfloat16          # MXU operand dtype (f32 accumulation); element-wise math stays f32
_VMEM_LIMIT = 32 * 1024 * 1024     # explicit scoped-VMEM limit (safe on v5e/v6e/v7x)
_STAGE1_BUDGET = 8 << 20           # per-step working-set target for the stats kernel
_STAGE2_BUDGET = 8 << 20           # per-step working-set target for the output kernel


# --------------------------------------------------------------------------------------------
# Tiling helpers (all shapes are static under jit).
# --------------------------------------------------------------------------------------------
def _largest_divisor_tile(n, cap, quantum):
    """Largest divisor of n that is a multiple of `quantum` and <= cap (falls back to n)."""
    t = (min(cap, n) // quantum) * quantum
    while t >= quantum:
        if n % t == 0:
            return t
        t -= quantum
    return n


def _num_d_chunks(D):
    """Stage-1 hidden-dim chunks: 2 independent chunks give v7x's two TensorCores parallel
    work (max/exp/sum are per-channel); more chunks would only re-read x."""
    return 2 if D % 256 == 0 else 1


def _stage1_seq_tile(T, B, C, D):
    # x tile + kv/exp_k/exp_k*v intermediates ~ B*tT*(C + 6D)*4 bytes; cap for pipelining.
    cap = max(8, min(512, _STAGE1_BUDGET // max(1, B * (C + 6 * D) * 4)))
    return _largest_divisor_tile(T, cap, 8)


def _stage2_tiles(B, T, C, D, lane_dense):
    """Pick (batches per step, sequence positions per step).  Folds whole batches into the
    matmul M dim until the MXU is filled (>=128 rows); tiles T only when a single batch
    already exceeds the VMEM budget (then bb == 1 so the lane-dense packing stays contiguous)."""
    budget_rows = max(128, _STAGE2_BUDGET // ((C + 3 * D) * 4))
    bb = 1
    for cand in range(1, B + 1):
        if B % cand:
            continue
        if cand * T > budget_rows:
            break
        bb = cand
        if cand * T >= 128:      # MXU M dim filled; keep remaining batches as parallel grid steps
            break
    if bb == 1 and T > budget_rows:
        tT = _largest_divisor_tile(T, budget_rows, 128 if lane_dense else 8)
    else:
        tT = T
    return bb, tT


# --------------------------------------------------------------------------------------------
# Stage 1: per-(batch, channel) ratio  sum_t(exp_k * v) / sum_t(exp_k)
# grid = (D chunks ["parallel"], T tiles ["arbitrary" accumulation]).
# --------------------------------------------------------------------------------------------
def aft_stats_kernel(x_ref, wkv_ref, bkv_ref, ratio_ref, num_acc, den_acc):
    """x_ref   : (B, tT, C)  f32  sequence tile for ALL batches (stabilizer is a cross-batch max)
       wkv_ref : (C, 2*tD)   bf16 fused [K | V] weight chunk -> single MXU pass (K = C is tiny)
       bkv_ref : (1, 2*tD)   f32
       ratio_ref: (B, 1, tD) f32  written on the last sequence step only
       num_acc, den_acc: (B, 1, tD) f32 VMEM scratch accumulators."""
    t = pl.program_id(1)
    B, tT, C = x_ref.shape
    tD = ratio_ref.shape[-1]

    @pl.when(t == 0)
    def _init():
        num_acc[...] = jnp.zeros_like(num_acc)
        den_acc[...] = jnp.zeros_like(den_acc)

    # Fused K/V projection: (B*tT, C) @ (C, 2*tD), bf16 operands, f32 accumulation.
    x2 = x_ref[...].reshape(B * tT, C).astype(wkv_ref.dtype)
    kv = jnp.dot(x2, wkv_ref[...], preferred_element_type=jnp.float32) + bkv_ref[...]
    kv3 = kv.reshape(B, tT, 2 * tD)
    k3 = kv3[:, :, :tD]
    v3 = kv3[:, :, tD:]

    # Cross-batch max (dim 0) exactly as the reference.  exp stays f32 (v5e has no bf16 EUP);
    # this exp is the binding unit at realistic T, the DMA of the next x tile hides under it.
    max_k = jnp.max(k3, axis=0, keepdims=True)
    exp_k = jnp.exp(k3 - max_k)

    num_acc[...] += jnp.sum(exp_k * v3, axis=1, keepdims=True)   # (B, 1, tD)
    den_acc[...] += jnp.sum(exp_k, axis=1, keepdims=True)

    @pl.when(t == pl.num_programs(1) - 1)
    def _finalize():
        # den > 0 for the batch attaining the cross-batch max; other batches can underflow to
        # 0/0 -- hazard inherited from the PyTorch reference (documented, not introduced).
        ratio_ref[...] = num_acc[...] / den_acc[...]


# --------------------------------------------------------------------------------------------
# Stage 2: sigmoid(q) gate * ratio, then the output projection.
# grid = (batch blocks, sequence tiles), both "parallel"; weights resident across steps.
# --------------------------------------------------------------------------------------------
def aft_out_kernel(x_ref, wq_ref, bq_ref, ratio_ref, wo_ref, bo_ref, out_ref, *, lane_dense):
    """x_ref    : (bb, tT, C) f32      wq_ref: (C, D) bf16      bq_ref: (1, D) f32
       ratio_ref: (bb, 1, D)  f32 per-batch num/den from stage 1
       lane_dense=True : wo_ref (C, D) bf16, bo_ref (C, 1) f32, out_ref (1, C, bb*tT)
                         -> transposed store, all 128 lanes dense even when C < 128
       lane_dense=False: wo_ref (D, C) bf16, bo_ref (1, C) f32, out_ref (bb, tT, C)."""
    bb, tT, C = x_ref.shape
    D = wq_ref.shape[-1]
    rows = bb * tT
    mxu = wq_ref.dtype

    x2 = x_ref[...].reshape(rows, C).astype(mxu)
    q = jnp.dot(x2, wq_ref[...], preferred_element_type=jnp.float32) + bq_ref[...]  # (rows, D)

    # sigmoid via EUP exp + approx EUP reciprocal (no VALU Newton divide over the tile).
    sig = pl.reciprocal(1.0 + jnp.exp(-q), approx=True)

    if bb == 1:
        y = sig * ratio_ref[0]                                   # (1, D) broadcast over rows
    else:
        y = sig * jnp.broadcast_to(ratio_ref[...], (bb, tT, D)).reshape(rows, D)

    if lane_dense:
        # out^T = Wo @ y^T : contraction on the last dim of both operands -> (C, rows) store.
        out_t = lax.dot_general(wo_ref[...], y.astype(mxu),
                                (((1,), (1,)), ((), ())),
                                preferred_element_type=jnp.float32) + bo_ref[...]
        out_ref[0] = out_t
    else:
        o = jnp.dot(y.astype(mxu), wo_ref[...], preferred_element_type=jnp.float32) + bo_ref[...]
        out_ref[...] = o.reshape(bb, tT, C)


# --------------------------------------------------------------------------------------------
# Wrapper
# --------------------------------------------------------------------------------------------
def prepare_params(params, mxu_dtype=_MXU_DTYPE):
    """One-time (outside jit) weight prep: transposes, fused K/V weight (chunk-ordered to match
    the stage-1 D split), MXU operands cast to bf16, biases kept f32.

    u, v are dropped: exp(w_bias - w_bias.max(dim=0)) is exp over a singleton-dim max == 1
    exactly, so the learned position bias cannot affect the forward output."""
    wq, bq, wk, bk, wv, bv, u, v, wo, bo = params
    del u, v
    D, C = wq.shape
    nd = _num_d_chunks(D)
    tD = D // nd
    wk_t, wv_t = wk.T, wv.T                                      # (C, D)
    wkv = jnp.concatenate(
        [jnp.concatenate([wk_t[:, i * tD:(i + 1) * tD],
                          wv_t[:, i * tD:(i + 1) * tD]], axis=1)
         for i in range(nd)], axis=1).astype(mxu_dtype)          # (C, 2D), chunk order [K_i | V_i]
    bkv = jnp.concatenate(
        [jnp.concatenate([bk[i * tD:(i + 1) * tD], bv[i * tD:(i + 1) * tD]])
         for i in range(nd)]).reshape(1, 2 * D).astype(jnp.float32)
    return dict(
        wq_t=wq.T.astype(mxu_dtype),                 # (C, D)
        bq=bq.reshape(1, D).astype(jnp.float32),
        wkv=wkv, bkv=bkv,
        wo_cd=wo.astype(mxu_dtype),                  # (C, D)  lane-dense (transposed) store path
        bo_col=bo.reshape(C, 1).astype(jnp.float32),
        wo_dc=wo.T.astype(mxu_dtype),                # (D, C)  natural store path (C >= 128)
        bo_row=bo.reshape(1, C).astype(jnp.float32),
    )


@jax.jit
def aft_full_forward(x, prepped):
    """x: (B, H, W, C) float32 -> (B, H, W, C) float32."""
    B, H, W, C = x.shape
    T = H * W
    D = prepped["wq_t"].shape[-1]
    x3 = x.reshape(B, T, C)

    # ---- Stage 1: ratio = sum_t(exp_k * v) / sum_t(exp_k), per (batch, channel) ------------
    nd = _num_d_chunks(D)
    tD = D // nd
    tT1 = _stage1_seq_tile(T, B, C, D)
    nt1 = T // tT1
    ratio = pl.pallas_call(
        aft_stats_kernel,
        out_shape=jax.ShapeDtypeStruct((B, 1, D), jnp.float32),
        grid=(nd, nt1),
        in_specs=[
            pl.BlockSpec((B, tT1, C), lambda d, t: (0, t, 0)),   # sequence tile, all batches
            pl.BlockSpec((C, 2 * tD), lambda d, t: (0, d)),      # fused K/V weight chunk
            pl.BlockSpec((1, 2 * tD), lambda d, t: (0, d)),
        ],
        out_specs=pl.BlockSpec((B, 1, tD), lambda d, t: (0, 0, d)),
        scratch_shapes=[pltpu.VMEM((B, 1, tD), jnp.float32),
                        pltpu.VMEM((B, 1, tD), jnp.float32)],
        compiler_params=pltpu.CompilerParams(
            dimension_semantics=("parallel", "arbitrary"),
            vmem_limit_bytes=_VMEM_LIMIT),
    )(x3, prepped["wkv"], prepped["bkv"])

    # ---- Stage 2: sigmoid(q) * ratio, output projection --------------------------------------
    lane_dense = C < 128            # C narrower than the 128-lane vreg row -> transposed stores
    bb, tT2 = _stage2_tiles(B, T, C, D, lane_dense)
    nb, nt2 = B // bb, T // tT2

    in_specs = [
        pl.BlockSpec((bb, tT2, C), lambda i, j: (i, j, 0)),
        pl.BlockSpec((C, D), lambda i, j: (0, 0)),               # weights resident across steps
        pl.BlockSpec((1, D), lambda i, j: (0, 0)),
        pl.BlockSpec((bb, 1, D), lambda i, j: (i, 0, 0)),
    ]
    if lane_dense:
        wo_arr, bo_arr = prepped["wo_cd"], prepped["bo_col"]
        in_specs += [pl.BlockSpec((C, D), lambda i, j: (0, 0)),
                     pl.BlockSpec((C, 1), lambda i, j: (0, 0))]
        out_shape = jax.ShapeDtypeStruct((nb, C, bb * T), jnp.float32)
        out_spec = pl.BlockSpec((1, C, bb * tT2), lambda i, j: (i, 0, j))
    else:
        wo_arr, bo_arr = prepped["wo_dc"], prepped["bo_row"]
        in_specs += [pl.BlockSpec((D, C), lambda i, j: (0, 0)),
                     pl.BlockSpec((1, C), lambda i, j: (0, 0))]
        out_shape = jax.ShapeDtypeStruct((B, T, C), jnp.float32)
        out_spec = pl.BlockSpec((bb, tT2, C), lambda i, j: (i, j, 0))

    out = pl.pallas_call(
        functools.partial(aft_out_kernel, lane_dense=lane_dense),
        out_shape=out_shape,
        grid=(nb, nt2),
        in_specs=in_specs,
        out_specs=out_spec,
        compiler_params=pltpu.CompilerParams(
            dimension_semantics=("parallel", "parallel"),
            vmem_limit_bytes=_VMEM_LIMIT),
    )(x3, prepped["wq_t"], prepped["bq"], ratio, wo_arr, bo_arr)

    if lane_dense:
        # Un-pack the transposed lane-dense slab: (nb, C, bb*T) -> (B, T, C).  Tiny metadata-ish
        # transpose of the output only; layout plumbing, not compute.
        out = out.reshape(nb, C, bb, T).transpose(0, 2, 3, 1).reshape(B, T, C)
    return out.reshape(B, H, W, C)


# --------------------------------------------------------------------------------------------
# Pure-JAX transliteration of the PyTorch forward (verification baseline, f32 "highest").
# --------------------------------------------------------------------------------------------
def aft_full_reference(x, params):
    wq, bq, wk, bk, wv, bv, u, v, wo, bo = params
    B, H, W, C = x.shape
    T = H * W
    hi = lax.Precision.HIGHEST
    xf = x.reshape(B, T, C)
    q = jnp.dot(xf, wq.T, precision=hi) + bq
    k = jnp.dot(xf, wk.T, precision=hi) + bk
    vv = jnp.dot(xf, wv.T, precision=hi) + bv
    w = jnp.dot(u, v.T, precision=hi)
    w_bias = w[:T, :T][None]
    max_k = jnp.max(k, axis=0, keepdims=True)
    max_w_bias = jnp.max(w_bias, axis=0, keepdims=True)
    exp_k = jnp.exp(k - max_k)
    exp_w_bias = jnp.exp(w_bias - max_w_bias)            # == ones(1, T, T) exactly
    num = jnp.matmul(exp_w_bias, exp_k * vv, precision=hi)
    den = jnp.matmul(exp_w_bias, exp_k, precision=hi)
    y = jax.nn.sigmoid(q) * num / den
    return (jnp.dot(y, wo.T, precision=hi) + bo).reshape(B, H, W, C)


def init_params(key, dim, hidden_dim, max_len):
    """Deterministic synthetic parameters (shapes match the PyTorch __init__)."""
    ks = jax.random.split(key, 10)

    def linear_init(kw, kb, fan_in, fan_out):
        bound = 1.0 / np.sqrt(fan_in)
        w = jax.random.uniform(kw, (fan_out, fan_in), jnp.float32, -bound, bound)
        b = jax.random.uniform(kb, (fan_out,), jnp.float32, -bound, bound)
        return w, b

    wq, bq = linear_init(ks[0], ks[1], dim, hidden_dim)
    wk, bk = linear_init(ks[2], ks[3], dim, hidden_dim)
    wv, bv = linear_init(ks[4], ks[5], dim, hidden_dim)
    wo, bo = linear_init(ks[6], ks[7], hidden_dim, dim)
    u = 0.01 * jax.random.normal(ks[8], (max_len, hidden_dim), jnp.float32)
    v = 0.01 * jax.random.normal(ks[9], (max_len, hidden_dim), jnp.float32)
    return (wq, bq, wk, bk, wv, bv, u, v, wo, bo)


if __name__ == "__main__":
    B, H, W = 2, 32, 32          # T = 1024: exercises the stage-1 sequence accumulation (2 tiles)
    dim = 16                     # C
    hidden_dim = 128             # D (module default)
    max_len = 2048               # >= T (module default 10000 only inflates the reference)

    key = jax.random.PRNGKey(0)
    kx, kp = jax.random.split(key)
    x = jax.random.normal(kx, (B, H, W, dim), jnp.float32)
    params = init_params(kp, dim, hidden_dim, max_len)

    prepped = prepare_params(params)                     # one-time weight prep, outside jit
    out = jax.block_until_ready(aft_full_forward(x, prepped))
    ref = jax.block_until_ready(aft_full_reference(x, params))

    assert out.shape == (B, H, W, dim)
    # Kernel uses bf16 MXU operands (f32 accumulation) + an approx-EUP sigmoid; reference is
    # f32-highest, hence the ~1e-2 tolerance (observed error is a few 1e-3).
    np.testing.assert_allclose(np.asarray(out), np.asarray(ref), rtol=1e-2, atol=1e-2)

    print("KERNEL_OK")
</pallas_src>

<mosaic_0001>
module attributes {stable_mosaic.version = 11 : i64} {
  func.func @aft_out_kernel(%arg0: i32, %arg1: i32, %arg2: memref<1x1024x16xf32, #tpu.memory_space<vmem>>, %arg3: memref<16x128xbf16, #tpu.memory_space<vmem>>, %arg4: memref<1x128xf32, #tpu.memory_space<vmem>>, %arg5: memref<1x1x128xf32, #tpu.memory_space<vmem>>, %arg6: memref<16x128xbf16, #tpu.memory_space<vmem>>, %arg7: memref<16x1xf32, #tpu.memory_space<vmem>>, %arg8: memref<1x16x1024xf32, #tpu.memory_space<vmem>>) attributes {dimension_semantics = [#tpu.dimension_semantics<parallel>, #tpu.dimension_semantics<parallel>], iteration_bounds = array<i64: 2, 1>, scalar_prefetch = 0 : i64, scratch_operands = 0 : i64, tpu.core_type = #tpu.core_type<tc>, window_params = [{transform_indices = @transform_0, window_bounds = array<i64: 1, 1024, 16>}, {pipeline_mode = #tpu.pipeline_mode<synchronous>, transform_indices = @transform_1, window_bounds = array<i64: 16, 128>}, {pipeline_mode = #tpu.pipeline_mode<synchronous>, transform_indices = @transform_2, window_bounds = array<i64: 1, 128>}, {transform_indices = @transform_3, window_bounds = array<i64: 1, 1, 128>}, {pipeline_mode = #tpu.pipeline_mode<synchronous>, transform_indices = @transform_4, window_bounds = array<i64: 16, 128>}, {pipeline_mode = #tpu.pipeline_mode<synchronous>, transform_indices = @transform_5, window_bounds = array<i64: 16, 1>}, {transform_indices = @transform_6, window_bounds = array<i64: 1, 16, 1024>}]} {
    %c0 = arith.constant 0 : index
    %c0_0 = arith.constant 0 : index
    %c0_1 = arith.constant 0 : index
    %0 = vector.load %arg2[%c0, %c0_0, %c0_1] : memref<1x1024x16xf32, #tpu.memory_space<vmem>>, vector<1x1024x16xf32>
    %1 = vector.shape_cast %0 : vector<1x1024x16xf32> to vector<1024x16xf32>
    %2 = arith.truncf %1 : vector<1024x16xf32> to vector<1024x16xbf16>
    %c0_2 = arith.constant 0 : index
    %c0_3 = arith.constant 0 : index
    %3 = vector.load %arg3[%c0_2, %c0_3] : memref<16x128xbf16, #tpu.memory_space<vmem>>, vector<16x128xbf16>
    %cst = arith.constant dense<0.000000e+00> : vector<1024x128xf32>
    %4 = tpu.matmul %2, %3, %cst {dimension_numbers = #tpu.dot_dimension_numbers<[1], [0], [0], [1], [0, 0, 1, 1], [], []>} : vector<1024x16xbf16>, vector<16x128xbf16>, vector<1024x128xf32> -> vector<1024x128xf32>
    %c0_4 = arith.constant 0 : index
    %c0_5 = arith.constant 0 : index
    %5 = vector.load %arg4[%c0_4, %c0_5] : memref<1x128xf32, #tpu.memory_space<vmem>>, vector<1x128xf32>
    %6 = vector.broadcast %5 : vector<1x128xf32> to vector<1024x128xf32>
    %7 = arith.addf %4, %6 : vector<1024x128xf32>
    %cst_6 = arith.constant 0.000000e+00 : f32
    %8 = vector.broadcast %cst_6 : f32 to vector<1024x128xf32>
    %9 = arith.subf %8, %7 : vector<1024x128xf32>
    %10 = math.exp %9 : vector<1024x128xf32>
    %cst_7 = arith.constant 1.000000e+00 : f32
    %11 = vector.broadcast %cst_7 : f32 to vector<1024x128xf32>
    %12 = arith.addf %11, %10 : vector<1024x128xf32>
    %13 = tpu.reciprocal %12 {approx = true} : vector<1024x128xf32> -> vector<1024x128xf32>
    %c0_8 = arith.constant 0 : index
    %c0_9 = arith.constant 0 : index
    %c0_10 = arith.constant 0 : index
    %14 = vector.load %arg5[%c0_8, %c0_9, %c0_10] : memref<1x1x128xf32, #tpu.memory_space<vmem>>, vector<1x1x128xf32>
    %15 = vector.shape_cast %14 : vector<1x1x128xf32> to vector<1x128xf32>
    %16 = vector.broadcast %15 : vector<1x128xf32> to vector<1024x128xf32>
    %17 = arith.mulf %13, %16 : vector<1024x128xf32>
    %c0_11 = arith.constant 0 : index
    %c0_12 = arith.constant 0 : index
    %18 = vector.load %arg6[%c0_11, %c0_12] : memref<16x128xbf16, #tpu.memory_space<vmem>>, vector<16x128xbf16>
    %19 = arith.truncf %17 : vector<1024x128xf32> to vector<1024x128xbf16>
    %cst_13 = arith.constant dense<0.000000e+00> : vector<16x1024xf32>
    %20 = tpu.matmul %18, %19, %cst_13 {dimension_numbers = #tpu.dot_dimension_numbers<[1], [1], [0], [0], [0, 0, 1, 0], [], []>} : vector<16x128xbf16>, vector<1024x128xbf16>, vector<16x1024xf32> -> vector<16x1024xf32>
    %c0_14 = arith.constant 0 : index
    %c0_15 = arith.constant 0 : index
    %21 = vector.load %arg7[%c0_14, %c0_15] : memref<16x1xf32, #tpu.memory_space<vmem>>, vector<16x1xf32>
    %22 = vector.broadcast %21 : vector<16x1xf32> to vector<16x1024xf32>
    %23 = arith.addf %20, %22 : vector<16x1024xf32>
    %c0_16 = arith.constant 0 : index
    %c0_17 = arith.constant 0 : index
    %c0_18 = arith.constant 0 : index
    %24 = vector.load %arg8[%c0_16, %c0_17, %c0_18] : memref<1x16x1024xf32, #tpu.memory_space<vmem>>, vector<1x16x1024xf32>
    %25 = vector.shape_cast %24 : vector<1x16x1024xf32> to vector<16x1024xf32>
    %26 = vector.shape_cast %23 : vector<16x1024xf32> to vector<1x16x1024xf32>
    tpu.vector_store %arg8[%c0_16, %c0_17, %c0_18], %26 {strides = array<i32>} : memref<1x16x1024xf32, #tpu.memory_space<vmem>>, vector<1x16x1024xf32>,
    return
  }
  func.func @transform_0(%arg0: i32, %arg1: i32) -> (i32, i32, i32) {
    %c0_i32 = arith.constant 0 : i32
    %c0_i32_0 = arith.constant 0 : i32
    return %arg0, %arg1, %c0_i32 : i32, i32, i32
  }
  func.func @transform_1(%arg0: i32, %arg1: i32) -> (i32, i32) {
    %c0_i32 = arith.constant 0 : i32
    %c0_i32_0 = arith.constant 0 : i32
    %c0_i32_1 = arith.constant 0 : i32
    return %c0_i32, %c0_i32_0 : i32, i32
  }
  func.func @transform_2(%arg0: i32, %arg1: i32) -> (i32, i32) {
    %c0_i32 = arith.constant 0 : i32
    %c0_i32_0 = arith.constant 0 : i32
    %c0_i32_1 = arith.constant 0 : i32
    return %c0_i32, %c0_i32_0 : i32, i32
  }
  func.func @transform_3(%arg0: i32, %arg1: i32) -> (i32, i32, i32) {
    %c0_i32 = arith.constant 0 : i32
    %c0_i32_0 = arith.constant 0 : i32
    %c0_i32_1 = arith.constant 0 : i32
    return %arg0, %c0_i32, %c0_i32_0 : i32, i32, i32
  }
  func.func @transform_4(%arg0: i32, %arg1: i32) -> (i32, i32) {
    %c0_i32 = arith.constant 0 : i32
    %c0_i32_0 = arith.constant 0 : i32
    %c0_i32_1 = arith.constant 0 : i32
    return %c0_i32, %c0_i32_0 : i32, i32
  }
  func.func @transform_5(%arg0: i32, %arg1: i32) -> (i32, i32) {
    %c0_i32 = arith.constant 0 : i32
    %c0_i32_0 = arith.constant 0 : i32
    %c0_i32_1 = arith.constant 0 : i32
    return %c0_i32, %c0_i32_0 : i32, i32
  }
  func.func @transform_6(%arg0: i32, %arg1: i32) -> (i32, i32, i32) {
    %c0_i32 = arith.constant 0 : i32
    %c0_i32_0 = arith.constant 0 : i32
    return %arg0, %c0_i32, %arg1 : i32, i32, i32
  }
}

module attributes {stable_mosaic.version = 11 : i64} {
  func.func @aft_stats_kernel(%arg0: i32, %arg1: i32, %arg2: memref<2x512x16xf32, #tpu.memory_space<vmem>>, %arg3: memref<16x256xbf16, #tpu.memory_space<vmem>>, %arg4: memref<1x256xf32, #tpu.memory_space<vmem>>, %arg5: memref<2x1x128xf32, #tpu.memory_space<vmem>>, %arg6: memref<2x1x128xf32, #tpu.memory_space<vmem>>, %arg7: memref<2x1x128xf32, #tpu.memory_space<vmem>>) attributes {dimension_semantics = [#tpu.dimension_semantics<parallel>, #tpu.dimension_semantics<arbitrary>], iteration_bounds = array<i64: 1, 2>, scalar_prefetch = 0 : i64, scratch_operands = 2 : i64, tpu.core_type = #tpu.core_type<tc>, window_params = [{transform_indices = @transform_0, window_bounds = array<i64: 2, 512, 16>}, {transform_indices = @transform_1, window_bounds = array<i64: 16, 256>}, {transform_indices = @transform_2, window_bounds = array<i64: 1, 256>}, {transform_indices = @transform_3, window_bounds = array<i64: 2, 1, 128>}]} {
    %c0_i32 = arith.constant 0 : i32
    %0 = arith.cmpi eq, %arg1, %c0_i32 : i32
    %1 = arith.extui %0 : i1 to i32
    %c0_i32_0 = arith.constant 0 : i32
    %2 = arith.cmpi ne, %1, %c0_i32_0 : i32
    scf.if %2 {
      %cst_23 = arith.constant 0.000000e+00 : f32
      %33 = vector.broadcast %cst_23 : f32 to vector<2x1x128xf32>
      %c0_24 = arith.constant 0 : index
      %c0_25 = arith.constant 0 : index
      %c0_26 = arith.constant 0 : index
      %34 = vector.load %arg6[%c0_24, %c0_25, %c0_26] : memref<2x1x128xf32, #tpu.memory_space<vmem>>, vector<2x1x128xf32>
      tpu.vector_store %arg6[%c0_24, %c0_25, %c0_26], %33 {strides = array<i32>} : memref<2x1x128xf32, #tpu.memory_space<vmem>>, vector<2x1x128xf32>,
      %cst_27 = arith.constant 0.000000e+00 : f32
      %35 = vector.broadcast %cst_27 : f32 to vector<2x1x128xf32>
      %c0_28 = arith.constant 0 : index
      %c0_29 = arith.constant 0 : index
      %c0_30 = arith.constant 0 : index
      %36 = vector.load %arg7[%c0_28, %c0_29, %c0_30] : memref<2x1x128xf32, #tpu.memory_space<vmem>>, vector<2x1x128xf32>
      tpu.vector_store %arg7[%c0_28, %c0_29, %c0_30], %35 {strides = array<i32>} : memref<2x1x128xf32, #tpu.memory_space<vmem>>, vector<2x1x128xf32>,
    } else {
    }
    %c0 = arith.constant 0 : index
    %c0_1 = arith.constant 0 : index
    %c0_2 = arith.constant 0 : index
    %3 = vector.load %arg2[%c0, %c0_1, %c0_2] : memref<2x512x16xf32, #tpu.memory_space<vmem>>, vector<2x512x16xf32>
    %4 = vector.shape_cast %3 : vector<2x512x16xf32> to vector<1024x16xf32>
    %5 = arith.truncf %4 : vector<1024x16xf32> to vector<1024x16xbf16>
    %c0_3 = arith.constant 0 : index
    %c0_4 = arith.constant 0 : index
    %6 = vector.load %arg3[%c0_3, %c0_4] : memref<16x256xbf16, #tpu.memory_space<vmem>>, vector<16x256xbf16>
    %cst = arith.constant dense<0.000000e+00> : vector<1024x256xf32>
    %7 = tpu.matmul %5, %6, %cst {dimension_numbers = #tpu.dot_dimension_numbers<[1], [0], [0], [1], [0, 0, 1, 1], [], []>} : vector<1024x16xbf16>, vector<16x256xbf16>, vector<1024x256xf32> -> vector<1024x256xf32>
    %c0_5 = arith.constant 0 : index
    %c0_6 = arith.constant 0 : index
    %8 = vector.load %arg4[%c0_5, %c0_6] : memref<1x256xf32, #tpu.memory_space<vmem>>, vector<1x256xf32>
    %9 = vector.broadcast %8 : vector<1x256xf32> to vector<1024x256xf32>
    %10 = arith.addf %7, %9 : vector<1024x256xf32>
    %11 = vector.shape_cast %10 : vector<1024x256xf32> to vector<2x512x256xf32>
    %12 = vector.extract_strided_slice %11 {offsets = [0, 0, 0], sizes = [2, 512, 128], strides = [1, 1, 1]} : vector<2x512x256xf32> to vector<2x512x128xf32>
    %13 = vector.extract_strided_slice %11 {offsets = [0, 0, 128], sizes = [2, 512, 128], strides = [1, 1, 1]} : vector<2x512x256xf32> to vector<2x512x128xf32>
    %cst_7 = arith.constant dense<0xFF800000> : vector<512x128xf32>
    %14 = vector.multi_reduction <maximumf>, %12, %cst_7 [0] : vector<2x512x128xf32> to vector<512x128xf32>
    %15 = vector.shape_cast %14 : vector<512x128xf32> to vector<1x512x128xf32>
    %16 = vector.broadcast %15 : vector<1x512x128xf32> to vector<2x512x128xf32>
    %17 = arith.subf %12, %16 : vector<2x512x128xf32>
    %18 = math.exp %17 : vector<2x512x128xf32>
    %c0_8 = arith.constant 0 : index
    %c0_9 = arith.constant 0 : index
    %c0_10 = arith.constant 0 : index
    %19 = vector.load %arg6[%c0_8, %c0_9, %c0_10] : memref<2x1x128xf32, #tpu.memory_space<vmem>>, vector<2x1x128xf32>
    %20 = arith.mulf %18, %13 : vector<2x512x128xf32>
    %cst_11 = arith.constant dense<0.000000e+00> : vector<2x128xf32>
    %21 = vector.multi_reduction <add>, %20, %cst_11 [1] : vector<2x512x128xf32> to vector<2x128xf32>
    %22 = vector.shape_cast %21 : vector<2x128xf32> to vector<2x1x128xf32>
    %23 = arith.addf %19, %22 : vector<2x1x128xf32>
    %c0_12 = arith.constant 0 : index
    %c0_13 = arith.constant 0 : index
    %c0_14 = arith.constant 0 : index
    %24 = vector.load %arg6[%c0_12, %c0_13, %c0_14] : memref<2x1x128xf32, #tpu.memory_space<vmem>>, vector<2x1x128xf32>
    tpu.vector_store %arg6[%c0_12, %c0_13, %c0_14], %23 {strides = array<i32>} : memref<2x1x128xf32, #tpu.memory_space<vmem>>, vector<2x1x128xf32>,
    %c0_15 = arith.constant 0 : index
    %c0_16 = arith.constant 0 : index
    %c0_17 = arith.constant 0 : index
    %25 = vector.load %arg7[%c0_15, %c0_16, %c0_17] : memref<2x1x128xf32, #tpu.memory_space<vmem>>, vector<2x1x128xf32>
    %cst_18 = arith.constant dense<0.000000e+00> : vector<2x128xf32>
    %26 = vector.multi_reduction <add>, %18, %cst_18 [1] : vector<2x512x128xf32> to vector<2x128xf32>
    %27 = vector.shape_cast %26 : vector<2x128xf32> to vector<2x1x128xf32>
    %28 = arith.addf %25, %27 : vector<2x1x128xf32>
    %c0_19 = arith.constant 0 : index
    %c0_20 = arith.constant 0 : index
    %c0_21 = arith.constant 0 : index
    %29 = vector.load %arg7[%c0_19, %c0_20, %c0_21] : memref<2x1x128xf32, #tpu.memory_space<vmem>>, vector<2x1x128xf32>
    tpu.vector_store %arg7[%c0_19, %c0_20, %c0_21], %28 {strides = array<i32>} : memref<2x1x128xf32, #tpu.memory_space<vmem>>, vector<2x1x128xf32>,
    %c1_i32 = arith.constant 1 : i32
    %30 = arith.cmpi eq, %arg1, %c1_i32 : i32
    %31 = arith.extui %30 : i1 to i32
    %c0_i32_22 = arith.constant 0 : i32
    %32 = arith.cmpi ne, %31, %c0_i32_22 : i32
    scf.if %32 {
      %c0_23 = arith.constant 0 : index
      %c0_24 = arith.constant 0 : index
      %c0_25 = arith.constant 0 : index
      %33 = vector.load %arg6[%c0_23, %c0_24, %c0_25] : memref<2x1x128xf32, #tpu.memory_space<vmem>>, vector<2x1x128xf32>
      %c0_26 = arith.constant 0 : index
      %c0_27 = arith.constant 0 : index
      %c0_28 = arith.constant 0 : index
      %34 = vector.load %arg7[%c0_26, %c0_27, %c0_28] : memref<2x1x128xf32, #tpu.memory_space<vmem>>, vector<2x1x128xf32>
      %35 = arith.divf %33, %34 : vector<2x1x128xf32>
      %c0_29 = arith.constant 0 : index
      %c0_30 = arith.constant 0 : index
      %c0_31 = arith.constant 0 : index
      %36 = vector.load %arg5[%c0_29, %c0_30, %c0_31] : memref<2x1x128xf32, #tpu.memory_space<vmem>>, vector<2x1x128xf32>
      tpu.vector_store %arg5[%c0_29, %c0_30, %c0_31], %35 {strides = array<i32>} : memref<2x1x128xf32, #tpu.memory_space<vmem>>, vector<2x1x128xf32>,
    } else {
    }
    return
  }
  func.func @transform_0(%arg0: i32, %arg1: i32) -> (i32, i32, i32) {
    %c0_i32 = arith.constant 0 : i32
    %c0_i32_0 = arith.constant 0 : i32
    %c0_i32_1 = arith.constant 0 : i32
    return %c0_i32, %arg1, %c0_i32_0 : i32, i32, i32
  }
  func.func @transform_1(%arg0: i32, %arg1: i32) -> (i32, i32) {
    %c0_i32 = arith.constant 0 : i32
    %c0_i32_0 = arith.constant 0 : i32
    return %c0_i32, %arg0 : i32, i32
  }
  func.func @transform_2(%arg0: i32, %arg1: i32) -> (i32, i32) {
    %c0_i32 = arith.constant 0 : i32
    %c0_i32_0 = arith.constant 0 : i32
    return %c0_i32, %arg0 : i32, i32
  }
  func.func @transform_3(%arg0: i32, %arg1: i32) -> (i32, i32, i32) {
    %c0_i32 = arith.constant 0 : i32
    %c0_i32_0 = arith.constant 0 : i32
    %c0_i32_1 = arith.constant 0 : i32
    return %c0_i32, %c0_i32_0, %arg0 : i32, i32, i32
  }
}

</mosaic_0001>

<bundles_post_ra>
// kernel: aft_full_forward.3
= control target key start
LH: loop header
LB: loop body
LE: loop exit
PB: predicated region body
PF: predicated region fallthrough
CT: control target
= control target key end

     0   :  { %s2807_s21 = smov 0   ;;  %s2809_s22 = smov 0   ;;  %s3882_s0 = inlined_call_operand.vmem [shape: f32[2,1024,16], index: 0, kind: input, shape index: {}]   ;;  %s3883_s1 = inlined_call_operand.vmem [shape: bf16[16,128], index: 1, kind: input, shape index: {}]   ;;  %s3884_s2 = inlined_call_operand.vmem [shape: f32[1,128], index: 2, kind: input, shape index: {}]   ;;  %s3885_s3 = inlined_call_operand.vmem [shape: f32[2,1,128], index: 3, kind: input, shape index: {}]   ;;  %s3886_s4 = inlined_call_operand.vmem [shape: bf16[16,128], index: 4, kind: input, shape index: {}]   ;;  %s3887_s5 = inlined_call_operand.vmem [shape: f32[16,1], index: 5, kind: input, shape index: {}]   ;;  %s3888_s6 = inlined_call_operand.vmem [shape: f32[2,16,1024], index: 6, kind: output, shape index: {}]  }
   0x1   :  { %s2811_s23 = smov 0  }
   0x2 LB: > { %s28_s24 = sadd.s32 1, %s2765_s22  ;;  %p2116_p0 = scmp.ge.s32.totalorder %s2769_s23, 1  ;;  %s2769_s23 = sphi %s2811_s23, %s16_s23   ;;  %s2765_s22 = sphi %s2809_s22, %s3906_s22   ;;  %s2761_s21 = sphi %s2807_s21, %s3905_s21  }
   0x3   : > { %p30_p1 = scmp.ge.s32.totalorder %s28_s24, 2  ;;  %p241_p2 = scmp.lt.s32.totalorder %s2769_s23, 3 }
   0x5   : > { %s3908_s24 = smov (%p30_p1, %s28_s24), 0  ;;  %p242_p3 = pnand %p2116_p0, %p241_p2 }
   0x6   : > { %p283_p4 = scmp.lt.s32.totalorder (!%p242_p3), %s2761_s21, 1 }
   0x7   : > { %245 = sbr.rel (%p242_p3) target bundleno = 817 (0x331), region = 44 }
   0xc   : > { %v2197_v0 = vld [vmem:[%s3883_s1] sm:$0xff]  ;;  %s3910_s21 = smov (!%p283_p4, %s2761_s21), 1  ;;  %vm510_vm0 = vcmask 130048  }
   0xd   : > { %710 = vmatpush.bf16.msra.mxu0 %v2197_v0  ;;  %2199 = vmatpush.bf16.msra.mxu1 %v2197_v0  ;;  %s2195_s27 = sshll.u32 %s3910_s21, 10  ;;  %s2835_s30 = scalar_lea.vmem %s3885_s3, %s3910_s21 }
   0xe   : > { %2201 = vmatpush.bf16.msra.mxu3 %v2197_v0  ;;  %2200 = vmatpush.bf16.msra.mxu2 %v2197_v0  ;;  %s2840_s9 = scalar_lea.vmem %s3882_s0, %s2195_s27  ;;  %s2196_s28 = sshll.u32 %s3910_s21, 7 }
   0xf   : > { %v306_v1 = vld [vmem:[%s2840_s9] sm:$0xff]  ;;  %v307_v2 = vld [vmem:[%s2840_s9 + $0x8] sm:$0xff]  ;;  %v308_v4 = vld [vmem:[%s2840_s9 + $0x10] sm:$0xff]  ;;  %s3855_s7 = scalar_lea.vmem %s3888_s6, %s2196_s28 }
  0x10   : > { %v434_v3 = vpack.c.bf16 %v307_v2, %v306_v1  ;;  %v309_v5 = vld [vmem:[%s2840_s9 + $0x18] sm:$0xff]  ;;  %v354_v7 = vld [vmem:[%s2840_s9 + $0x180] sm:$0xff]  ;;  %v355_v8 = vld [vmem:[%s2840_s9 + $0x188] sm:$0xff] }
  0x11   : > { %v435_v6 = vpack.c.bf16 %v309_v5, %v308_v4  ;;  %v458_v9 = vpack.c.bf16 %v355_v8, %v354_v7  ;;  %v310_v10 = vld [vmem:[%s2840_s9 + $0x20] sm:$0xff]  ;;  %v311_v11 = vld [vmem:[%s2840_s9 + $0x28] sm:$0xff]  ;;  %v356_v13 = vld [vmem:[%s2840_s9 + $0x190] sm:$0xff] }
  0x12   : > { %2125 = vmatmul.msk.bf16.vlgmr.msra.gmra.mxu0 %vm510_vm0, %v434_v3  ;;  %v436_v12 = vpack.c.bf16 %v311_v11, %v310_v10  ;;  %v357_v14 = vld [vmem:[%s2840_s9 + $0x198] sm:$0xff]  ;;  %v312_v16 = vld [vmem:[%s2840_s9 + $0x30] sm:$0xff]  ;;  %v398_v18 = vld [vmem:[%s2840_s9 + $0x2e0] sm:$0xff] }
  0x13   : > { %2149 = vmatmul.msk.bf16.vlgmr.msra.gmra.mxu1 %vm510_vm0, %v458_v9  ;;  %v459_v15 = vpack.c.bf16 %v357_v14, %v356_v13  ;;  %v313_v17 = vld [vmem:[%s2840_s9 + $0x38] sm:$0xff]  ;;  %v399_v19 = vld [vmem:[%s2840_s9 + $0x2e8] sm:$0xff]  ;;  %v358_v22 = vld [vmem:[%s2840_s9 + $0x1a0] sm:$0xff] }
  0x14   : > { %v480_v20 = vpack.c.bf16 %v399_v19, %v398_v18  ;;  %v437_v21 = vpack.c.bf16 %v313_v17, %v312_v16  ;;  %v359_v23 = vld [vmem:[%s2840_s9 + $0x1a8] sm:$0xff]  ;;  %v314_v25 = vld [vmem:[%s2840_s9 + $0x40] sm:$0xff]  ;;  %v400_v27 = vld [vmem:[%s2840_s9 + $0x2f0] sm:$0xff] }
  0x15   : > { %v460_v24 = vpack.c.bf16 %v359_v23, %v358_v22  ;;  %v315_v26 = vld [vmem:[%s2840_s9 + $0x48] sm:$0xff]  ;;  %v401_v28 = vld [vmem:[%s2840_s9 + $0x2f8] sm:$0xff]  ;;  %v360_v31 = vld [vmem:[%s2840_s9 + $0x1b0] sm:$0xff] }
  0x16   : > { %2171 = vmatmul.msk.bf16.vlgmr.msra.gmra.mxu3 %vm510_vm0, %v480_v20  ;;  %v481_v29 = vpack.c.bf16 %v401_v28, %v400_v27  ;;  %v438_v30 = vpack.c.bf16 %v315_v26, %v314_v25  ;;  %v361_v32 = vld [vmem:[%s2840_s9 + $0x1b8] sm:$0xff]  ;;  %v316_v34 = vld [vmem:[%s2840_s9 + $0x50] sm:$0xff]  ;;  %v402_v36 = vld [vmem:[%s2840_s9 + $0x300] sm:$0xff] }
  0x17   : > { %v461_v33 = vpack.c.bf16 %v361_v32, %v360_v31  ;;  %v317_v35 = vld [vmem:[%s2840_s9 + $0x58] sm:$0xff]  ;;  %v403_v37 = vld [vmem:[%s2840_s9 + $0x308] sm:$0xff]  ;;  %v362_v40 = vld [vmem:[%s2840_s9 + $0x1c0] sm:$0xff] }
  0x18   : > { %v482_v38 = vpack.c.bf16 %v403_v37, %v402_v36  ;;  %v439_v39 = vpack.c.bf16 %v317_v35, %v316_v34  ;;  %v363_v41 = vld [vmem:[%s2840_s9 + $0x1c8] sm:$0xff]  ;;  %v318_v43 = vld [vmem:[%s2840_s9 + $0x60] sm:$0xff]  ;;  %v404_v45 = vld [vmem:[%s2840_s9 + $0x310] sm:$0xff] }
  0x19   : > { %v462_v42 = vpack.c.bf16 %v363_v41, %v362_v40  ;;  %v319_v44 = vld [vmem:[%s2840_s9 + $0x68] sm:$0xff]  ;;  %v405_v46 = vld [vmem:[%s2840_s9 + $0x318] sm:$0xff]  ;;  %v364_v49 = vld [vmem:[%s2840_s9 + $0x1d0] sm:$0xff] }
  0x1a   : > { %v483_v47 = vpack.c.bf16 %v405_v46, %v404_v45  ;;  %v440_v48 = vpack.c.bf16 %v319_v44, %v318_v43  ;;  %v365_v50 = vld [vmem:[%s2840_s9 + $0x1d8] sm:$0xff]  ;;  %v320_v52 = vld [vmem:[%s2840_s9 + $0x70] sm:$0xff]  ;;  %v406_v54 = vld [vmem:[%s2840_s9 + $0x320] sm:$0xff] }
  0x1b   : > { %v463_v51 = vpack.c.bf16 %v365_v50, %v364_v49  ;;  %v321_v53 = vld [vmem:[%s2840_s9 + $0x78] sm:$0xff]  ;;  %v407_v55 = vld [vmem:[%s2840_s9 + $0x328] sm:$0xff]  ;;  %v366_v58 = vld [vmem:[%s2840_s9 + $0x1e0] sm:$0xff] }
  0x1c   : > { %v484_v56 = vpack.c.bf16 %v407_v55, %v406_v54  ;;  %v441_v57 = vpack.c.bf16 %v321_v53, %v320_v52  ;;  %v367_v59 = vld [vmem:[%s2840_s9 + $0x1e8] sm:$0xff]  ;;  %v322_v61 = vld [vmem:[%s2840_s9 + $0x80] sm:$0xff]  ;;  %v408_v63 = vld [vmem:[%s2840_s9 + $0x330] sm:$0xff] }
  0x1d   : > { %v464_v60 = vpack.c.bf16 %v367_v59, %v366_v58  ;;  %v323_v62 = vld [vmem:[%s2840_s9 + $0x88] sm:$0xff]  ;;  %v409_v0 = vld [vmem:[%s2840_s9 + $0x338] sm:$0xff]  ;;  %v2909_v1 = vld [vmem:[%s3884_s2] ss:$0 sm:$0xff] }
  0x1e   : > { %v485_v2 = vpack.c.bf16 %v409_v0, %v408_v63  ;;  %v442_v3 = vpack.c.bf16 %v323_v62, %v322_v61  ;;  %v368_v10 = vld [vmem:[%s2840_s9 + $0x1f0] sm:$0xff]  ;;  %v369_v11 = vld [vmem:[%s2840_s9 + $0x1f8] sm:$0xff]  ;;  %v410_v16 = vld [vmem:[%s2840_s9 + $0x340] sm:$0xff] }
  0x1f   : > { %v324_v14 = vld [vmem:[%s2840_s9 + $0x90] sm:$0xff]  ;;  %v411_v17 = vld [vmem:[%s2840_s9 + $0x348] sm:$0xff]  ;;  %v2927_v31 = vld [vmem:[%s2835_s30] ss:$0 sm:$0xff] }
  0x20   : > { %v486_v19 = vpack.c.bf16 %v411_v17, %v410_v16  ;;  %v327_v35 = vld [vmem:[%s2840_s9 + $0xa8] sm:$0xff]  ;;  %v412_v36 = vld [vmem:[%s2840_s9 + $0x350] sm:$0xff]  ;;  %v413_v37 = vld [vmem:[%s2840_s9 + $0x358] sm:$0xff] }
  0x21   : > { %v329_v59 = vld [vmem:[%s2840_s9 + $0xb8] sm:$0xff]  ;;  %v415_v61 = vld [vmem:[%s2840_s9 + $0x368] sm:$0xff] }
  0x22   : > { %2126 = vmatmul.msk.bf16.gmra.mxu0 %vm510_vm0, %v435_v6 }
  0x23   : > { %2150 = vmatmul.msk.bf16.gmra.mxu1 %vm510_vm0, %v459_v15  ;;  %v325_v15 = vld [vmem:[%s2840_s9 + $0x98] sm:$0xff] }
  0x26   : > { %2172 = vmatmul.msk.bf16.gmra.mxu3 %vm510_vm0, %v481_v29 }
  0x32   : > { %2127 = vmatmul.msk.bf16.gmra.mxu0 %vm510_vm0, %v436_v12  ;;  %v465_v12 = vpack.c.bf16 %v369_v11, %v368_v10 }
  0x33   : > { %2151 = vmatmul.msk.bf16.gmra.mxu1 %vm510_vm0, %v460_v24 }
  0x36   : > { %2173 = vmatmul.msk.bf16.gmra.mxu3 %vm510_vm0, %v482_v38 }
  0x42   : > { %2128 = vmatmul.msk.bf16.gmra.mxu0 %vm510_vm0, %v437_v21  ;;  %v443_v21 = vpack.c.bf16 %v325_v15, %v324_v14 }
  0x43   : > { %2152 = vmatmul.msk.bf16.gmra.mxu1 %vm510_vm0, %v461_v33  ;;  %v326_v33 = vld [vmem:[%s2840_s9 + $0xa0] sm:$0xff] }
  0x46   : > { %2174 = vmatmul.msk.bf16.gmra.mxu3 %vm510_vm0, %v483_v47 }
  0x52   : > { %2129 = vmatmul.msk.bf16.gmra.mxu0 %vm510_vm0, %v438_v30 }
  0x53   : > { %2153 = vmatmul.msk.bf16.gmra.mxu1 %vm510_vm0, %v462_v42  ;;  %v444_v42 = vpack.c.bf16 %v327_v35, %v326_v33 }
  0x56   : > { %2175 = vmatmul.msk.bf16.gmra.mxu3 %vm510_vm0, %v484_v56 }
  0x62   : > { %2130 = vmatmul.msk.bf16.gmra.mxu0 %vm510_vm0, %v439_v39  ;;  %v487_v39 = vpack.c.bf16 %v413_v37, %v412_v36 }
  0x63   : > { %2154 = vmatmul.msk.bf16.gmra.mxu1 %vm510_vm0, %v463_v51 }
  0x66   : > { %2176 = vmatmul.msk.bf16.gmra.mxu3 %vm510_vm0, %v485_v2 }
  0x72   : > { %2131 = vmatmul.msk.bf16.gmra.mxu0 %vm510_vm0, %v440_v48 }
  0x73   : > { %2155 = vmatmul.msk.bf16.gmra.mxu1 %vm510_vm0, %v464_v60  ;;  %v414_v60 = vld [vmem:[%s2840_s9 + $0x360] sm:$0xff] }
  0x74   : > { %v488_v63 = vpack.c.bf16 %v415_v61, %v414_v60 }
  0x76   : > { %2177 = vmatmul.msk.bf16.gmra.mxu3 %vm510_vm0, %v486_v19 }
  0x82   : > { %2132 = vmatmul.msk.bf16.gmra.mxu0 %vm510_vm0, %v441_v57  ;;  %v328_v57 = vld [vmem:[%s2840_s9 + $0xb0] sm:$0xff] }
  0x83   : > { %2156 = vmatmul.msk.bf16.gmra.mxu1 %vm510_vm0, %v465_v12 }
  0x86   : > { %2178 = vmatmul.msk.bf16.gmra.mxu3 %vm510_vm0, %v487_v39 }
  0x8f   : > { %v712_v4 = vpop.f32.mrf.mxu0 }
  0x90   : > { %v713_v5 = vadd.f32 %v2909_v1, %v712_v4  ;;  %v2944_v52 = vpop.f32.mrf.mxu1 }
  0x92   : > { %v1032_v6 = vsub.f32 0.0, %v713_v5  ;;  %2133 = vmatmul.msk.bf16.gmra.mxu0 %vm510_vm0, %v442_v3  ;;  %v445_v3 = vpack.c.bf16 %v329_v59, %v328_v57 }
  0x94   : > { %v1160_v7 = vmul.f32 1.442695, %v1032_v6 }
  0x96   : > { %2230 = vpow2.f32 %v1160_v7  ;;  %2179 = vmatmul.msk.bf16.gmra.mxu3 %vm510_vm0, %v488_v63 }
  0x97   : > { %v714_v8 = vpop.f32.mrf.mxu0 }
  0x98   : > { %v715_v9 = vadd.f32 %v2909_v1, %v714_v8  ;;  %v2951_v4 = vpop.f32.mrf.mxu1 }
  0x99   : > { %v2963_v11 = vpop.f32.mrf.mxu3 }
  0x9a   : > { %v1033_v13 = vsub.f32 0.0, %v715_v9 }
  0x9c   : > { %v1162_v18 = vmul.f32 1.442695, %v1033_v13  ;;  %v2231_v20 = vpop.eup %2230 }
  0x9d   : > { %v1416_v24 = vadd.f32 1.0, %v2231_v20 }
  0x9e   : > { %2232 = vpow2.f32 %v1162_v18 }
  0x9f   : > { %v717_v22 = vpop.f32.mrf.mxu0  ;;  %2234 = vrcp.f32 %v1416_v24  ;;  %v416_v24 = vld [vmem:[%s2840_s9 + $0x370] sm:$0xff] }
  0xa0   : > { %v718_v23 = vadd.f32 %v2909_v1, %v717_v22  ;;  %v2967_v18 = vpop.f32.mrf.mxu1 }
  0xa1   : > { %v2969_v19 = vpop.f32.mrf.mxu3 }
  0xa2   : > { %v1034_v25 = vsub.f32 0.0, %v718_v23  ;;  %2134 = vmatmul.msk.bf16.gmra.mxu0 %vm510_vm0, %v443_v21  ;;  %v330_v21 = vld [vmem:[%s2840_s9 + $0xc0] sm:$0xff]  ;;  %v331_v23 = vld [vmem:[%s2840_s9 + $0xc8] sm:$0xff] }
  0xa4   : > { %v2233_v26 = vpop.eup %2232  ;;  %v1164_v27 = vmul.f32 1.442695, %v1034_v25  ;;  %v417_v25 = vld [vmem:[%s2840_s9 + $0x378] sm:$0xff] }
  0xa5   : > { %v1417_v28 = vadd.f32 1.0, %v2233_v26  ;;  %v2235_v34 = vpop.eup %2234 }
  0xa6   : > { %v2935_v43 = vmul.f32 %v2235_v34, %v2927_v31 }
  0xa7   : > { %2236 = vrcp.f32 %v1417_v28  ;;  %v719_v29 = vpop.f32.mrf.mxu0 }
  0xa8   : > { %2238 = vpow2.f32 %v1164_v27  ;;  %v720_v30 = vadd.f32 %v2909_v1, %v719_v29  ;;  %v489_v27 = vpack.c.bf16 %v417_v25, %v416_v24 }
  0xaa   : > { %v1035_v32 = vsub.f32 0.0, %v720_v30  ;;  %v446_v30 = vpack.c.bf16 %v331_v23, %v330_v21  ;;  %2180 = vmatmul.msk.bf16.gmra.mxu3 %vm510_vm0, %v489_v27  ;;  %v421_v21 = vld [vmem:[%s2840_s9 + $0x398] sm:$0xff] }
  0xac   : > { %v1166_v38 = vmul.f32 1.442695, %v1035_v32 }
  0xad   : > { %v2237_v40 = vpop.eup %2236 }
  0xae   : > { %v2239_v41 = vpop.eup %2238  ;;  %2240 = vpow2.f32 %v1166_v38  ;;  %v2938_v44 = vmul.f32 %v2237_v40, %v2927_v31  ;;  %v2985_v38 = vpop.f32.mrf.mxu3 }
  0xaf   : > { %v722_v45 = vpop.f32.mrf.mxu0  ;;  %v1418_v48 = vadd.f32 1.0, %v2239_v41  ;;  %v2988_v40 = vpop.f32.mrf.mxu1 }
  0xb0   : > { %v723_v46 = vadd.f32 %v2909_v1, %v722_v45  ;;  %v1806_v47 = vpack.c.bf16 %v2938_v44, %v2935_v43  ;;  %v432_v44 = vld [vmem:[%s2840_s9 + $0x3f0] sm:$0xff] }
  0xb1   : > { %2242 = vrcp.f32 %v1418_v48 }
  0xb2   : > { %v1036_v49 = vsub.f32 0.0, %v723_v46  ;;  %2135 = vmatmul.msk.bf16.gmra.mxu0 %vm510_vm0, %v444_v42 }
  0xb4   : > { %v2241_v50 = vpop.eup %2240  ;;  %v1168_v51 = vmul.f32 1.442695, %v1036_v49 }
  0xb5   : > { %v1419_v53 = vadd.f32 1.0, %v2241_v50  ;;  %v332_v50 = vld [vmem:[%s2840_s9 + $0xd0] sm:$0xff] }
  0xb7   : > { %2244 = vrcp.f32 %v1419_v53  ;;  %v724_v54 = vpop.f32.mrf.mxu0  ;;  %v2243_v58 = vpop.eup %2242 }
  0xb8   : > { %2246 = vpow2.f32 %v1168_v51  ;;  %v725_v55 = vadd.f32 %v2909_v1, %v724_v54  ;;  %v2955_v5 = vmul.f32 %v2243_v58, %v2927_v31  ;;  %v2992_v51 = vpop.f32.mrf.mxu3  ;;  %v333_v54 = vld [vmem:[%s2840_s9 + $0xd8] sm:$0xff]  ;;  %v2997_v58 = vpop.f32.mrf.mxu1 }
  0xba   : > { %v1037_v56 = vsub.f32 0.0, %v725_v55  ;;  %v418_v55 = vld [vmem:[%s2840_s9 + $0x380] sm:$0xff] }
  0xbc   : > { %v1170_v62 = vmul.f32 1.442695, %v1037_v56  ;;  %v419_v56 = vld [vmem:[%s2840_s9 + $0x388] sm:$0xff] }
  0xbd   : > { %v2245_v0 = vpop.eup %2244  ;;  %v490_v59 = vpack.c.bf16 %v419_v56, %v418_v55 }
  0xbe   : > { %v2247_v2 = vpop.eup %2246  ;;  %2248 = vpow2.f32 %v1170_v62  ;;  %v2958_v6 = vmul.f32 %v2245_v0, %v2927_v31  ;;  %v447_v62 = vpack.c.bf16 %v333_v54, %v332_v50  ;;  %v337_v50 = vld [vmem:[%s2840_s9 + $0xf8] sm:$0xff]  ;;  %v423_v54 = vld [vmem:[%s2840_s9 + $0x3a8] sm:$0xff] }
  0xbf   : > { %v727_v7 = vpop.f32.mrf.mxu0  ;;  %v1420_v10 = vadd.f32 1.0, %v2247_v2  ;;  %2181 = vmatmul.msk.bf16.gmra.mxu3 %vm510_vm0, %v490_v59 }
  0xc0   : > { %v728_v8 = vadd.f32 %v2909_v1, %v727_v7  ;;  %v1807_v9 = vpack.c.bf16 %v2958_v6, %v2955_v5 }
  0xc1   : > { %2250 = vrcp.f32 %v1420_v10  ;;  %v3011_v10 = vpop.f32.mrf.mxu3 }
  0xc2   : > { %v1038_v12 = vsub.f32 0.0, %v728_v8  ;;  %2136 = vmatmul.msk.bf16.gmra.mxu0 %vm510_vm0, %v445_v3 }
  0xc4   : > { %v2249_v13 = vpop.eup %2248  ;;  %v1172_v14 = vmul.f32 1.442695, %v1038_v12 }
  0xc5   : > { %v1421_v15 = vadd.f32 1.0, %v2249_v13  ;;  %v3013_v13 = vpop.f32.mrf.mxu1 }
  0xc7   : > { %2252 = vrcp.f32 %v1421_v15  ;;  %v729_v16 = vpop.f32.mrf.mxu0  ;;  %v2251_v22 = vpop.eup %2250  ;;  %v334_v15 = vld [vmem:[%s2840_s9 + $0xe0] sm:$0xff] }
  0xc8   : > { %2254 = vpow2.f32 %v1172_v14  ;;  %v730_v17 = vadd.f32 %v2909_v1, %v729_v16  ;;  %v2977_v32 = vmul.f32 %v2251_v22, %v2927_v31 }
  0xc9   : > { %v3025_v27 = vpop.f32.mrf.mxu3 }
  0xca   : > { %v1039_v20 = vsub.f32 0.0, %v730_v17  ;;  %v335_v17 = vld [vmem:[%s2840_s9 + $0xe8] sm:$0xff] }
  0xcb   : > { %v448_v24 = vpack.c.bf16 %v335_v17, %v334_v15  ;;  %v382_v15 = vld [vmem:[%s2840_s9 + $0x260] sm:$0xff] }
  0xcc   : > { %v1174_v26 = vmul.f32 1.442695, %v1039_v20  ;;  %v420_v20 = vld [vmem:[%s2840_s9 + $0x390] sm:$0xff] }
  0xcd   : > { %v2253_v28 = vpop.eup %2252  ;;  %v491_v22 = vpack.c.bf16 %v421_v21, %v420_v20 }
  0xce   : > { %v2255_v29 = vpop.eup %2254  ;;  %2256 = vpow2.f32 %v1174_v26  ;;  %v2980_v33 = vmul.f32 %v2253_v28, %v2927_v31 }
  0xcf   : > { %v732_v34 = vpop.f32.mrf.mxu0  ;;  %v1422_v37 = vadd.f32 1.0, %v2255_v29  ;;  %2182 = vmatmul.msk.bf16.gmra.mxu3 %vm510_vm0, %v491_v22 }
  0xd0   : > { %v733_v35 = vadd.f32 %v2909_v1, %v732_v34  ;;  %v1808_v36 = vpack.c.bf16 %v2980_v33, %v2977_v32  ;;  %v370_v34 = vld [vmem:[%s2840_s9 + $0x200] sm:$0xff] }
  0xd1   : > { %2258 = vrcp.f32 %v1422_v37  ;;  %v430_v32 = vld [vmem:[%s2840_s9 + $0x3e0] sm:$0xff] }
  0xd2   : > { %v1040_v39 = vsub.f32 0.0, %v733_v35  ;;  %2137 = vmatmul.msk.bf16.gmra.mxu0 %vm510_vm0, %v446_v30  ;;  %v3030_v30 = vpop.f32.mrf.mxu1  ;;  %v371_v35 = vld [vmem:[%s2840_s9 + $0x208] sm:$0xff] }
  0xd3   : > { %v466_v37 = vpack.c.bf16 %v371_v35, %v370_v34 }
  0xd4   : > { %v2257_v41 = vpop.eup %2256  ;;  %v1176_v42 = vmul.f32 1.442695, %v1040_v39  ;;  %v380_v39 = vld [vmem:[%s2840_s9 + $0x250] sm:$0xff] }
  0xd5   : > { %v1423_v45 = vadd.f32 1.0, %v2257_v41  ;;  %v381_v41 = vld [vmem:[%s2840_s9 + $0x258] sm:$0xff]  ;;  %2157 = vmatmul.msk.bf16.gmra.mxu1 %vm510_vm0, %v466_v37 }
  0xd7   : > { %2260 = vrcp.f32 %v1423_v45  ;;  %v734_v46 = vpop.f32.mrf.mxu0  ;;  %v2259_v53 = vpop.eup %2258 }
  0xd8   : > { %2262 = vpow2.f32 %v1176_v42  ;;  %v735_v48 = vadd.f32 %v2909_v1, %v734_v46  ;;  %v3000_v63 = vmul.f32 %v2259_v53, %v2927_v31  ;;  %v471_v42 = vpack.c.bf16 %v381_v41, %v380_v39  ;;  %v3039_v46 = vpop.f32.mrf.mxu3  ;;  %v422_v53 = vld [vmem:[%s2840_s9 + $0x3a0] sm:$0xff] }
  0xd9   : > { %v492_v55 = vpack.c.bf16 %v423_v54, %v422_v53 }
  0xda   : > { %v1041_v49 = vsub.f32 0.0, %v735_v48  ;;  %2162 = vmatmul.msk.bf16.vlgmr.msra.gmra.mxu2 %vm510_vm0, %v471_v42  ;;  %v336_v48 = vld [vmem:[%s2840_s9 + $0xf0] sm:$0xff]  ;;  %v338_v42 = vld [vmem:[%s2840_s9 + $0x100] sm:$0xff] }
  0xdb   : > { %v449_v56 = vpack.c.bf16 %v337_v50, %v336_v48  ;;  %v424_v48 = vld [vmem:[%s2840_s9 + $0x3b0] sm:$0xff]  ;;  %v425_v50 = vld [vmem:[%s2840_s9 + $0x3b8] sm:$0xff] }
  0xdc   : > { %v1178_v57 = vmul.f32 1.442695, %v1041_v49  ;;  %v3042_v49 = vpop.f32.mrf.mxu1 }
  0xdd   : > { %v2261_v60 = vpop.eup %2260 }
  0xde   : > { %v2263_v61 = vpop.eup %2262  ;;  %2264 = vpow2.f32 %v1178_v57  ;;  %v3003_v0 = vmul.f32 %v2261_v60, %v2927_v31  ;;  %v372_v60 = vld [vmem:[%s2840_s9 + $0x210] sm:$0xff] }
  0xdf   : > { %v3006_v2 = vpop.f32.mrf.mxu0  ;;  %v1424_v7 = vadd.f32 1.0, %v2263_v61  ;;  %2183 = vmatmul.msk.bf16.gmra.mxu3 %vm510_vm0, %v492_v55  ;;  %v373_v61 = vld [vmem:[%s2840_s9 + $0x218] sm:$0xff] }
  0xe0   : > { %v1809_v3 = vpack.c.bf16 %v3003_v0, %v3000_v63 }
  0xe1   : > { %2266 = vrcp.f32 %v1424_v7  ;;  %v467_v7 = vpack.c.bf16 %v373_v61, %v372_v60 }
  0xe2   : > { %2138 = vmatmul.msk.bf16.gmra.mxu0 %vm510_vm0, %v447_v62 }
  0xe4   : > { %v2265_v8 = vpop.eup %2264  ;;  %v3059_v22 = vpop.f32.mrf.mxu1 }
  0xe5   : > { %v1425_v12 = vadd.f32 1.0, %v2265_v8  ;;  %2158 = vmatmul.msk.bf16.gmra.mxu1 %vm510_vm0, %v467_v7  ;;  %v374_v7 = vld [vmem:[%s2840_s9 + $0x220] sm:$0xff] }
  0xe7   : > { %2268 = vrcp.f32 %v1425_v12  ;;  %v739_v14 = vpop.f32.mrf.mxu0  ;;  %v2267_v16 = vpop.eup %2266 }
  0xe8   : > { %v3020_v25 = vmul.f32 %v2267_v16, %v2927_v31  ;;  %v3053_v12 = vpop.f32.mrf.mxu3  ;;  %v383_v16 = vld [vmem:[%s2840_s9 + $0x268] sm:$0xff]  ;;  %v740_v39 = vadd.f32 %v2909_v1, %v739_v14 }
  0xe9   : > { %v472_v17 = vpack.c.bf16 %v383_v16, %v382_v15 }
  0xeb   : > { %2163 = vmatmul.msk.bf16.gmra.mxu2 %vm510_vm0, %v472_v17 }
  0xec   : > { %v3072_v60 = vpop.f32.mrf.mxu1 }
  0xed   : > { %v2269_v23 = vpop.eup %2268 }
  0xee   : > { %v3023_v26 = vmul.f32 %v2269_v23, %v2927_v31 }
  0xef   : > { %v742_v28 = vpop.f32.mrf.mxu0 }
  0xf0   : > { %v1810_v29 = vpack.c.bf16 %v3023_v26, %v3020_v25  ;;  %v743_v20 = vadd.f32 %v2909_v1, %v742_v28  ;;  %v738_v28 = vadd.f32 %v2909_v1, %v3006_v2  ;;  %v3070_v55 = vpop.f32.mrf.mxu3  ;;  %v429_v25 = vld [vmem:[%s2840_s9 + $0x3d8] sm:$0xff] }
  0xf2   : > { %2139 = vmatmul.msk.bf16.gmra.mxu0 %vm510_vm0, %v448_v24  ;;  %v1044_v34 = vsub.f32 0.0, %v743_v20  ;;  %v1042_v2 = vsub.f32 0.0, %v738_v28 }
  0xf4   : > { %v1184_v53 = vmul.f32 1.442695, %v1044_v34 }
  0xf7   : > { %v744_v45 = vpop.f32.mrf.mxu0 }
  0xf8   : > { %v745_v62 = vadd.f32 %v2909_v1, %v744_v45  ;;  %v339_v45 = vld [vmem:[%s2840_s9 + $0x108] sm:$0xff] }
  0xf9   : > { %v450_v14 = vpack.c.bf16 %v339_v45, %v338_v42  ;;  %v3083_v45 = vpop.f32.mrf.mxu3 }
  0xfa   : > { %v1045_v23 = vsub.f32 0.0, %v745_v62 }
  0xfc   : > { %v1186_v37 = vmul.f32 1.442695, %v1045_v23  ;;  %v385_v23 = vld [vmem:[%s2840_s9 + $0x278] sm:$0xff] }
  0xff   : > { %v747_v57 = vpop.f32.mrf.mxu0 }
 0x100   : > { %v748_v59 = vadd.f32 %v2909_v1, %v747_v57 }
 0x102   : > { %v1046_v8 = vsub.f32 0.0, %v748_v59  ;;  %2140 = vmatmul.msk.bf16.gmra.mxu0 %vm510_vm0, %v449_v56  ;;  %v493_v56 = vpack.c.bf16 %v425_v50, %v424_v48  ;;  %v1043_v59 = vsub.f32 0.0, %v740_v39 }
 0x104   : > { %v1188_v21 = vmul.f32 1.442695, %v1046_v8  ;;  %2184 = vmatmul.msk.bf16.gmra.mxu3 %vm510_vm0, %v493_v56  ;;  %v375_v8 = vld [vmem:[%s2840_s9 + $0x228] sm:$0xff]  ;;  %v1182_v17 = vmul.f32 1.442695, %v1043_v59  ;;  %v340_v59 = vld [vmem:[%s2840_s9 + $0x110] sm:$0xff] }
 0x105   : > { %v468_v16 = vpack.c.bf16 %v375_v8, %v374_v7 }
 0x106   : > { %2270 = vpow2.f32 %v1188_v21  ;;  %v384_v21 = vld [vmem:[%s2840_s9 + $0x270] sm:$0xff] }
 0x107   : > { %v749_v24 = vpop.f32.mrf.mxu0  ;;  %2272 = vpow2.f32 %v1186_v37  ;;  %2159 = vmatmul.msk.bf16.gmra.mxu1 %vm510_vm0, %v468_v16  ;;  %v473_v34 = vpack.c.bf16 %v385_v23, %v384_v21  ;;  %v1180_v37 = vmul.f32 1.442695, %v1042_v2  ;;  %v943_v23 = vadd.f32 %v2909_v1, %v2963_v11 }
 0x108   : > { %v750_v35 = vadd.f32 %v2909_v1, %v749_v24 }
 0x109   : > { %2164 = vmatmul.msk.bf16.gmra.mxu2 %vm510_vm0, %v473_v34 }
 0x10a   : > { %v1047_v41 = vsub.f32 0.0, %v750_v35 }
 0x10c   : > { %v1190_v54 = vmul.f32 1.442695, %v1047_v41  ;;  %v2271_v57 = vpop.eup %2270 }
 0x10d   : > { %v1430_v15 = vadd.f32 1.0, %v2271_v57  ;;  %v2273_v24 = vpop.eup %2272 }
 0x10e   : > { %2274 = vpow2.f32 %v1190_v54  ;;  %v1429_v48 = vadd.f32 1.0, %v2273_v24 }
 0x10f   : > { %v752_v61 = vpop.f32.mrf.mxu0  ;;  %2276 = vpow2.f32 %v1184_v53  ;;  %v3086_v53 = vpop.f32.mrf.mxu1 }
 0x110   : > { %v753_v62 = vadd.f32 %v2909_v1, %v752_v61  ;;  %2278 = vrcp.f32 %v1430_v15 }
 0x111   : > { %2280 = vpow2.f32 %v1182_v17 }
 0x112   : > { %v1048_v20 = vsub.f32 0.0, %v753_v62  ;;  %2141 = vmatmul.msk.bf16.gmra.mxu0 %vm510_vm0, %v450_v14  ;;  %v341_v14 = vld [vmem:[%s2840_s9 + $0x118] sm:$0xff] }
 0x113   : > { %v451_v8 = vpack.c.bf16 %v341_v14, %v340_v59 }
 0x114   : > { %v2275_v35 = vpop.eup %2274  ;;  %v1192_v41 = vmul.f32 1.442695, %v1048_v20 }
 0x115   : > { %v1431_v39 = vadd.f32 1.0, %v2275_v35  ;;  %v2277_v42 = vpop.eup %2276  ;;  %v3095_v35 = vpop.f32.mrf.mxu3 }
 0x116   : > { %v1428_v54 = vadd.f32 1.0, %v2277_v42  ;;  %v2279_v57 = vpop.eup %2278 }
 0x117   : > { %2282 = vrcp.f32 %v1431_v39  ;;  %v754_v50 = vpop.f32.mrf.mxu0  ;;  %v2281_v61 = vpop.eup %2280  ;;  %v1690_v15 = vmul.f32 %v2279_v57, %v2927_v31 }
 0x118   : > { %2284 = vpow2.f32 %v1180_v37  ;;  %v755_v28 = vadd.f32 %v2909_v1, %v754_v50  ;;  %v1427_v20 = vadd.f32 1.0, %v2281_v61 }
 0x119   : > { %2286 = vpow2.f32 %v1192_v41  ;;  %v945_v41 = vadd.f32 %v2909_v1, %v2969_v19 }
 0x11a   : > { %v1049_v56 = vsub.f32 0.0, %v755_v28  ;;  %2288 = vrcp.f32 %v1429_v48  ;;  %v3100_v48 = vpop.f32.mrf.mxu1  ;;  %v1124_v28 = vsub.f32 0.0, %v943_v23  ;;  %v343_v23 = vld [vmem:[%s2840_s9 + $0x128] sm:$0xff] }
 0x11b   : > { %2290 = vrcp.f32 %v1428_v54  ;;  %v1125_v59 = vsub.f32 0.0, %v945_v41  ;;  %v426_v41 = vld [vmem:[%s2840_s9 + $0x3c0] sm:$0xff] }
 0x11c   : > { %v1194_v2 = vmul.f32 1.442695, %v1049_v56  ;;  %v1344_v61 = vmul.f32 1.442695, %v1124_v28 }
 0x11d   : > { %v2283_v62 = vpop.eup %2282 }
 0x11e   : > { %v2285_v7 = vpop.eup %2284  ;;  %2292 = vpow2.f32 %v1194_v2  ;;  %v1691_v16 = vmul.f32 %v2283_v62, %v2927_v31 }
 0x11f   : > { %v2287_v17 = vpop.eup %2286  ;;  %v757_v21 = vpop.f32.mrf.mxu0  ;;  %v1426_v39 = vadd.f32 1.0, %v2285_v7  ;;  %2294 = vrcp.f32 %v1427_v20 }
 0x120   : > { %v758_v24 = vadd.f32 %v2909_v1, %v757_v21  ;;  %v1813_v34 = vpack.c.bf16 %v1691_v16, %v1690_v15  ;;  %v2289_v37 = vpop.eup %2288  ;;  %v1432_v42 = vadd.f32 1.0, %v2287_v17  ;;  %v1346_v15 = vmul.f32 1.442695, %v1125_v59  ;;  %v3105_v17 = vpop.f32.mrf.mxu3  ;;  %v342_v21 = vld [vmem:[%s2840_s9 + $0x120] sm:$0xff] }
 0x121   : > { %v2291_v50 = vpop.eup %2290  ;;  %v1689_v56 = vmul.f32 %v2289_v37, %v2927_v31  ;;  %2296 = vrcp.f32 %v1426_v39  ;;  %v452_v28 = vpack.c.bf16 %v343_v23, %v342_v21  ;;  %v377_v21 = vld [vmem:[%s2840_s9 + $0x238] sm:$0xff] }
 0x122   : > { %2142 = vmatmul.msk.bf16.gmra.mxu0 %vm510_vm0, %v451_v8  ;;  %1888 = vmatpush.bf16.xpose.msrb.mxu1 %v1813_v34  ;;  %v1050_v54 = vsub.f32 0.0, %v758_v24  ;;  %2298 = vrcp.f32 %v1432_v42  ;;  %v1688_v19 = vmul.f32 %v2291_v50, %v2927_v31  ;;  %v3110_v39 = vpop.f32.mrf.mxu1  ;;  %v427_v50 = vld [vmem:[%s2840_s9 + $0x3c8] sm:$0xff] }
 0x124   : > { %v2293_v11 = vpop.eup %2292  ;;  %v1196_v2 = vmul.f32 1.442695, %v1050_v54  ;;  %v1812_v7 = vpack.c.bf16 %v1689_v56, %v1688_v19  ;;  %v494_v54 = vpack.c.bf16 %v427_v50, %v426_v41 }
 0x125   : > { %v1433_v57 = vadd.f32 1.0, %v2293_v11  ;;  %v2295_v8 = vpop.eup %2294 }
 0x126   : > { %v1687_v37 = vmul.f32 %v2295_v8, %v2927_v31  ;;  %2185 = vmatmul.msk.bf16.gmra.mxu3 %vm510_vm0, %v494_v54 }
 0x127   : > { %2300 = vrcp.f32 %v1433_v57  ;;  %v759_v14 = vpop.f32.mrf.mxu0  ;;  %v2297_v20 = vpop.eup %2296 }
 0x128   : > { %v760_v62 = vadd.f32 %v2909_v1, %v759_v14  ;;  %2302 = vpow2.f32 %v1344_v61  ;;  %v2299_v24 = vpop.eup %2298  ;;  %v1686_v11 = vmul.f32 %v2297_v20, %v2927_v31  ;;  %v948_v14 = vadd.f32 %v2909_v1, %v2985_v38  ;;  %v3130_v20 = vpop.f32.mrf.mxu3  ;;  %v376_v38 = vld [vmem:[%s2840_s9 + $0x230] sm:$0xff] }
 0x129   : > { %2304 = vpow2.f32 %v1196_v2  ;;  %v3123_v61 = vmul.f32 %v2299_v24, %v2927_v31 }
 0x12a   : > { %v1051_v16 = vsub.f32 0.0, %v760_v62  ;;  %1889 = vmatpush.bf16.xpose.msrb.mxu1 %v1812_v7  ;;  %2306 = vpow2.f32 %v1346_v15  ;;  %v1811_v19 = vpack.c.bf16 %v1687_v37, %v1686_v11  ;;  %v950_v62 = vadd.f32 %v2909_v1, %v2992_v51  ;;  %v864_v50 = vpop.f32.mrf.mxu1 }
 0x12b   : > { %v469_v11 = vpack.c.bf16 %v377_v21, %v376_v38  ;;  %v428_v21 = vld [vmem:[%s2840_s9 + $0x3d0] sm:$0xff] }
 0x12c   : > { %v1198_v34 = vmul.f32 1.442695, %v1051_v16 }
 0x12d   : > { %v2301_v42 = vpop.eup %2300  ;;  %2160 = vmatmul.msk.bf16.gmra.mxu1 %vm510_vm0, %v469_v11 }
 0x12e   : > { %2308 = vpow2.f32 %v1198_v34  ;;  %v3116_v57 = vmul.f32 %v2301_v42, %v2927_v31  ;;  %v2303_v2 = vpop.eup %2302  ;;  %v1126_v34 = vsub.f32 0.0, %v948_v14  ;;  %v1127_v42 = vsub.f32 0.0, %v950_v62  ;;  %v344_v62 = vld [vmem:[%s2840_s9 + $0x130] sm:$0xff] }
 0x12f   : > { %v762_v56 = vpop.f32.mrf.mxu0  ;;  %v2305_v7 = vpop.eup %2304  ;;  %v1508_v51 = vadd.f32 1.0, %v2303_v2  ;;  %v953_v2 = vadd.f32 %v2909_v1, %v3011_v10  ;;  %v495_v10 = vpack.c.bf16 %v429_v25, %v428_v21 }
 0x130   : > { %v763_v59 = vadd.f32 %v2909_v1, %v762_v56  ;;  %v2307_v16 = vpop.eup %2306  ;;  %v1434_v37 = vadd.f32 1.0, %v2305_v7  ;;  %v345_v7 = vld [vmem:[%s2840_s9 + $0x138] sm:$0xff] }
 0x131   : > { %v1509_v54 = vadd.f32 1.0, %v2307_v16 }
 0x132   : > { %v1052_v8 = vsub.f32 0.0, %v763_v59  ;;  %2143 = vmatmul.msk.bf16.gmra.mxu0 %vm510_vm0, %v452_v28  ;;  %1890 = vmatpush.bf16.xpose.msrb.mxu1 %v1811_v19  ;;  %v1348_v59 = vmul.f32 1.442695, %v1126_v34  ;;  %v1350_v19 = vmul.f32 1.442695, %v1127_v42  ;;  %v1128_v34 = vsub.f32 0.0, %v953_v2 }
 0x133   : > { %v955_v42 = vadd.f32 %v2909_v1, %v3025_v27  ;;  %v379_v2 = vld [vmem:[%s2840_s9 + $0x248] sm:$0xff] }
 0x134   : > { %v2309_v23 = vpop.eup %2308  ;;  %v1200_v24 = vmul.f32 1.442695, %v1052_v8  ;;  %v3143_v8 = vpop.f32.mrf.mxu3 }
 0x135   : > { %v1435_v41 = vadd.f32 1.0, %v2309_v23 }
 0x136   : > { %2310 = vpow2.f32 %v1200_v24  ;;  %v453_v24 = vpack.c.bf16 %v345_v7, %v344_v62  ;;  %2186 = vmatmul.msk.bf16.gmra.mxu3 %vm510_vm0, %v495_v10  ;;  %v863_v7 = vadd.f32 %v2909_v1, %v3110_v39 }
 0x137   : > { %v764_v28 = vpop.f32.mrf.mxu0  ;;  %2312 = vrcp.f32 %v1435_v41 }
 0x138   : > { %v765_v56 = vadd.f32 %v2909_v1, %v764_v28  ;;  %2314 = vrcp.f32 %v1434_v37 }
 0x139   : > { %2316 = vrcp.f32 %v1508_v51  ;;  %v867_v51 = vpop.f32.mrf.mxu1 }
 0x13a   : > { %v1053_v14 = vsub.f32 0.0, %v765_v56  ;;  %1891 = vmatpush.bf16.xpose.msrb.mxu1 %v1810_v29  ;;  %2318 = vrcp.f32 %v1509_v54 }
 0x13b   : > { %2320 = vpow2.f32 %v1348_v59 }
 0x13c   : > { %v1202_v16 = vmul.f32 1.442695, %v1053_v14  ;;  %v2311_v38 = vpop.eup %2310  ;;  %2322 = vpow2.f32 %v1350_v19  ;;  %v1352_v19 = vmul.f32 1.442695, %v1128_v34  ;;  %v378_v14 = vld [vmem:[%s2840_s9 + $0x240] sm:$0xff] }
 0x13d   : > { %v2313_v23 = vpop.eup %2312  ;;  %v1436_v28 = vadd.f32 1.0, %v2311_v38  ;;  %v3166_v38 = vpop.f32.mrf.mxu3  ;;  %v470_v25 = vpack.c.bf16 %v379_v2, %v378_v14  ;;  %v347_v14 = vld [vmem:[%s2840_s9 + $0x148] sm:$0xff] }
 0x13e   : > { %2324 = vpow2.f32 %v1202_v16  ;;  %v2315_v26 = vpop.eup %2314  ;;  %v3152_v54 = vmul.f32 %v2313_v23, %v2927_v31  ;;  %v865_v16 = vadd.f32 %v2909_v1, %v864_v50 }
 0x13f   : > { %v767_v29 = vpop.f32.mrf.mxu0  ;;  %v2317_v37 = vpop.eup %2316  ;;  %v3161_v27 = vmul.f32 %v2315_v26, %v2927_v31  ;;  %2326 = vrcp.f32 %v1436_v28  ;;  %2161 = vmatmul.msk.bf16.gmra.mxu1 %vm510_vm0, %v470_v25  ;;  %v431_v25 = vld [vmem:[%s2840_s9 + $0x3e8] sm:$0xff] }
 0x140   : > { %v768_v41 = vadd.f32 %v2909_v1, %v767_v29  ;;  %v2319_v11 = vpop.eup %2318  ;;  %2328 = vpow2.f32 %v1352_v19  ;;  %v346_v19 = vld [vmem:[%s2840_s9 + $0x140] sm:$0xff] }
 0x141   : > { %v2321_v56 = vpop.eup %2320  ;;  %v3174_v34 = vmul.f32 %v2319_v11, %v2927_v31  ;;  %v1093_v11 = vsub.f32 0.0, %v865_v16 }
 0x142   : > { %v1054_v59 = vsub.f32 0.0, %v768_v41  ;;  %2144 = vmatmul.msk.bf16.gmra.mxu0 %vm510_vm0, %v453_v24  ;;  %1892 = vmatpush.bf16.xpose.msrb.mxu1 %v1809_v3  ;;  %v2323_v62 = vpop.eup %2322  ;;  %v1129_v24 = vsub.f32 0.0, %v955_v42  ;;  %v3171_v3 = vmul.f32 %v2317_v37, %v2927_v31  ;;  %v1510_v39 = vadd.f32 1.0, %v2321_v56  ;;  %v869_v56 = vpop.f32.mrf.mxu1 }
 0x143   : > { %v1511_v26 = vadd.f32 1.0, %v2323_v62  ;;  %v868_v41 = vadd.f32 %v2909_v1, %v867_v51  ;;  %v1092_v42 = vsub.f32 0.0, %v863_v7 }
 0x144   : > { %v2325_v21 = vpop.eup %2324  ;;  %v1204_v23 = vmul.f32 1.442695, %v1054_v59  ;;  %v1354_v37 = vmul.f32 1.442695, %v1129_v24  ;;  %v870_v24 = vadd.f32 %v2909_v1, %v869_v56 }
 0x145   : > { %v1437_v0 = vadd.f32 1.0, %v2325_v21  ;;  %v2327_v59 = vpop.eup %2326  ;;  %v3186_v2 = vpop.f32.mrf.mxu3  ;;  %v1094_v21 = vsub.f32 0.0, %v868_v41  ;;  %v1280_v16 = vmul.f32 1.442695, %v1092_v42  ;;  %v496_v41 = vpack.c.bf16 %v431_v25, %v430_v32 }
 0x146   : > { %v2329_v51 = vpop.eup %2328 }
 0x147   : > { %2330 = vrcp.f32 %v1437_v0  ;;  %v769_v50 = vpop.f32.mrf.mxu0  ;;  %v3192_v0 = vmul.f32 %v2327_v59, %v2927_v31  ;;  %2187 = vmatmul.msk.bf16.gmra.mxu3 %vm510_vm0, %v496_v41 }
 0x148   : > { %2332 = vpow2.f32 %v1204_v23  ;;  %v770_v10 = vadd.f32 %v2909_v1, %v769_v50  ;;  %v1282_v23 = vmul.f32 1.442695, %v1093_v11  ;;  %v963_v11 = vadd.f32 %v2909_v1, %v3070_v55 }
 0x149   : > { %2334 = vrcp.f32 %v1510_v39  ;;  %v1284_v55 = vmul.f32 1.442695, %v1094_v21 }
 0x14a   : > { %v1055_v28 = vsub.f32 0.0, %v770_v10  ;;  %1893 = vmatpush.bf16.xpose.msrb.mxu1 %v1808_v36  ;;  %2336 = vrcp.f32 %v1511_v26  ;;  %v454_v36 = vpack.c.bf16 %v347_v14, %v346_v19  ;;  %v1512_v26 = vadd.f32 1.0, %v2329_v51 }
 0x14b   : > { %2338 = vpow2.f32 %v1354_v37  ;;  %v858_v10 = vadd.f32 %v2909_v1, %v3086_v53  ;;  %v965_v19 = vadd.f32 %v2909_v1, %v3083_v45  ;;  %v1095_v14 = vsub.f32 0.0, %v870_v24 }
 0x14c   : > { %v1206_v62 = vmul.f32 1.442695, %v1055_v28  ;;  %v860_v45 = vadd.f32 %v2909_v1, %v3100_v48 }
 0x14d   : > { %v2331_v7 = vpop.eup %2330  ;;  %v1286_v21 = vmul.f32 1.442695, %v1095_v14 }
 0x14e   : > { %v2333_v33 = vpop.eup %2332  ;;  %2340 = vpow2.f32 %v1206_v62  ;;  %v3195_v39 = vmul.f32 %v2331_v7, %v2927_v31  ;;  %v853_v62 = vadd.f32 %v2909_v1, %v3059_v22  ;;  %v1090_v7 = vsub.f32 0.0, %v858_v10 }
 0x14f   : > { %v772_v50 = vpop.f32.mrf.mxu0  ;;  %v2335_v37 = vpop.eup %2334  ;;  %v1438_v59 = vadd.f32 1.0, %v2333_v33  ;;  %2342 = vpow2.f32 %v1280_v16  ;;  %v1132_v33 = vsub.f32 0.0, %v963_v11 }
 0x150   : > { %v773_v42 = vadd.f32 %v2909_v1, %v772_v50  ;;  %v2337_v56 = vpop.eup %2336  ;;  %2344 = vpow2.f32 %v1282_v23  ;;  %v3215_v16 = vpop.f32.mrf.mxu3  ;;  %v1276_v50 = vmul.f32 1.442695, %v1090_v7 }
 0x151   : > { %v2339_v51 = vpop.eup %2338  ;;  %2346 = vrcp.f32 %v1512_v26  ;;  %v3221_v5 = vmul.f32 %v2337_v56, %v2927_v31  ;;  %v1091_v26 = vsub.f32 0.0, %v860_v45  ;;  %v855_v56 = vadd.f32 %v2909_v1, %v3072_v60  ;;  %v386_v45 = vld [vmem:[%s2840_s9 + $0x280] sm:$0xff] }
 0x152   : > { %v1056_v53 = vsub.f32 0.0, %v773_v42  ;;  %2145 = vmatmul.msk.bf16.gmra.mxu0 %vm510_vm0, %v454_v36  ;;  %1894 = vmatpush.bf16.xpose.msrb.mxu1 %v1807_v9  ;;  %v3218_v36 = vmul.f32 %v2335_v37, %v2927_v31  ;;  %2348 = vrcp.f32 %v1438_v59  ;;  %v1133_v9 = vsub.f32 0.0, %v965_v19 }
 0x153   : > { %v1513_v22 = vadd.f32 1.0, %v2339_v51  ;;  %v1088_v37 = vsub.f32 0.0, %v853_v62  ;;  %v1360_v42 = vmul.f32 1.442695, %v1132_v33  ;;  %v349_v51 = vld [vmem:[%s2840_s9 + $0x158] sm:$0xff]  ;;  %v1089_v33 = vsub.f32 0.0, %v855_v56 }
 0x154   : > { %v2341_v24 = vpop.eup %2340  ;;  %v1208_v32 = vmul.f32 1.442695, %v1056_v53  ;;  %v1362_v59 = vmul.f32 1.442695, %v1133_v9  ;;  %v348_v53 = vld [vmem:[%s2840_s9 + $0x150] sm:$0xff] }
 0x155   : > { %v1439_v6 = vadd.f32 1.0, %v2341_v24  ;;  %v2343_v23 = vpop.eup %2342  ;;  %v1272_v7 = vmul.f32 1.442695, %v1088_v37  ;;  %v387_v24 = vld [vmem:[%s2840_s9 + $0x288] sm:$0xff] }
 0x156   : > { %2350 = vpow2.f32 %v1208_v32  ;;  %v2345_v10 = vpop.eup %2344  ;;  %v474_v43 = vpack.c.bf16 %v387_v24, %v386_v45  ;;  %v3268_v45 = vld [vmem:[%s2835_s30] ss:$0 sm:$0xff] }
 0x157   : > { %2352 = vrcp.f32 %v1439_v6  ;;  %v774_v25 = vpop.f32.mrf.mxu0  ;;  %v2347_v11 = vpop.eup %2346  ;;  %v1476_v6 = vadd.f32 1.0, %v2343_v23 }
 0x158   : > { %v775_v41 = vadd.f32 %v2909_v1, %v774_v25  ;;  %2354 = vpow2.f32 %v1284_v55  ;;  %v2349_v14 = vpop.eup %2348  ;;  %v1278_v55 = vmul.f32 1.442695, %v1091_v26  ;;  %v3233_v62 = vpop.f32.mrf.mxu3  ;;  %2165 = vmatmul.msk.bf16.gmra.mxu2 %vm510_vm0, %v474_v43  ;;  %v3271_v24 = vmul.f32 %v3268_v45, %v2347_v11 }
 0x159   : > { %2356 = vpow2.f32 %v1286_v21  ;;  %v455_v21 = vpack.c.bf16 %v349_v51, %v348_v53 }
 0x15a   : > { %v1057_v19 = vsub.f32 0.0, %v775_v41  ;;  %2358 = vrcp.f32 %v1513_v22  ;;  %1895 = vmatpush.bf16.xpose.msrb.mxu1 %v1806_v47  ;;  %v433_v47 = vld [vmem:[%s2840_s9 + $0x3f8] sm:$0xff]  ;;  %v3247_v41 = vld [vmem:[%s3884_s2] ss:$0 sm:$0xff] }
 0x15b   : > { %2360 = vpow2.f32 %v1276_v50  ;;  %v497_v22 = vpack.c.bf16 %v433_v47, %v432_v44  ;;  %v968_v23 = vadd.f32 %v3247_v41, %v3095_v35 }
 0x15c   : > { %v2351_v1 = vpop.eup %2350  ;;  %v1210_v60 = vmul.f32 1.442695, %v1057_v19  ;;  %2362 = vpow2.f32 %v1360_v42  ;;  %v3253_v42 = vmul.f32 %v2349_v14, %v2927_v31  ;;  %v1477_v19 = vadd.f32 1.0, %v2345_v10 }
 0x15d   : > { %v2353_v32 = vpop.eup %2352  ;;  %2364 = vpow2.f32 %v1362_v59  ;;  %v848_v59 = vadd.f32 %v3247_v41, %v3030_v30  ;;  %2188 = vmatmul.msk.bf16.gmra.mxu3 %vm510_vm0, %v497_v22  ;;  %v850_v14 = vadd.f32 %v3247_v41, %v3042_v49  ;;  %v1274_v30 = vmul.f32 1.442695, %v1089_v33 }
 0x15e   : > { %v2355_v9 = vpop.eup %2354  ;;  %2366 = vpow2.f32 %v1210_v60  ;;  %v3240_v25 = vmul.f32 %v2353_v32, %v2927_v31  ;;  %v833_v31 = vadd.f32 %v3247_v41, %v2944_v52 }
 0x15f   : > { %v2357_v50 = vpop.eup %2356  ;;  %v3242_v26 = vpop.f32.mrf.mxu0  ;;  %2368 = vpow2.f32 %v1278_v55  ;;  %v1478_v37 = vadd.f32 1.0, %v2355_v9  ;;  %v1440_v55 = vadd.f32 1.0, %v2351_v1  ;;  %v1134_v1 = vsub.f32 0.0, %v968_v23 }
 0x160   : > { %v2359_v56 = vpop.eup %2358  ;;  %2370 = vpow2.f32 %v1272_v7  ;;  %v1479_v53 = vadd.f32 1.0, %v2357_v50  ;;  %v1817_v35 = vpack.c.bf16 %v3240_v25, %v3253_v42  ;;  %v3265_v7 = vpop.f32.mrf.mxu3  ;;  %v1086_v43 = vsub.f32 0.0, %v848_v59 }
 0x161   : > { %v2361_v51 = vpop.eup %2360  ;;  %2372 = vrcp.f32 %v1478_v37  ;;  %v3274_v32 = vmul.f32 %v3268_v45, %v2359_v56  ;;  %v1087_v50 = vsub.f32 0.0, %v850_v14  ;;  %v1364_v37 = vmul.f32 1.442695, %v1134_v1 }
 0x162   : > { %v2363_v60 = vpop.eup %2362  ;;  %2146 = vmatmul.msk.bf16.gmra.mxu0 %vm510_vm0, %v455_v21  ;;  %2374 = vrcp.f32 %v1479_v53  ;;  %v1474_v49 = vadd.f32 1.0, %v2361_v51  ;;  %v1080_v21 = vsub.f32 0.0, %v833_v31  ;;  %v843_v59 = vadd.f32 %v3247_v41, %v2997_v58 }
 0x163   : > { %v2365_v10 = vpop.eup %2364  ;;  %2376 = vrcp.f32 %v1476_v6  ;;  %v1516_v47 = vadd.f32 1.0, %v2363_v60  ;;  %v845_v58 = vadd.f32 %v3247_v41, %v3013_v13  ;;  %v1270_v1 = vmul.f32 1.442695, %v1087_v50 }
 0x164   : > { %v2367_v52 = vpop.eup %2366  ;;  %2378 = vrcp.f32 %v1477_v19  ;;  %v1517_v22 = vadd.f32 1.0, %v2365_v10  ;;  %v1256_v14 = vmul.f32 1.442695, %v1080_v21  ;;  %v1084_v21 = vsub.f32 0.0, %v843_v59 }
 0x165   : > { %v2369_v33 = vpop.eup %2368  ;;  %2380 = vrcp.f32 %v1440_v55  ;;  %v1441_v44 = vadd.f32 1.0, %v2367_v52  ;;  %v1268_v55 = vmul.f32 1.442695, %v1086_v43  ;;  %v350_v52 = vld [vmem:[%s2840_s9 + $0x160] sm:$0xff] }
 0x166   : > { %v2371_v9 = vpop.eup %2370  ;;  %2382 = vpow2.f32 %v1274_v30  ;;  %v1475_v19 = vadd.f32 1.0, %v2369_v33  ;;  %v970_v30 = vadd.f32 %v3247_v41, %v3105_v17  ;;  %v389_v17 = vld [vmem:[%s2840_s9 + $0x298] sm:$0xff] }
 0x167   : > { %v2373_v11 = vpop.eup %2372  ;;  %2384 = vrcp.f32 %v1441_v44  ;;  %v3278_v23 = vpop.f32.mrf.mxu0 }
 0x168   : > { %v2375_v56 = vpop.eup %2374  ;;  %2386 = vrcp.f32 %v1474_v49  ;;  %v1738_v53 = vmul.f32 %v3268_v45, %v2373_v11  ;;  %v351_v49 = vld [vmem:[%s2840_s9 + $0x168] sm:$0xff]  ;;  %v3290_v33 = vpop.f32.mrf.mxu3  ;;  %v388_v11 = vld [vmem:[%s2840_s9 + $0x290] sm:$0xff] }
 0x169   : > { %v2377_v51 = vpop.eup %2376  ;;  %2388 = vrcp.f32 %v1516_v47  ;;  %v1739_v60 = vmul.f32 %v3268_v45, %v2375_v56  ;;  %v838_v47 = vadd.f32 %v3247_v41, %v2967_v18 }
 0x16a   : > { %v2379_v31 = vpop.eup %2378  ;;  %2390 = vrcp.f32 %v1517_v22  ;;  %v1135_v22 = vsub.f32 0.0, %v970_v30  ;;  %v1736_v13 = vmul.f32 %v3268_v45, %v2377_v51  ;;  %v1472_v30 = vadd.f32 1.0, %v2371_v9 }
 0x16b   : > { %v2381_v10 = vpop.eup %2380  ;;  %2392 = vpow2.f32 %v1364_v37  ;;  %v1837_v43 = vpack.c.bf16 %v1739_v60, %v1738_v53  ;;  %v1737_v50 = vmul.f32 %v3268_v45, %v2379_v31  ;;  %v475_v37 = vpack.c.bf16 %v389_v17, %v388_v11 }
 0x16c   : > { %v2383_v44 = vpop.eup %2382  ;;  %2394 = vrcp.f32 %v1475_v19  ;;  %v456_v60 = vpack.c.bf16 %v351_v49, %v350_v52  ;;  %v1366_v29 = vmul.f32 1.442695, %v1135_v22  ;;  %v3299_v48 = vmul.f32 %v3268_v45, %v2381_v10 }
 0x16d   : > { %v2385_v56 = vpop.eup %2384  ;;  %2396 = vpow2.f32 %v1268_v55  ;;  %1930 = vmatpush.bf16.xpose.msra.mxu1 %v1837_v43  ;;  %v1085_v19 = vsub.f32 0.0, %v845_v58  ;;  %2166 = vmatmul.msk.bf16.gmra.mxu2 %vm510_vm0, %v475_v37  ;;  %v840_v31 = vadd.f32 %v3247_v41, %v2988_v40  ;;  %v1473_v52 = vadd.f32 1.0, %v2383_v44 }
 0x16e   : > { %v2387_v53 = vpop.eup %2386  ;;  %v3302_v18 = vmul.f32 %v3268_v45, %v2385_v56  ;;  %2398 = vpow2.f32 %v1270_v1  ;;  %v1264_v43 = vmul.f32 1.442695, %v1084_v21  ;;  %v1836_v22 = vpack.c.bf16 %v1737_v50, %v1736_v13 }
 0x16f   : > { %v2389_v59 = vpop.eup %2388  ;;  %v3304_v55 = vpop.f32.mrf.mxu0  ;;  %2400 = vpow2.f32 %v1366_v29  ;;  %v1082_v58 = vsub.f32 0.0, %v838_v47  ;;  %v835_v40 = vadd.f32 %v3247_v41, %v2951_v4  ;;  %v1266_v44 = vmul.f32 1.442695, %v1085_v19  ;;  %v395_v4 = vld [vmem:[%s2840_s9 + $0x2c8] sm:$0xff] }
 0x170   : > { %v2391_v51 = vpop.eup %2390  ;;  %v1818_v10 = vpack.c.bf16 %v3302_v18, %v3299_v48  ;;  %2402 = vpow2.f32 %v1256_v14  ;;  %v3313_v9 = vmul.f32 %v3268_v45, %v2389_v59  ;;  %v1083_v17 = vsub.f32 0.0, %v840_v31  ;;  %v3322_v13 = vpop.f32.mrf.mxu3 }
 0x171   : > { %v2393_v49 = vpop.eup %2392  ;;  %2404 = vrcp.f32 %v1472_v30  ;;  %v3318_v29 = vmul.f32 %v3268_v45, %v2391_v51  ;;  %v1734_v14 = vmul.f32 %v3268_v45, %v2387_v53  ;;  %v1260_v37 = vmul.f32 1.442695, %v1082_v58 }
 0x172   : > { %v2395_v11 = vpop.eup %2394  ;;  %2147 = vmatmul.msk.bf16.gmra.mxu0 %vm510_vm0, %v456_v60  ;;  %2406 = vrcp.f32 %v1473_v52  ;;  %v1518_v21 = vadd.f32 1.0, %v2393_v49  ;;  %v1081_v60 = vsub.f32 0.0, %v835_v40  ;;  %v1262_v52 = vmul.f32 1.442695, %v1083_v17  ;;  %v353_v40 = vld [vmem:[%s2840_s9 + $0x178] sm:$0xff] }
 0x173   : > { %v2397_v1 = vpop.eup %2396  ;;  %2408 = vpow2.f32 %v1264_v43  ;;  %v1735_v47 = vmul.f32 %v3268_v45, %v2395_v11 }
 0x174   : > { %v2399_v56 = vpop.eup %2398  ;;  %2410 = vpow2.f32 %v1266_v44  ;;  %v1470_v59 = vadd.f32 1.0, %v2397_v1  ;;  %v1258_v58 = vmul.f32 1.442695, %v1081_v60  ;;  %v352_v1 = vld [vmem:[%s2840_s9 + $0x170] sm:$0xff]  ;;  %v990_v44 = vadd.f32 %v3247_v41, %v3290_v33 }
 0x175   : > { %1931 = vmatpush.bf16.xpose.msra.mxu1 %v1836_v22  ;;  %v2401_v50 = vpop.eup %2400  ;;  %v1471_v31 = vadd.f32 1.0, %v2399_v56  ;;  %2412 = vrcp.f32 %v1518_v21  ;;  %v1835_v49 = vpack.c.bf16 %v1735_v47, %v1734_v14  ;;  %v988_v22 = vadd.f32 %v3247_v41, %v3265_v7  ;;  %v390_v56 = vld [vmem:[%s2840_s9 + $0x2a0] sm:$0xff] }
 0x176   : > { %v1519_v30 = vadd.f32 1.0, %v2401_v50  ;;  %v2403_v51 = vpop.eup %2402  ;;  %v391_v50 = vld [vmem:[%s2840_s9 + $0x2a8] sm:$0xff]  ;;  %v457_v60 = vpack.c.bf16 %v353_v40, %v352_v1  ;;  %v783_v33 = vadd.f32 %v3247_v41, %v3304_v55 }
 0x177   : > { %v784_v19 = vpop.f32.mrf.mxu0  ;;  %v2405_v53 = vpop.eup %2404  ;;  %v1464_v21 = vadd.f32 1.0, %v2403_v51  ;;  %v476_v6 = vpack.c.bf16 %v391_v50, %v390_v56 }
 0x178   : > { %2414 = vrcp.f32 %v1519_v30  ;;  %v2407_v43 = vpop.eup %2406  ;;  %v1732_v14 = vmul.f32 %v3268_v45, %v2405_v53  ;;  %v3338_v15 = vpop.f32.mrf.mxu3 }
 0x179   : > { %2416 = vpow2.f32 %v1260_v37  ;;  %v2409_v11 = vpop.eup %2408  ;;  %v1733_v47 = vmul.f32 %v3268_v45, %v2407_v43  ;;  %v983_v43 = vadd.f32 %v3247_v41, %v3215_v16  ;;  %v778_v16 = vadd.f32 %v3247_v41, %v3242_v26 }
 0x17a   : > { %2418 = vrcp.f32 %v1470_v59  ;;  %v2411_v17 = vpop.eup %2410  ;;  %v1468_v37 = vadd.f32 1.0, %v2409_v11  ;;  %v1142_v59 = vsub.f32 0.0, %v988_v22  ;;  %v785_v22 = vadd.f32 %v3247_v41, %v784_v19 }
 0x17b   : > { %2420 = vrcp.f32 %v1471_v31  ;;  %v2413_v7 = vpop.eup %2412  ;;  %v1143_v31 = vsub.f32 0.0, %v990_v44  ;;  %v1060_v19 = vsub.f32 0.0, %v783_v33 }
 0x17c   : > { %2422 = vpow2.f32 %v1262_v52  ;;  %v3346_v55 = vmul.f32 %v3268_v45, %v2413_v7  ;;  %v3361_v7 = vld [vmem:[%s3886_s4] sm:$0xff] }
 0x17d   : > { %1932 = vmatpush.bf16.xpose.msra.mxu1 %v1835_v49  ;;  %2424 = vpow2.f32 %v1258_v58  ;;  %v1469_v49 = vadd.f32 1.0, %v2411_v17  ;;  %v1834_v58 = vpack.c.bf16 %v1733_v47, %v1732_v14  ;;  %2167 = vmatmul.msk.bf16.gmra.mxu2 %vm510_vm0, %v476_v6  ;;  %v1382_v50 = vmul.f32 1.442695, %v1143_v31 }
 0x17e   : > { %v2415_v30 = vpop.eup %2414  ;;  %2426 = vrcp.f32 %v1464_v21  ;;  %v1380_v21 = vmul.f32 1.442695, %v1142_v59  ;;  %v1140_v14 = vsub.f32 0.0, %v983_v43  ;;  %v985_v47 = vadd.f32 %v3247_v41, %v3233_v62  ;;  %1896 = vmatmul.bf16.vlgmr.msrb.gmra.mxu1 %v3361_v7 }
 0x17f   : > { %v787_v51 = vpop.f32.mrf.mxu0  ;;  %v2417_v52 = vpop.eup %2416  ;;  %v3349_v1 = vmul.f32 %v3268_v45, %v2415_v30  ;;  %2428 = vrcp.f32 %v1468_v37  ;;  %v1061_v59 = vsub.f32 0.0, %v785_v22  ;;  %v780_v31 = vadd.f32 %v3247_v41, %v3278_v23 }
 0x180   : > { %v788_v53 = vadd.f32 %v3247_v41, %v787_v51  ;;  %v2419_v11 = vpop.eup %2418  ;;  %2430 = vrcp.f32 %v1469_v49  ;;  %v1058_v62 = vsub.f32 0.0, %v778_v16  ;;  %v1216_v49 = vmul.f32 1.442695, %v1060_v19 }
 0x181   : > { %v2421_v40 = vpop.eup %2420  ;;  %v1730_v26 = vmul.f32 %v3268_v45, %v2419_v11  ;;  %2432 = vpow2.f32 %v1380_v21  ;;  %v1376_v11 = vmul.f32 1.442695, %v1140_v14  ;;  %v1141_v22 = vsub.f32 0.0, %v985_v47 }
 0x182   : > { %v1062_v44 = vsub.f32 0.0, %v788_v53  ;;  %2148 = vmatmul.msk.bf16.gmra.mxu0 %vm510_vm0, %v457_v60  ;;  %v2423_v56 = vpop.eup %2422  ;;  %v1466_v60 = vadd.f32 1.0, %v2417_v52  ;;  %v1731_v30 = vmul.f32 %v3268_v45, %v2421_v40  ;;  %2434 = vpow2.f32 %v1382_v50 }
 0x183   : > { %v2425_v37 = vpop.eup %2424  ;;  %v1467_v51 = vadd.f32 1.0, %v2423_v56  ;;  %v1059_v21 = vsub.f32 0.0, %v780_v31  ;;  %v978_v16 = vadd.f32 %v3247_v41, %v3166_v38  ;;  %v1212_v50 = vmul.f32 1.442695, %v1058_v62 }
 0x184   : > { %v1220_v17 = vmul.f32 1.442695, %v1062_v44  ;;  %v3365_v33 = vpop.eup %2426  ;;  %v1833_v40 = vpack.c.bf16 %v1731_v30, %v1730_v26  ;;  %v3371_v44 = vpop.f32.mrf.mxu3  ;;  %v1465_v19 = vadd.f32 1.0, %v2425_v37  ;;  %v980_v47 = vadd.f32 %v3247_v41, %v3186_v2  ;;  %v393_v26 = vld [vmem:[%s2840_s9 + $0x2b8] sm:$0xff] }
 0x185   : > { %1933 = vmatpush.bf16.xpose.msra.mxu1 %v1834_v58  ;;  %v2429_v52 = vpop.eup %2428  ;;  %v1218_v58 = vmul.f32 1.442695, %v1061_v59  ;;  %v392_v59 = vld [vmem:[%s2840_s9 + $0x2b0] sm:$0xff]  ;;  %v1214_v62 = vmul.f32 1.442695, %v1059_v21 }
 0x186   : > { %2436 = vpow2.f32 %v1220_v17  ;;  %v2431_v23 = vpop.eup %2430  ;;  %v477_v38 = vpack.c.bf16 %v393_v26, %v392_v59 }
 0x187   : > { %v789_v53 = vpop.f32.mrf.mxu0  ;;  %2438 = vrcp.f32 %v1466_v60  ;;  %v2433_v17 = vpop.eup %2432  ;;  %v1378_v60 = vmul.f32 1.442695, %v1141_v22  ;;  %v1729_v31 = vmul.f32 %v3268_v45, %v2431_v23 }
 0x188   : > { %v790_v43 = vadd.f32 %v3247_v41, %v789_v53  ;;  %2440 = vrcp.f32 %v1467_v51  ;;  %v2435_v30 = vpop.eup %2434  ;;  %v1728_v51 = vmul.f32 %v3268_v45, %v2429_v52  ;;  %v3381_v53 = vpop.f32.mrf.mxu1 }
 0x189   : > { %2442 = vpow2.f32 %v1216_v49  ;;  %v1138_v49 = vsub.f32 0.0, %v978_v16  ;;  %v3383_v22 = vpop.f32.mrf.mxu2  ;;  %v1527_v52 = vadd.f32 1.0, %v2435_v30 }
 0x18a   : > { %v1063_v56 = vsub.f32 0.0, %v790_v43  ;;  %2444 = vpow2.f32 %v1376_v11  ;;  %v1526_v11 = vadd.f32 1.0, %v2433_v17  ;;  %v1832_v21 = vpack.c.bf16 %v1729_v31, %v1728_v51 }
 0x18b   : > { %2446 = vpow2.f32 %v1218_v58  ;;  %v975_v31 = vadd.f32 %v3247_v41, %v3143_v8 }
 0x18c   : > { %v1222_v14 = vmul.f32 1.442695, %v1063_v56  ;;  %v2437_v37 = vpop.eup %2436  ;;  %v3387_v17 = vpop.f32.mrf.mxu3 }
 0x18d   : > { %1934 = vmatpush.bf16.xpose.msra.mxu1 %v1833_v40  ;;  %v2439_v43 = vpop.eup %2438  ;;  %v1139_v40 = vsub.f32 0.0, %v980_v47  ;;  %v1446_v59 = vadd.f32 1.0, %v2437_v37  ;;  %2168 = vmatmul.msk.bf16.gmra.mxu2 %vm510_vm0, %v477_v38  ;;  %v973_v47 = vadd.f32 %v3247_v41, %v3130_v20 }
 0x18e   : > { %2448 = vpow2.f32 %v1222_v14  ;;  %v2441_v56 = vpop.eup %2440  ;;  %v1372_v14 = vmul.f32 1.442695, %v1138_v49 }
 0x18f   : > { %2450 = vrcp.f32 %v1465_v19  ;;  %v792_v2 = vpop.f32.mrf.mxu0  ;;  %v2443_v23 = vpop.eup %2442  ;;  %v1727_v20 = vmul.f32 %v3268_v45, %v2441_v56 }
 0x190   : > { %v793_v58 = vadd.f32 %v3247_v41, %v792_v2  ;;  %2452 = vpow2.f32 %v1378_v60  ;;  %v2445_v16 = vpop.eup %2444  ;;  %v1374_v60 = vmul.f32 1.442695, %v1139_v40 }
 0x191   : > { %2454 = vpow2.f32 %v1212_v50  ;;  %v2447_v19 = vpop.eup %2446  ;;  %v1444_v50 = vadd.f32 1.0, %v2443_v23  ;;  %v1524_v37 = vadd.f32 1.0, %v2445_v16 }
 0x192   : > { %2456 = vpow2.f32 %v1214_v62  ;;  %v1064_v63 = vsub.f32 0.0, %v793_v58  ;;  %v1445_v49 = vadd.f32 1.0, %v2447_v19 }
 0x193   : > { %2458 = vrcp.f32 %v1526_v11  ;;  %v1726_v11 = vmul.f32 %v3268_v45, %v2439_v43 }
 0x194   : > { %v2449_v26 = vpop.eup %2448  ;;  %2460 = vrcp.f32 %v1527_v52  ;;  %v1224_v40 = vmul.f32 1.442695, %v1064_v63  ;;  %v1136_v52 = vsub.f32 0.0, %v973_v47  ;;  %v3403_v6 = vpop.f32.mrf.mxu3 }
 0x195   : > { %v2451_v30 = vpop.eup %2450  ;;  %2462 = vrcp.f32 %v1446_v59  ;;  %v1447_v51 = vadd.f32 1.0, %v2449_v26  ;;  %1935 = vmatpush.bf16.xpose.msra.mxu1 %v1832_v21  ;;  %v3396_v59 = vpop.f32.mrf.mxu1  ;;  %v1137_v21 = vsub.f32 0.0, %v975_v31  ;;  %v1831_v63 = vpack.c.bf16 %v1727_v20, %v1726_v11 }
 0x196   : > { %v2453_v38 = vpop.eup %2452  ;;  %2464 = vpow2.f32 %v1372_v14  ;;  %v3398_v14 = vpop.f32.mrf.mxu2 }
 0x197   : > { %v2455_v62 = vpop.eup %2454  ;;  %2466 = vrcp.f32 %v1447_v51  ;;  %v794_v2 = vpop.f32.mrf.mxu0  ;;  %v1525_v16 = vadd.f32 1.0, %v2453_v38 }
 0x198   : > { %v2457_v58 = vpop.eup %2456  ;;  %v795_v23 = vadd.f32 %v3247_v41, %v794_v2  ;;  %2468 = vpow2.f32 %v1374_v60  ;;  %v1442_v26 = vadd.f32 1.0, %v2455_v62  ;;  %v1368_v60 = vmul.f32 1.442695, %v1136_v52  ;;  %v394_v2 = vld [vmem:[%s2840_s9 + $0x2c0] sm:$0xff] }
 0x199   : > { %v2459_v8 = vpop.eup %2458  ;;  %2470 = vrcp.f32 %v1444_v50  ;;  %v1370_v50 = vmul.f32 1.442695, %v1137_v21  ;;  %v478_v38 = vpack.c.bf16 %v395_v4, %v394_v2  ;;  %v1725_v21 = vmul.f32 %v3268_v45, %v2451_v30 }
 0x19a   : > { %v2461_v19 = vpop.eup %2460  ;;  %v1065_v43 = vsub.f32 0.0, %v795_v23  ;;  %2472 = vrcp.f32 %v1524_v37  ;;  %v1786_v31 = vmul.f32 %v3268_v45, %v2459_v8  ;;  %v1724_v23 = vmul.f32 %v3268_v45, %v3365_v33 }
 0x19b   : > { %v2463_v56 = vpop.eup %2462  ;;  %2474 = vrcp.f32 %v1445_v49  ;;  %v1787_v11 = vmul.f32 %v3268_v45, %v2461_v19 }
 0x19c   : > { %v2465_v47 = vpop.eup %2464  ;;  %2476 = vpow2.f32 %v1224_v40  ;;  %v1226_v51 = vmul.f32 1.442695, %v1065_v43  ;;  %v1706_v62 = vmul.f32 %v3268_v45, %v2463_v56  ;;  %v1443_v40 = vadd.f32 1.0, %v2457_v58 }
 0x19d   : > { %v2467_v28 = vpop.eup %2466  ;;  %2478 = vrcp.f32 %v1525_v16  ;;  %1936 = vmatpush.bf16.xpose.msra.mxu1 %v1831_v63  ;;  %v1522_v16 = vadd.f32 1.0, %v2465_v47  ;;  %2169 = vmatmul.msk.bf16.gmra.mxu2 %vm510_vm0, %v478_v38  ;;  %v1861_v58 = vpack.c.bf16 %v1787_v11, %v1786_v31  ;;  %v3413_v19 = vpop.f32.mrf.mxu1  ;;  %v1830_v30 = vpack.c.bf16 %v1725_v21, %v1724_v23 }
 0x19e   : > { %v2469_v37 = vpop.eup %2468  ;;  %2480 = vpow2.f32 %v1226_v51  ;;  %v1707_v49 = vmul.f32 %v3268_v45, %v2467_v28  ;;  %v3415_v51 = vpop.f32.mrf.mxu2 }
 0x19f   : > { %v2471_v20 = vpop.eup %2470  ;;  %v797_v52 = vpop.f32.mrf.mxu0  ;;  %2482 = vpow2.f32 %v1368_v60  ;;  %v1523_v56 = vadd.f32 1.0, %v2469_v37 }
 0x1a0   : > { %v2473_v8 = vpop.eup %2472  ;;  %v798_v4 = vadd.f32 %v3247_v41, %v797_v52  ;;  %v1821_v43 = vpack.c.bf16 %v1707_v49, %v1706_v62  ;;  %2484 = vrcp.f32 %v1442_v26 }
 0x1a1   : > { %v2475_v63 = vpop.eup %2474  ;;  %2486 = vpow2.f32 %v1370_v50  ;;  %v1704_v50 = vmul.f32 %v3268_v45, %v2471_v20  ;;  %v1784_v31 = vmul.f32 %v3268_v45, %v2473_v8 }
 0x1a2   : > { %v2477_v28 = vpop.eup %2476  ;;  %1902 = vmatpush.bf16.xpose.msrb.mxu2 %v1821_v43  ;;  %2488 = vrcp.f32 %v1443_v40  ;;  %v1066_v2 = vsub.f32 0.0, %v798_v4  ;;  %v1705_v47 = vmul.f32 %v3268_v45, %v2475_v63  ;;  %v3421_v40 = vpop.f32.mrf.mxu3  ;;  %v958_v43 = vadd.f32 %v3247_v41, %v3039_v46  ;;  %v396_v46 = vld [vmem:[%s2840_s9 + $0x2d0] sm:$0xff] }
 0x1a3   : > { %v2479_v33 = vpop.eup %2478  ;;  %2490 = vrcp.f32 %v1522_v16  ;;  %v1448_v26 = vadd.f32 1.0, %v2477_v28 }
 0x1a4   : > { %v2481_v60 = vpop.eup %2480  ;;  %2492 = vrcp.f32 %v1523_v56  ;;  %v1785_v62 = vmul.f32 %v3268_v45, %v2479_v33  ;;  %v1228_v23 = vmul.f32 1.442695, %v1066_v2  ;;  %v1820_v4 = vpack.c.bf16 %v1705_v47, %v1704_v50  ;;  %v397_v47 = vld [vmem:[%s2840_s9 + $0x2d8] sm:$0xff] }
 0x1a5   : > { %1937 = vmatpush.bf16.xpose.msra.mxu1 %v1830_v30  ;;  %v2483_v38 = vpop.eup %2482  ;;  %v1449_v37 = vadd.f32 1.0, %v2481_v60  ;;  %2494 = vrcp.f32 %v1448_v26  ;;  %v3429_v2 = vpop.f32.mrf.mxu1  ;;  %v1130_v26 = vsub.f32 0.0, %v958_v43 }
 0x1a6   : > { %v2485_v49 = vpop.eup %2484  ;;  %v1520_v20 = vadd.f32 1.0, %v2483_v38  ;;  %v1860_v56 = vpack.c.bf16 %v1785_v62, %v1784_v31  ;;  %v479_v38 = vpack.c.bf16 %v397_v47, %v396_v46 }
 0x1a7   : > { %v799_v11 = vpop.f32.mrf.mxu0  ;;  %v2487_v52 = vpop.eup %2486  ;;  %2496 = vrcp.f32 %v1449_v37  ;;  %v1702_v50 = vmul.f32 %v3268_v45, %v2485_v49 }
 0x1a8   : > { %v800_v21 = vadd.f32 %v3247_v41, %v799_v11  ;;  %v2489_v16 = vpop.eup %2488  ;;  %v1521_v33 = vadd.f32 1.0, %v2487_v52  ;;  %2498 = vpow2.f32 %v1228_v23  ;;  %v3434_v37 = vpop.f32.mrf.mxu2 }
 0x1a9   : > { %v2491_v8 = vpop.eup %2490  ;;  %v1703_v60 = vmul.f32 %v3268_v45, %v2489_v16  ;;  %2500 = vrcp.f32 %v1520_v20  ;;  %v1356_v20 = vmul.f32 1.442695, %v1130_v26 }
 0x1aa   : > { %v1067_v63 = vsub.f32 0.0, %v800_v21  ;;  %1903 = vmatpush.bf16.xpose.msrb.mxu2 %v1820_v4  ;;  %v2493_v28 = vpop.eup %2492  ;;  %v3441_v16 = vpop.f32.mrf.mxu3 }
 0x1ab   : > { %v1783_v31 = vmul.f32 %v3268_v45, %v2493_v28  ;;  %v2495_v62 = vpop.eup %2494  ;;  %v1819_v4 = vpack.c.bf16 %v1703_v60, %v1702_v50 }
 0x1ac   : > { %v1230_v30 = vmul.f32 1.442695, %v1067_v63  ;;  %1938 = vmatmul.bf16.vlgmr.msra.gmra.mxu1 %v3361_v7 }
 0x1ad   : > { %1972 = vmatpush.bf16.xpose.msrb.mxu1 %v1861_v58  ;;  %v960_v58 = vadd.f32 %v3247_v41, %v3053_v12  ;;  %v1782_v12 = vmul.f32 %v3268_v45, %v2491_v8  ;;  %v2497_v23 = vpop.eup %2496  ;;  %2170 = vmatmul.msk.bf16.gmra.mxu2 %vm510_vm0, %v479_v38  ;;  %v3451_v26 = vpop.f32.mrf.mxu1 }
 0x1ae   : > { %2502 = vpow2.f32 %v1230_v30  ;;  %v2499_v43 = vpop.eup %2498  ;;  %v3447_v28 = vmul.f32 %v3268_v45, %v2497_v23 }
 0x1af   : > { %v1131_v11 = vsub.f32 0.0, %v960_v58  ;;  %2504 = vrcp.f32 %v1521_v33  ;;  %v802_v52 = vpop.f32.mrf.mxu0  ;;  %v1859_v49 = vpack.c.bf16 %v1783_v31, %v1782_v12  ;;  %v2501_v63 = vpop.eup %2500  ;;  %v1450_v60 = vadd.f32 1.0, %v2499_v43 }
 0x1b0   : > { %v803_v21 = vadd.f32 %v3247_v41, %v802_v52  ;;  %2506 = vpow2.f32 %v1356_v20  ;;  %v907_v50 = vpop.f32.mrf.mxu2 }
 0x1b1   : > { %v1358_v8 = vmul.f32 1.442695, %v1131_v11 }
 0x1b2   : > { %1904 = vmatpush.bf16.xpose.msrb.mxu2 %v1819_v4  ;;  %v1068_v33 = vsub.f32 0.0, %v803_v21  ;;  %v3459_v23 = vpop.f32.mrf.mxu3 }
 0x1b3   : > { %2508 = vpow2.f32 %v1358_v8 }
 0x1b4   : > { %v2503_v58 = vpop.eup %2502  ;;  %v1232_v12 = vmul.f32 1.442695, %v1068_v33  ;;  %2510 = vrcp.f32 %v1450_v60 }
 0x1b5   : > { %1973 = vmatpush.bf16.xpose.msrb.mxu1 %v1860_v56  ;;  %v3444_v56 = vmul.f32 %v3268_v45, %v2495_v62  ;;  %v2505_v30 = vpop.eup %2504  ;;  %v1451_v47 = vadd.f32 1.0, %v2503_v58  ;;  %v1780_v62 = vmul.f32 %v3268_v45, %v2501_v63  ;;  %v3461_v33 = vpop.f32.mrf.mxu1 }
 0x1b6   : > { %v1781_v11 = vmul.f32 %v3268_v45, %v2505_v30  ;;  %v2507_v21 = vpop.eup %2506  ;;  %v908_v30 = vadd.f32 %v3247_v41, %v907_v50 }
 0x1b7   : > { %v804_v38 = vpop.f32.mrf.mxu0  ;;  %2512 = vrcp.f32 %v1451_v47  ;;  %v1514_v58 = vadd.f32 1.0, %v2507_v21  ;;  %v3889_v21 = vpack.c.bf16 %v3349_v1, %v3346_v55  ;;  %v3890_v1 = vpack.c.bf16 %v3195_v39, %v3192_v0 }
 0x1b8   : > { %v805_v31 = vadd.f32 %v3247_v41, %v804_v38  ;;  %2514 = vpow2.f32 %v1232_v12  ;;  %v1858_v43 = vpack.c.bf16 %v1781_v11, %v1780_v62  ;;  %v909_v60 = vpop.f32.mrf.mxu2  ;;  %v993_v62 = vadd.f32 %v3247_v41, %v3322_v13 }
 0x1b9   : > { %v2509_v20 = vpop.eup %2508  ;;  %v1110_v11 = vsub.f32 0.0, %v908_v30  ;;  %v898_v13 = vadd.f32 %v3247_v41, %v3383_v22  ;;  %v875_v39 = vadd.f32 %v3247_v41, %v3396_v59 }
 0x1ba   : > { %v1069_v52 = vsub.f32 0.0, %v805_v31  ;;  %1905 = vmatpush.bf16.xpose.msrb.mxu2 %v1818_v10  ;;  %v1515_v18 = vadd.f32 1.0, %v2509_v20  ;;  %v910_v31 = vadd.f32 %v3247_v41, %v909_v60  ;;  %v905_v60 = vadd.f32 %v3247_v41, %v3434_v37 }
 0x1bc   : > { %v1234_v4 = vmul.f32 1.442695, %v1069_v52  ;;  %v3477_v52 = vpop.f32.mrf.mxu3 }
 0x1bd   : > { %1974 = vmatpush.bf16.xpose.msrb.mxu1 %v1859_v49  ;;  %v2511_v49 = vpop.eup %2510 }
 0x1be   : > { %2516 = vpow2.f32 %v1234_v4  ;;  %v2513_v8 = vpop.eup %2512  ;;  %v3469_v47 = vmul.f32 %v3268_v45, %v2511_v49  ;;  %v900_v49 = vadd.f32 %v3247_v41, %v3398_v14  ;;  %v873_v14 = vadd.f32 %v3247_v41, %v3381_v53 }
 0x1bf   : > { %v807_v63 = vpop.f32.mrf.mxu0  ;;  %v2515_v48 = vpop.eup %2514  ;;  %v3472_v38 = vmul.f32 %v3268_v45, %v2513_v8  ;;  %2518 = vrcp.f32 %v1514_v58  ;;  %v1144_v8 = vsub.f32 0.0, %v993_v62  ;;  %v1316_v58 = vmul.f32 1.442695, %v1110_v11 }
 0x1c0   : > { %v808_v10 = vadd.f32 %v3247_v41, %v807_v63  ;;  %v1452_v50 = vadd.f32 1.0, %v2515_v48  ;;  %2520 = vrcp.f32 %v1515_v18  ;;  %v1111_v63 = vsub.f32 0.0, %v910_v31 }
 0x1c1   : > { %v1106_v18 = vsub.f32 0.0, %v898_v13  ;;  %v998_v31 = vadd.f32 %v3247_v41, %v3371_v44  ;;  %v1384_v0 = vmul.f32 1.442695, %v1144_v8  ;;  %v3891_v53 = vpack.c.bf16 %v3318_v29, %v3313_v9 }
 0x1c2   : > { %1906 = vmatpush.bf16.xpose.msrb.mxu2 %v1817_v35  ;;  %v995_v35 = vadd.f32 %v3247_v41, %v3338_v15  ;;  %v1070_v4 = vsub.f32 0.0, %v808_v10  ;;  %2522 = vrcp.f32 %v1452_v50  ;;  %v903_v15 = vadd.f32 %v3247_v41, %v3415_v51  ;;  %v3500_v10 = vpop.f32.mrf.mxu1 }
 0x1c3   : > { %v1107_v50 = vsub.f32 0.0, %v900_v49  ;;  %v1318_v62 = vmul.f32 1.442695, %v1111_v63  ;;  %v1146_v63 = vsub.f32 0.0, %v998_v31  ;;  %v1097_v9 = vsub.f32 0.0, %v875_v39 }
 0x1c4   : > { %v2517_v12 = vpop.eup %2516  ;;  %v1145_v22 = vsub.f32 0.0, %v995_v35  ;;  %v1236_v48 = vmul.f32 1.442695, %v1070_v4  ;;  %v1108_v11 = vsub.f32 0.0, %v903_v15  ;;  %v1096_v4 = vsub.f32 0.0, %v873_v14 }
 0x1c5   : > { %1975 = vmatpush.bf16.xpose.msrb.mxu1 %v1858_v43  ;;  %v1453_v42 = vadd.f32 1.0, %v2517_v12  ;;  %v2519_v30 = vpop.eup %2518  ;;  %v1310_v8 = vmul.f32 1.442695, %v1107_v50  ;;  %v1000_v29 = vadd.f32 %v3247_v41, %v3387_v17 }
 0x1c6   : > { %v2521_v51 = vpop.eup %2520  ;;  %v1386_v37 = vmul.f32 1.442695, %v1145_v22  ;;  %v1774_v35 = vmul.f32 %v3268_v45, %v2519_v30  ;;  %v1312_v15 = vmul.f32 1.442695, %v1108_v11  ;;  %v3892_v30 = vpack.c.bf16 %v3152_v54, %v3161_v27 }
 0x1c7   : > { %v809_v43 = vpop.f32.mrf.mxu0  ;;  %2524 = vrcp.f32 %v1453_v42  ;;  %v1109_v42 = vsub.f32 0.0, %v905_v60  ;;  %v1775_v13 = vmul.f32 %v3268_v45, %v2521_v51  ;;  %v1288_v22 = vmul.f32 1.442695, %v1096_v4 }
 0x1c8   : > { %v810_v20 = vadd.f32 %v3247_v41, %v809_v43  ;;  %2526 = vpow2.f32 %v1316_v58  ;;  %v1308_v43 = vmul.f32 1.442695, %v1106_v18  ;;  %v1388_v18 = vmul.f32 1.442695, %v1146_v63 }
 0x1c9   : > { %v1290_v51 = vmul.f32 1.442695, %v1097_v9 }
 0x1ca   : > { %v1071_v55 = vsub.f32 0.0, %v810_v20  ;;  %1907 = vmatpush.bf16.xpose.msrb.mxu2 %v3890_v1  ;;  %v3511_v20 = vpop.f32.mrf.mxu3  ;;  %v3525_v54 = vpop.f32.mrf.mxu1 }
 0x1cc   : > { %v1238_v12 = vmul.f32 1.442695, %v1071_v55  ;;  %v1314_v55 = vmul.f32 1.442695, %v1109_v42 }
 0x1cd   : > { %1976 = vmatpush.bf16.xpose.msrb.mxu1 %v3889_v21  ;;  %v2523_v21 = vpop.eup %2522 }
 0x1ce   : > { %2528 = vpow2.f32 %v1238_v12  ;;  %v2525_v59 = vpop.eup %2524  ;;  %v3520_v60 = vmul.f32 %v3268_v45, %v2523_v21  ;;  %v1147_v12 = vsub.f32 0.0, %v1000_v29 }
 0x1cf   : > { %2530 = vpow2.f32 %v1236_v48  ;;  %v812_v44 = vpop.f32.mrf.mxu0  ;;  %v2527_v1 = vpop.eup %2526  ;;  %v3523_v48 = vmul.f32 %v3268_v45, %v2525_v59 }
 0x1d0   : > { %v813_v49 = vadd.f32 %v3247_v41, %v812_v44  ;;  %2532 = vpow2.f32 %v1318_v62  ;;  %v1855_v41 = vpack.c.bf16 %v1775_v13, %v1774_v35  ;;  %v1390_v35 = vmul.f32 1.442695, %v1147_v12 }
 0x1d1   : > { %2534 = vpow2.f32 %v1384_v0  ;;  %v1494_v59 = vadd.f32 1.0, %v2527_v1 }
 0x1d2   : > { %v1072_v58 = vsub.f32 0.0, %v813_v49  ;;  %1908 = vmatpush.bf16.xpose.msrb.mxu2 %v3892_v30  ;;  %2536 = vpow2.f32 %v1386_v37  ;;  %v3534_v37 = vld [vmem:[%s3884_s2] ss:$0 sm:$0xff]  ;;  %v3537_v21 = vpop.f32.mrf.mxu3  ;;  %v3894_v30 = vpack.c.bf16 %v3274_v32, %v3271_v24 }
 0x1d3   : > { %2538 = vpow2.f32 %v1308_v43  ;;  %v3893_v43 = vpack.c.bf16 %v3116_v57, %v3123_v61  ;;  %v878_v9 = vadd.f32 %v3534_v37, %v3413_v19 }
 0x1d4   : > { %v2529_v14 = vpop.eup %2528  ;;  %2540 = vpow2.f32 %v1310_v8  ;;  %v1240_v50 = vmul.f32 1.442695, %v1072_v58  ;;  %v1003_v58 = vadd.f32 %v3534_v37, %v3403_v6 }
 0x1d5   : > { %1977 = vmatpush.bf16.xpose.msrb.mxu1 %v3891_v53  ;;  %v2531_v17 = vpop.eup %2530  ;;  %2542 = vpow2.f32 %v1312_v15  ;;  %v1455_v62 = vadd.f32 1.0, %v2529_v14  ;;  %v892_v14 = vpop.f32.mrf.mxu1 }
 0x1d6   : > { %v3529_v31 = vpop.eup %2532  ;;  %2544 = vpow2.f32 %v1314_v55  ;;  %v1454_v11 = vadd.f32 1.0, %v2531_v17  ;;  %v880_v17 = vadd.f32 %v3534_v37, %v3429_v2  ;;  %v1148_v12 = vsub.f32 0.0, %v1003_v58 }
 0x1d7   : > { %v2535_v45 = vpop.eup %2534  ;;  %v814_v0 = vpop.f32.mrf.mxu0  ;;  %2546 = vpow2.f32 %v1288_v22 }
 0x1d8   : > { %v2537_v39 = vpop.eup %2536  ;;  %v815_v42 = vadd.f32 %v3534_v37, %v814_v0  ;;  %2548 = vpow2.f32 %v1388_v18  ;;  %v1528_v63 = vadd.f32 1.0, %v2535_v45  ;;  %v883_v0 = vadd.f32 %v3534_v37, %v3451_v26 }
 0x1d9   : > { %v2539_v53 = vpop.eup %2538  ;;  %2550 = vpow2.f32 %v1290_v51  ;;  %v1529_v15 = vadd.f32 1.0, %v2537_v39 }
 0x1da   : > { %v2541_v44 = vpop.eup %2540  ;;  %2552 = vpow2.f32 %v1240_v50  ;;  %v1073_v4 = vsub.f32 0.0, %v815_v42  ;;  %1909 = vmatpush.bf16.xpose.msrb.mxu2 %v3893_v43  ;;  %v1490_v61 = vadd.f32 1.0, %v2539_v53  ;;  %v3560_v2 = vpop.f32.mrf.mxu3  ;;  %v1099_v42 = vsub.f32 0.0, %v880_v17  ;;  %v3563_v53 = vld [vmem:[%s2835_s30] ss:$0 sm:$0xff] }
 0x1db   : > { %v3542_v13 = vpop.eup %2542  ;;  %2554 = vrcp.f32 %v1455_v62  ;;  %v1491_v22 = vadd.f32 1.0, %v2541_v44  ;;  %v1005_v62 = vadd.f32 %v3534_v37, %v3421_v40  ;;  %v885_v40 = vadd.f32 %v3534_v37, %v3461_v33 }
 0x1dc   : > { %v3544_v49 = vpop.eup %2544  ;;  %2556 = vrcp.f32 %v1454_v11  ;;  %v1242_v8 = vmul.f32 1.442695, %v1073_v4  ;;  %v1392_v4 = vmul.f32 1.442695, %v1148_v12  ;;  %v1100_v58 = vsub.f32 0.0, %v883_v0 }
 0x1dd   : > { %1978 = vmatpush.bf16.xpose.msrb.mxu1 %v1855_v41  ;;  %v2547_v29 = vpop.eup %2546  ;;  %2558 = vpow2.f32 %v1390_v35  ;;  %v1098_v41 = vsub.f32 0.0, %v878_v9  ;;  %v1008_v0 = vadd.f32 %v3534_v37, %v3441_v16 }
 0x1de   : > { %v2549_v57 = vpop.eup %2548  ;;  %2560 = vpow2.f32 %v1242_v8  ;;  %v1480_v19 = vadd.f32 1.0, %v2547_v29 }
 0x1df   : > { %v2551_v55 = vpop.eup %2550  ;;  %v817_v1 = vpop.f32.mrf.mxu0  ;;  %2562 = vrcp.f32 %v1494_v59  ;;  %v1530_v51 = vadd.f32 1.0, %v2549_v57  ;;  %v1292_v11 = vmul.f32 1.442695, %v1098_v41  ;;  %v888_v59 = vadd.f32 %v3534_v37, %v3500_v10 }
 0x1e0   : > { %v2553_v18 = vpop.eup %2552  ;;  %2564 = vrcp.f32 %v1528_v63  ;;  %v1481_v32 = vadd.f32 1.0, %v2551_v55  ;;  %v818_v33 = vadd.f32 %v3534_v37, %v817_v1  ;;  %v1492_v10 = vadd.f32 1.0, %v3542_v13 }
 0x1e1   : > { %v2555_v6 = vpop.eup %2554  ;;  %2566 = vrcp.f32 %v1529_v15  ;;  %1910 = vmatmul.bf16.vlgmr.msrb.gmra.mxu2 %v3361_v7  ;;  %v1456_v45 = vadd.f32 1.0, %v2553_v18  ;;  %v1149_v15 = vsub.f32 0.0, %v1005_v62  ;;  %v1101_v55 = vsub.f32 0.0, %v885_v40 }
 0x1e2   : > { %v2557_v24 = vpop.eup %2556  ;;  %2568 = vrcp.f32 %v1490_v61  ;;  %v3566_v35 = vmul.f32 %v3563_v53, %v2555_v6  ;;  %v1102_v41 = vsub.f32 0.0, %v888_v59  ;;  %v1296_v6 = vmul.f32 1.442695, %v1100_v58  ;;  %v3592_v62 = vpop.f32.mrf.mxu3 }
 0x1e3   : > { %v2559_v50 = vpop.eup %2558  ;;  %2570 = vrcp.f32 %v1491_v22  ;;  %v3576_v63 = vmul.f32 %v3563_v53, %v2557_v24  ;;  %v894_v22 = vpop.f32.mrf.mxu1  ;;  %v1394_v1 = vmul.f32 1.442695, %v1149_v15  ;;  %v1074_v24 = vsub.f32 0.0, %v818_v33 }
 0x1e4   : > { %v2561_v39 = vpop.eup %2560  ;;  %2572 = vrcp.f32 %v1480_v19  ;;  %v1531_v29 = vadd.f32 1.0, %v2559_v50  ;;  %v1493_v19 = vadd.f32 1.0, %v3544_v49  ;;  %v1495_v40 = vadd.f32 1.0, %v3529_v31 }
 0x1e5   : > { %1979 = vmatpush.bf16.xpose.msrb.mxu1 %v3894_v30  ;;  %v3568_v44 = vpop.eup %2562  ;;  %2574 = vrcp.f32 %v1530_v51  ;;  %v1457_v43 = vadd.f32 1.0, %v2561_v39  ;;  %v1825_v61 = vpack.c.bf16 %v3566_v35, %v3576_v63  ;;  %v893_v51 = vadd.f32 %v3534_v37, %v892_v14 }
 0x1e6   : > { %v2565_v26 = vpop.eup %2564  ;;  %2576 = vrcp.f32 %v1481_v32  ;;  %v895_v32 = vadd.f32 %v3534_v37, %v894_v22  ;;  %v1300_v39 = vmul.f32 1.442695, %v1102_v41  ;;  %v1244_v59 = vmul.f32 1.442695, %v1074_v24 }
 0x1e7   : > { %v2567_v8 = vpop.eup %2566  ;;  %2578 = vrcp.f32 %v1456_v45  ;;  %v819_v9 = vpop.f32.mrf.mxu0  ;;  %v3590_v13 = vmul.f32 %v3563_v53, %v2565_v26  ;;  %v1298_v45 = vmul.f32 1.442695, %v1101_v55  ;;  %v1104_v26 = vsub.f32 0.0, %v893_v51 }
 0x1e8   : > { %v3578_v57 = vpop.eup %2568  ;;  %2580 = vpow2.f32 %v1292_v11  ;;  %v3597_v14 = vmul.f32 %v3563_v53, %v2567_v8  ;;  %v820_v8 = vadd.f32 %v3534_v37, %v819_v9  ;;  %v890_v33 = vadd.f32 %v3534_v37, %v3525_v54 }
 0x1e9   : > { %v3583_v30 = vpop.eup %2570  ;;  %2582 = vpow2.f32 %v1392_v4  ;;  %v1010_v4 = vadd.f32 %v3534_v37, %v3459_v23  ;;  %v1304_v54 = vmul.f32 1.442695, %v1104_v26  ;;  %v1754_v16 = vmul.f32 %v3563_v53, %v3568_v44 }
 0x1ea   : > { %v2573_v18 = vpop.eup %2572  ;;  %2584 = vrcp.f32 %v1457_v43 }
 0x1eb   : > { %v2575_v17 = vpop.eup %2574  ;;  %2586 = vrcp.f32 %v1531_v29  ;;  %v1105_v29 = vsub.f32 0.0, %v895_v32  ;;  %v1151_v22 = vsub.f32 0.0, %v1010_v4  ;;  %v3616_v41 = vmul.f32 %v3563_v53, %v2573_v18 }
 0x1ec   : > { %1980 = vmatmul.bf16.vlgmr.msrb.gmra.mxu1 %v3361_v7  ;;  %v1294_v7 = vmul.f32 1.442695, %v1099_v42  ;;  %v2577_v12 = vpop.eup %2576 }
 0x1ed   : > { %v2579_v50 = vpop.eup %2578  ;;  %v3619_v9 = vmul.f32 %v3563_v53, %v2577_v12  ;;  %v1398_v4 = vmul.f32 1.442695, %v1151_v22 }
 0x1ee   : > { %2588 = vpow2.f32 %v1294_v7  ;;  %v2581_v49 = vpop.eup %2580  ;;  %v3610_v31 = vmul.f32 %v3563_v53, %v2579_v50  ;;  %v912_v50 = vpop.f32.mrf.mxu2 }
 0x1ef   : > { %2590 = vrcp.f32 %v1492_v10  ;;  %v2583_v11 = vpop.eup %2582  ;;  %v3599_v42 = vpop.f32.mrf.mxu0  ;;  %v1482_v58 = vadd.f32 1.0, %v2581_v49  ;;  %v1150_v10 = vsub.f32 0.0, %v1008_v0  ;;  %v1838_v12 = vpack.c.bf16 %v3619_v9, %v3616_v41 }
 0x1f0   : > { %2592 = vrcp.f32 %v1493_v19  ;;  %v2585_v43 = vpop.eup %2584  ;;  %v1532_v23 = vadd.f32 1.0, %v2583_v11 }
 0x1f1   : > { %2594 = vpow2.f32 %v1394_v1  ;;  %v2587_v15 = vpop.eup %2586  ;;  %v3613_v19 = vmul.f32 %v3563_v53, %v2585_v43  ;;  %v1396_v49 = vmul.f32 1.442695, %v1150_v10 }
 0x1f2   : > { %2596 = vpow2.f32 %v1296_v6  ;;  %v3622_v6 = vmul.f32 %v3563_v53, %v2575_v17  ;;  %v3625_v51 = vmul.f32 %v3563_v53, %v2587_v15 }
 0x1f3   : > { %2598 = vpow2.f32 %v1298_v45  ;;  %v1826_v18 = vpack.c.bf16 %v3613_v19, %v3610_v31 }
 0x1f4   : > { %v2589_v7 = vpop.eup %2588  ;;  %2600 = vpow2.f32 %v1300_v39  ;;  %v1075_v39 = vsub.f32 0.0, %v820_v8 }
 0x1f5   : > { %v2591_v55 = vpop.eup %2590  ;;  %2602 = vrcp.f32 %v1495_v40  ;;  %v1483_v32 = vadd.f32 1.0, %v2589_v7  ;;  %v3633_v40 = vpop.f32.mrf.mxu3  ;;  %v1103_v7 = vsub.f32 0.0, %v890_v33 }
 0x1f6   : > { %v2593_v1 = vpop.eup %2592  ;;  %2604 = vpow2.f32 %v1244_v59  ;;  %v1306_v59 = vmul.f32 1.442695, %v1105_v29 }
 0x1f7   : > { %v2595_v24 = vpop.eup %2594  ;;  %2606 = vrcp.f32 %v1482_v58  ;;  %v824_v11 = vpop.f32.mrf.mxu0 }
 0x1f8   : > { %v2597_v45 = vpop.eup %2596  ;;  %2608 = vrcp.f32 %v1532_v23  ;;  %v825_v43 = vadd.f32 %v3534_v37, %v824_v11  ;;  %v1533_v15 = vadd.f32 1.0, %v2595_v24  ;;  %v1246_v23 = vmul.f32 1.442695, %v1075_v39 }
 0x1f9   : > { %v2599_v0 = vpop.eup %2598  ;;  %2610 = vpow2.f32 %v1304_v54  ;;  %v1484_v10 = vadd.f32 1.0, %v2597_v45  ;;  %v1302_v24 = vmul.f32 1.442695, %v1103_v7  ;;  %v914_v45 = vpop.f32.mrf.mxu2  ;;  %v913_v11 = vadd.f32 %v3534_v37, %v912_v50 }
 0x1fa   : > { %v2601_v26 = vpop.eup %2600  ;;  %2612 = vrcp.f32 %v1483_v32  ;;  %v1077_v22 = vsub.f32 0.0, %v825_v43  ;;  %v1485_v46 = vadd.f32 1.0, %v2599_v0  ;;  %v1752_v32 = vmul.f32 %v3563_v53, %v2591_v55 }
 0x1fb   : > { %v2603_v58 = vpop.eup %2602  ;;  %2614 = vpow2.f32 %v1396_v49  ;;  %v1486_v33 = vadd.f32 1.0, %v2601_v26  ;;  %v1013_v49 = vadd.f32 %v3534_v37, %v3477_v52  ;;  %v915_v26 = vadd.f32 %v3534_v37, %v914_v45 }
 0x1fc   : > { %v3638_v8 = vpop.eup %2604  ;;  %2616 = vpow2.f32 %v1398_v4  ;;  %v1755_v29 = vmul.f32 %v3563_v53, %v2603_v58  ;;  %v1250_v4 = vmul.f32 1.442695, %v1077_v22  ;;  %v1015_v7 = vadd.f32 %v3534_v37, %v3511_v20 }
 0x1fd   : > { %v3640_v17 = vpop.eup %2606  ;;  %2618 = vpow2.f32 %v1306_v59  ;;  %v1753_v59 = vmul.f32 %v3563_v53, %v2593_v1  ;;  %v1112_v52 = vsub.f32 0.0, %v913_v11  ;;  %v823_v50 = vadd.f32 %v3534_v37, %v3599_v42 }
 0x1fe   : > { %v3643_v54 = vpop.eup %2608  ;;  %2620 = vrcp.f32 %v1533_v15  ;;  %v1845_v39 = vpack.c.bf16 %v1755_v29, %v1754_v16  ;;  %v1152_v22 = vsub.f32 0.0, %v1013_v49  ;;  %v1113_v20 = vsub.f32 0.0, %v915_v26 }
 0x1ff   : > { %v2611_v44 = vpop.eup %2610  ;;  %2622 = vrcp.f32 %v1484_v10  ;;  %v827_v43 = vpop.f32.mrf.mxu0  ;;  %v1320_v29 = vmul.f32 1.442695, %v1112_v52  ;;  %v1153_v27 = vsub.f32 0.0, %v1015_v7  ;;  %v1750_v26 = vmul.f32 %v3563_v53, %v3578_v57 }
 0x200   : > { %v3649_v0 = vpop.eup %2612  ;;  %2624 = vpow2.f32 %v1246_v23  ;;  %v828_v55 = vadd.f32 %v3534_v37, %v827_v43  ;;  %1944 = vmatpush.bf16.xpose.msra.mxu2 %v1845_v39  ;;  %v1488_v58 = vadd.f32 1.0, %v2611_v44  ;;  %v1027_v10 = vpop.f32.mrf.mxu3  ;;  %v1844_v43 = vpack.c.bf16 %v1753_v59, %v1752_v32 }
 0x201   : > { %v2615_v15 = vpop.eup %2614  ;;  %2626 = vrcp.f32 %v1485_v46  ;;  %v917_v49 = vpop.f32.mrf.mxu2  ;;  %v1322_v59 = vmul.f32 1.442695, %v1113_v20  ;;  %v1402_v52 = vmul.f32 1.442695, %v1153_v27 }
 0x202   : > { %v2617_v16 = vpop.eup %2616  ;;  %2628 = vrcp.f32 %v1486_v33  ;;  %v1078_v1 = vsub.f32 0.0, %v828_v55  ;;  %v1534_v25 = vadd.f32 1.0, %v2615_v15  ;;  %v1076_v33 = vsub.f32 0.0, %v823_v50 }
 0x203   : > { %v2619_v23 = vpop.eup %2618  ;;  %2630 = vpow2.f32 %v1302_v24  ;;  %v1535_v44 = vadd.f32 1.0, %v2617_v16  ;;  %v1400_v55 = vmul.f32 1.442695, %v1152_v22  ;;  %v1751_v16 = vmul.f32 %v3563_v53, %v3583_v30 }
 0x204   : > { %v3658_v45 = vpop.eup %2620  ;;  %2632 = vpow2.f32 %v1250_v4  ;;  %v1489_v46 = vadd.f32 1.0, %v2619_v23  ;;  %v1252_v11 = vmul.f32 1.442695, %v1078_v1 }
 0x205   : > { %v3660_v39 = vpop.eup %2622  ;;  %2634 = vpow2.f32 %v1320_v29 }
 0x206   : > { %v3662_v42 = vpop.eup %2624  ;;  %2636 = vrcp.f32 %v1488_v58  ;;  %v1248_v58 = vmul.f32 1.442695, %v1076_v33  ;;  %v3676_v33 = vmul.f32 %v3563_v53, %v3640_v17 }
 0x207   : > { %v3664_v24 = vpop.eup %2626  ;;  %2638 = vpow2.f32 %v1252_v11  ;;  %v829_v32 = vpop.f32.mrf.mxu0  ;;  %v1843_v11 = vpack.c.bf16 %v1751_v16, %v1750_v26 }
 0x208   : > { %v3666_v4 = vpop.eup %2628  ;;  %2640 = vrcp.f32 %v1489_v46  ;;  %v830_v7 = vadd.f32 %v3534_v37, %v829_v32  ;;  %1945 = vmatpush.bf16.xpose.msra.mxu2 %v1844_v43  ;;  %v1029_v46 = vpop.f32.mrf.mxu3  ;;  %v1028_v43 = vadd.f32 %v3534_v37, %v1027_v10 }
 0x209   : > { %v2631_v15 = vpop.eup %2630  ;;  %2642 = vrcp.f32 %v1534_v25  ;;  %v919_v30 = vpop.f32.mrf.mxu2  ;;  %v1030_v26 = vadd.f32 %v3534_v37, %v1029_v46 }
 0x20a   : > { %v2633_v50 = vpop.eup %2632  ;;  %2644 = vrcp.f32 %v1535_v44  ;;  %v1079_v1 = vsub.f32 0.0, %v830_v7  ;;  %v1487_v29 = vadd.f32 1.0, %v2631_v15  ;;  %v3680_v44 = vmul.f32 %v3563_v53, %v3649_v0 }
 0x20b   : > { %v2635_v23 = vpop.eup %2634  ;;  %2646 = vpow2.f32 %v1400_v55  ;;  %v1461_v32 = vadd.f32 1.0, %v2633_v50  ;;  %v920_v10 = vadd.f32 %v3534_v37, %v919_v30 }
 0x20c   : > { %v2637_v22 = vpop.eup %2636  ;;  %2648 = vpow2.f32 %v1322_v59  ;;  %v1254_v20 = vmul.f32 1.442695, %v1079_v1  ;;  %v1496_v25 = vadd.f32 1.0, %v2635_v23  ;;  %v918_v59 = vadd.f32 %v3534_v37, %v917_v49 }
 0x20d   : > { %v2639_v57 = vpop.eup %2638  ;;  %2650 = vpow2.f32 %v1402_v52  ;;  %v1839_v17 = vpack.c.bf16 %v3680_v44, %v3676_v33  ;;  %v1748_v16 = vmul.f32 %v3563_v53, %v2637_v22  ;;  %v1158_v49 = vsub.f32 0.0, %v1028_v43 }
 0x20e   : > { %v2641_v27 = vpop.eup %2640  ;;  %2652 = vpow2.f32 %v1248_v58  ;;  %v1462_v7 = vadd.f32 1.0, %v2639_v57  ;;  %v1114_v0 = vsub.f32 0.0, %v918_v59  ;;  %v1115_v23 = vsub.f32 0.0, %v920_v10 }
 0x20f   : > { %v2643_v55 = vpop.eup %2642  ;;  %2654 = vpow2.f32 %v1254_v20  ;;  %v1749_v50 = vmul.f32 %v3563_v53, %v2641_v27  ;;  %v3691_v1 = vmul.f32 %v3563_v53, %v3643_v54 }
 0x210   : > { %v2645_v15 = vpop.eup %2644  ;;  %2656 = vrcp.f32 %v1487_v29  ;;  %1946 = vmatpush.bf16.xpose.msra.mxu2 %v1843_v11  ;;  %v3695_v29 = vmul.f32 %v3563_v53, %v3658_v45  ;;  %v1324_v20 = vmul.f32 1.442695, %v1114_v0  ;;  %v1326_v27 = vmul.f32 1.442695, %v1115_v23 }
 0x211   : > { %v2647_v52 = vpop.eup %2646  ;;  %2658 = vrcp.f32 %v1496_v25  ;;  %v1159_v25 = vsub.f32 0.0, %v1030_v26  ;;  %v1842_v54 = vpack.c.bf16 %v1749_v50, %v1748_v16  ;;  %v3700_v59 = vmul.f32 %v3563_v53, %v2643_v55 }
 0x212   : > { %v2649_v58 = vpop.eup %2648  ;;  %2660 = vrcp.f32 %v1461_v32  ;;  %v1536_v22 = vadd.f32 1.0, %v2647_v52  ;;  %v3703_v45 = vmul.f32 %v3563_v53, %v2645_v15  ;;  %v1023_v26 = vadd.f32 %v3534_v37, %v3592_v62 }
 0x213   : > { %v2651_v46 = vpop.eup %2650  ;;  %v1497_v57 = vadd.f32 1.0, %v2649_v58  ;;  %2662 = vrcp.f32 %v1462_v7  ;;  %v922_v7 = vpop.f32.mrf.mxu2  ;;  %v1412_v58 = vmul.f32 1.442695, %v1158_v49  ;;  %v1025_v55 = vadd.f32 %v3534_v37, %v3633_v40 }
 0x214   : > { %v2653_v11 = vpop.eup %2652  ;;  %v1537_v0 = vadd.f32 1.0, %v2651_v46  ;;  %v1414_v15 = vmul.f32 1.442695, %v1159_v25  ;;  %v1746_v62 = vmul.f32 %v3563_v53, %v3666_v4  ;;  %v1156_v49 = vsub.f32 0.0, %v1023_v26 }
 0x215   : > { %v2655_v30 = vpop.eup %2654  ;;  %2664 = vrcp.f32 %v1497_v57  ;;  %v1460_v23 = vadd.f32 1.0, %v2653_v11  ;;  %v1459_v40 = vadd.f32 1.0, %v3662_v42  ;;  %v1018_v11 = vadd.f32 %v3534_v37, %v3537_v21 }
 0x216   : > { %v2657_v32 = vpop.eup %2656  ;;  %v1463_v10 = vadd.f32 1.0, %v2655_v30  ;;  %2666 = vpow2.f32 %v1324_v20  ;;  %v1458_v30 = vadd.f32 1.0, %v3638_v8  ;;  %v1408_v26 = vmul.f32 1.442695, %v1156_v49 }
 0x217   : > { %v2659_v52 = vpop.eup %2658  ;;  %2668 = vpow2.f32 %v1326_v27  ;;  %v1747_v46 = vmul.f32 %v3563_v53, %v2657_v32  ;;  %v1020_v32 = vadd.f32 %v3534_v37, %v3560_v2 }
 0x218   : > { %2670 = vrcp.f32 %v1463_v10  ;;  %v2661_v50 = vpop.eup %2660  ;;  %1947 = vmatpush.bf16.xpose.msra.mxu2 %v1842_v54  ;;  %v3715_v20 = vmul.f32 %v3563_v53, %v2659_v52 }
 0x219   : > { %2672 = vrcp.f32 %v1536_v22  ;;  %v2663_v57 = vpop.eup %2662  ;;  %v1157_v22 = vsub.f32 0.0, %v1025_v55 }
 0x21a   : > { %2674 = vrcp.f32 %v1537_v0  ;;  %v1841_v0 = vpack.c.bf16 %v1747_v46, %v1746_v62  ;;  %v1722_v42 = vmul.f32 %v3563_v53, %v2663_v57  ;;  %v1744_v62 = vmul.f32 %v3563_v53, %v3660_v39 }
 0x21b   : > { %v2665_v27 = vpop.eup %2664  ;;  %2676 = vpow2.f32 %v1412_v58  ;;  %v924_v58 = vpop.f32.mrf.mxu2  ;;  %v1745_v46 = vmul.f32 %v3563_v53, %v3664_v24  ;;  %v1721_v39 = vmul.f32 %v3563_v53, %v2661_v50 }
 0x21c   : > { %v2667_v25 = vpop.eup %2666  ;;  %2678 = vpow2.f32 %v1414_v15  ;;  %v3722_v4 = vmul.f32 %v3563_v53, %v2665_v27  ;;  %v925_v27 = vadd.f32 %v3534_v37, %v924_v58  ;;  %v1155_v58 = vsub.f32 0.0, %v1020_v32 }
 0x21d   : > { %v2669_v54 = vpop.eup %2668  ;;  %2680 = vrcp.f32 %v1460_v23  ;;  %v1498_v10 = vadd.f32 1.0, %v2667_v25  ;;  %v923_v23 = vadd.f32 %v3534_v37, %v922_v7  ;;  %v1410_v25 = vmul.f32 1.442695, %v1157_v22 }
 0x21e   : > { %v2671_v8 = vpop.eup %2670  ;;  %v1499_v52 = vadd.f32 1.0, %v2669_v54  ;;  %v1154_v7 = vsub.f32 0.0, %v1018_v11  ;;  %v1840_v24 = vpack.c.bf16 %v1745_v46, %v1744_v62 }
 0x21f   : > { %v2673_v55 = vpop.eup %2672  ;;  %v1723_v15 = vmul.f32 %v3563_v53, %v2671_v8  ;;  %2682 = vrcp.f32 %v1498_v10  ;;  %v1116_v54 = vsub.f32 0.0, %v923_v23  ;;  %v1117_v8 = vsub.f32 0.0, %v925_v27 }
 0x220   : > { %v2675_v2 = vpop.eup %2674  ;;  %2684 = vrcp.f32 %v1499_v52  ;;  %1948 = vmatpush.bf16.xpose.msra.mxu2 %v1841_v0  ;;  %v3738_v0 = vmul.f32 %v3563_v53, %v2673_v55 }
 0x221   : > { %v2677_v57 = vpop.eup %2676  ;;  %2686 = vrcp.f32 %v1458_v30  ;;  %v1829_v49 = vpack.c.bf16 %v1723_v15, %v1722_v42  ;;  %v1328_v22 = vmul.f32 1.442695, %v1116_v54  ;;  %v1330_v52 = vmul.f32 1.442695, %v1117_v8 }
 0x222   : > { %v2679_v10 = vpop.eup %2678  ;;  %2688 = vrcp.f32 %v1459_v40  ;;  %v1542_v43 = vadd.f32 1.0, %v2677_v57  ;;  %v3741_v40 = vmul.f32 %v3563_v53, %v2675_v2  ;;  %v1406_v2 = vmul.f32 1.442695, %v1155_v58 }
 0x223   : > { %v2681_v21 = vpop.eup %2680  ;;  %1916 = vmatpush.bf16.xpose.msrb.mxu3 %v1829_v49  ;;  %2690 = vpow2.f32 %v1408_v26  ;;  %v1543_v30 = vadd.f32 1.0, %v2679_v10  ;;  %v3743_v32 = vpop.f32.mrf.mxu2  ;;  %v1404_v26 = vmul.f32 1.442695, %v1154_v7 }
 0x224   : > { %2692 = vpow2.f32 %v1410_v25  ;;  %v1720_v15 = vmul.f32 %v3563_v53, %v2681_v21  ;;  %v1866_v23 = vpack.c.bf16 %v3741_v40, %v3738_v0  ;;  %v3897_v40 = vpack.c.bf16 %v3703_v45, %v3700_v59 }
 0x225   : > { %v2683_v16 = vpop.eup %2682  ;;  %2694 = vpow2.f32 %v1328_v22 }
 0x226   : > { %v2685_v11 = vpop.eup %2684  ;;  %2696 = vpow2.f32 %v1330_v52  ;;  %v3746_v42 = vmul.f32 %v3563_v53, %v2683_v16  ;;  %v1828_v62 = vpack.c.bf16 %v1721_v39, %v1720_v15 }
 0x227   : > { %v2687_v50 = vpop.eup %2686  ;;  %v3752_v55 = vmul.f32 %v3563_v53, %v2685_v11  ;;  %2698 = vrcp.f32 %v1542_v43 }
 0x228   : > { %v2689_v27 = vpop.eup %2688  ;;  %2700 = vrcp.f32 %v1543_v30  ;;  %1949 = vmatpush.bf16.xpose.msra.mxu2 %v1840_v24  ;;  %v1718_v52 = vmul.f32 %v3563_v53, %v2687_v50 }
 0x229   : > { %v2691_v25 = vpop.eup %2690  ;;  %v1847_v16 = vpack.c.bf16 %v3752_v55, %v3746_v42  ;;  %2702 = vpow2.f32 %v1404_v26  ;;  %v1719_v8 = vmul.f32 %v3563_v53, %v2689_v27 }
 0x22a   : > { %v2693_v46 = vpop.eup %2692  ;;  %2704 = vpow2.f32 %v1406_v2  ;;  %v1540_v49 = vadd.f32 1.0, %v2691_v25 }
 0x22b   : > { %v2695_v57 = vpop.eup %2694  ;;  %1917 = vmatpush.bf16.xpose.msrb.mxu3 %v1828_v62  ;;  %v1541_v10 = vadd.f32 1.0, %v2693_v46  ;;  %v929_v58 = vpop.f32.mrf.mxu2  ;;  %v1827_v24 = vpack.c.bf16 %v1719_v8, %v1718_v52 }
 0x22c   : > { %v2697_v21 = vpop.eup %2696  ;;  %v1500_v54 = vadd.f32 1.0, %v2695_v57 }
 0x22d   : > { %v1501_v7 = vadd.f32 1.0, %v2697_v21  ;;  %v2699_v43 = vpop.eup %2698 }
 0x22e   : > { %2706 = vrcp.f32 %v1500_v54  ;;  %v2701_v22 = vpop.eup %2700  ;;  %v1802_v11 = vmul.f32 %v3563_v53, %v2699_v43  ;;  %v3782_v43 = vld [vmem:[%s3886_s4] sm:$0xff] }
 0x22f   : > { %2708 = vrcp.f32 %v1501_v7  ;;  %v2703_v39 = vpop.eup %2702  ;;  %v1803_v26 = vmul.f32 %v3563_v53, %v2701_v22  ;;  %v3895_v22 = vpack.c.bf16 %v3523_v48, %v3520_v60  ;;  %v3896_v60 = vpack.c.bf16 %v3472_v38, %v3469_v47 }
 0x230   : > { %2710 = vrcp.f32 %v1540_v49  ;;  %1950 = vmatpush.bf16.xpose.msra.mxu2 %v1839_v17  ;;  %v2705_v30 = vpop.eup %2704  ;;  %v1538_v27 = vadd.f32 1.0, %v2703_v39  ;;  %v928_v48 = vadd.f32 %v3534_v37, %v3743_v32  ;;  %v3898_v38 = vpack.c.bf16 %v3447_v28, %v3444_v56 }
 0x231   : > { %2712 = vrcp.f32 %v1541_v10  ;;  %v1539_v25 = vadd.f32 1.0, %v2705_v30  ;;  %v1869_v46 = vpack.c.bf16 %v1803_v26, %v1802_v11 }
 0x232   : > { %2714 = vrcp.f32 %v1538_v27  ;;  %v930_v27 = vadd.f32 %v3534_v37, %v929_v58 }
 0x233   : > { %1918 = vmatpush.bf16.xpose.msrb.mxu3 %v1827_v24  ;;  %v932_v57 = vpop.f32.mrf.mxu2  ;;  %2716 = vrcp.f32 %v1539_v25 }
 0x234   : > { %v2707_v15 = vpop.eup %2706  ;;  %v933_v52 = vadd.f32 %v3534_v37, %v932_v57 }
 0x235   : > { %v2709_v2 = vpop.eup %2708  ;;  %v3764_v50 = vmul.f32 %v3563_v53, %v2707_v15 }
 0x236   : > { %v2711_v62 = vpop.eup %2710  ;;  %v3767_v21 = vmul.f32 %v3563_v53, %v2709_v2  ;;  %v1120_v11 = vsub.f32 0.0, %v933_v52 }
 0x237   : > { %v2713_v33 = vpop.eup %2712  ;;  %v1800_v17 = vmul.f32 %v3563_v53, %v2711_v62  ;;  %v1118_v62 = vsub.f32 0.0, %v928_v48 }
 0x238   : > { %v1848_v44 = vpack.c.bf16 %v3767_v21, %v3764_v50  ;;  %1951 = vmatpush.bf16.xpose.msra.mxu2 %v1838_v12  ;;  %v1801_v49 = vmul.f32 %v3563_v53, %v2713_v33  ;;  %v2715_v54 = vpop.eup %2714  ;;  %v1336_v26 = vmul.f32 1.442695, %v1120_v11 }
 0x239   : > { %v2717_v7 = vpop.eup %2716  ;;  %v1798_v41 = vmul.f32 %v3563_v53, %v2715_v54  ;;  %v1332_v32 = vmul.f32 1.442695, %v1118_v62 }
 0x23a   : > { %v1868_v8 = vpack.c.bf16 %v1801_v49, %v1800_v17  ;;  %v1799_v9 = vmul.f32 %v3563_v53, %v2717_v7  ;;  %v3900_v17 = vpack.c.bf16 %v3695_v29, %v3691_v1  ;;  %v2771_v1 = vmov 0   ;;  %v1870_v29 = vld [vmem:[%s3887_s5] sm:$0xff] }
 0x23b   : > { %1919 = vmatpush.bf16.xpose.msrb.mxu3 %v1826_v18  ;;  %v934_v10 = vpop.f32.mrf.mxu2  ;;  %2227 = vset.pattern.permute.xlu0 %v2771_v1 }
 0x23c   : > { %v1867_v31 = vpack.c.bf16 %v1799_v9, %v1798_v41  ;;  %v935_v39 = vadd.f32 %v3534_v37, %v934_v10  ;;  %1874 = vperm.xlu0 %2227, %v1870_v29  }
 0x23e   : > { %v1121_v63 = vsub.f32 0.0, %v935_v39 }
 0x23f   : > { %1952 = vmatmul.bf16.vlgmr.msra.gmra.mxu2 %v3782_v43 }
 0x240   : > { %1986 = vmatpush.bf16.xpose.msrb.mxu2 %v1869_v46  ;;  %v1338_v2 = vmul.f32 1.442695, %v1121_v63  ;;  %v1119_v46 = vsub.f32 0.0, %v930_v27 }
 0x243   : > { %1920 = vmatpush.bf16.xpose.msrb.mxu3 %v1825_v61  ;;  %v937_v19 = vpop.f32.mrf.mxu2 }
 0x244   : > { %v938_v18 = vadd.f32 %v3534_v37, %v937_v19 }
 0x246   : > { %v1122_v12 = vsub.f32 0.0, %v938_v18  ;;  %v1871_v18 = vld [vmem:[%s3887_s5 + $0x8] sm:$0xff] }
 0x247   : > { %1879 = vperm.xlu0 %2227, %v1871_v18  }
 0x248   : > { %1987 = vmatpush.bf16.xpose.msrb.mxu2 %v1868_v8  ;;  %v1340_v24 = vmul.f32 1.442695, %v1122_v12 }
 0x24a   : > { %2718 = vpow2.f32 %v1340_v24 }
 0x24b   : > { %1921 = vmatpush.bf16.xpose.msrb.mxu3 %v3895_v22  ;;  %v939_v30 = vpop.f32.mrf.mxu2  ;;  %v3903_v22 = vpack.c.bf16 %v3597_v14, %v3590_v13  ;;  %v3904_v13 = vpack.c.bf16 %v3722_v4, %v3715_v20  ;;  %v1897_v14 = vpop.f32.mrf.mxu1 }
 0x24c   : > { %v940_v35 = vadd.f32 %v3534_v37, %v939_v30  ;;  %v3899_v37 = vpack.c.bf16 %v3221_v5, %v3218_v36  ;;  %v3901_v36 = vpack.c.bf16 %v3174_v34, %v3171_v3  ;;  %v3902_v3 = vpack.c.bf16 %v3625_v51, %v3622_v6 }
 0x24e   : > { %v1123_v61 = vsub.f32 0.0, %v940_v35 }
 0x250   : > { %1988 = vmatpush.bf16.xpose.msrb.mxu2 %v1867_v31  ;;  %v1342_v15 = vmul.f32 1.442695, %v1123_v61  ;;  %v2719_v25 = vpop.eup %2718 }
 0x251   : > { %v1506_v0 = vadd.f32 1.0, %v2719_v25 }
 0x252   : > { %2720 = vpow2.f32 %v1342_v15 }
 0x253   : > { %1922 = vmatpush.bf16.xpose.msrb.mxu3 %v3896_v60  ;;  %2722 = vpow2.f32 %v1336_v26  ;;  %v1899_v30 = vpop.f32.mrf.mxu1 }
 0x254   : > { %2724 = vpow2.f32 %v1338_v2 }
 0x255   : > { %2726 = vrcp.f32 %v1506_v0 }
 0x258   : > { %1989 = vmatpush.bf16.xpose.msrb.mxu2 %v1866_v23  ;;  %v2721_v47 = vpop.eup %2720  ;;  %v1334_v23 = vmul.f32 1.442695, %v1119_v46 }
 0x259   : > { %v1507_v58 = vadd.f32 1.0, %v2721_v47  ;;  %v2723_v57 = vpop.eup %2722 }
 0x25a   : > { %v2725_v33 = vpop.eup %2724  ;;  %v1504_v59 = vadd.f32 1.0, %v2723_v57 }
 0x25b   : > { %1923 = vmatpush.bf16.xpose.msrb.mxu3 %v3898_v38  ;;  %2728 = vrcp.f32 %v1507_v58  ;;  %v1505_v45 = vadd.f32 1.0, %v2725_v33  ;;  %v2727_v56 = vpop.eup %2726  ;;  %v1939_v35 = vpop.f32.mrf.mxu1 }
 0x25c   : > { %2730 = vpow2.f32 %v1332_v32  ;;  %v1766_v54 = vmul.f32 %v3563_v53, %v2727_v56 }
 0x25d   : > { %2732 = vpow2.f32 %v1334_v23 }
 0x25e   : > { %2734 = vrcp.f32 %v1504_v59 }
 0x25f   : > { %2736 = vrcp.f32 %v1505_v45 }
 0x260   : > { %1990 = vmatpush.bf16.xpose.msrb.mxu2 %v3897_v40 }
 0x261   : > { %v2729_v28 = vpop.eup %2728 }
 0x262   : > { %1924 = vmatmul.bf16.vlgmr.msrb.gmra.mxu3 %v3782_v43  ;;  %v2731_v5 = vpop.eup %2730  ;;  %v1767_v8 = vmul.f32 %v3563_v53, %v2729_v28 }
 0x263   : > { %1958 = vmatpush.bf16.xpose.msra.mxu3 %v3899_v37  ;;  %v2733_v49 = vpop.eup %2732  ;;  %v1502_v10 = vadd.f32 1.0, %v2731_v5 }
 0x264   : > { %v1503_v7 = vadd.f32 1.0, %v2733_v49  ;;  %v2735_v41 = vpop.eup %2734  ;;  %v1851_v34 = vpack.c.bf16 %v1767_v8, %v1766_v54 }
 0x265   : > { %v2737_v9 = vpop.eup %2736  ;;  %2738 = vrcp.f32 %v1502_v10  ;;  %v1764_v31 = vmul.f32 %v3563_v53, %v2735_v41 }
 0x266   : > { %2740 = vrcp.f32 %v1503_v7  ;;  %v1765_v19 = vmul.f32 %v3563_v53, %v2737_v9 }
 0x268   : > { %1991 = vmatpush.bf16.xpose.msrb.mxu2 %v3900_v17  ;;  %v1850_v6 = vpack.c.bf16 %v1765_v19, %v1764_v31 }
 0x26b   : > { %1959 = vmatpush.bf16.xpose.msra.mxu3 %v3901_v36  ;;  %v2739_v12 = vpop.eup %2738 }
 0x26c   : > { %v2741_v51 = vpop.eup %2740  ;;  %v1762_v52 = vmul.f32 %v3563_v53, %v2739_v12 }
 0x26d   : > { %v1763_v39 = vmul.f32 %v3563_v53, %v2741_v51  ;;  %v1911_v53 = vpop.f32.mrf.mxu2 }
 0x26f   : > { %v1849_v24 = vpack.c.bf16 %v1763_v39, %v1762_v52 }
 0x270   : > { %1992 = vmatpush.bf16.xpose.msrb.mxu2 %v3902_v3 }
 0x273   : > { %1960 = vmatpush.bf16.xpose.msra.mxu3 %v1851_v34 }
 0x275   : > { %v1913_v11 = vpop.f32.mrf.mxu2 }
 0x278   : > { %1993 = vmatpush.bf16.xpose.msrb.mxu2 %v3903_v22 }
 0x27b   : > { %1961 = vmatpush.bf16.xpose.msra.mxu3 %v1850_v6 }
 0x27f   : > { %1994 = vmatmul.bf16.vlgmr.msrb.gmra.mxu2 %v3782_v43 }
 0x283   : > { %1962 = vmatpush.bf16.xpose.msra.mxu3 %v1849_v24 }
 0x28b   : > { %1963 = vmatpush.bf16.xpose.msra.mxu3 %v1848_v44 }
 0x293   : > { %1964 = vmatpush.bf16.xpose.msra.mxu3 %v1847_v16  ;;  %v1941_v16 = vpop.f32.mrf.mxu1 }
 0x29b   : > { %1965 = vmatpush.bf16.xpose.msra.mxu3 %v3904_v13  ;;  %v1981_v25 = vpop.f32.mrf.mxu1 }
 0x2a2   : > { %1966 = vmatmul.bf16.vlgmr.msra.gmra.mxu3 %v3782_v43 }
 0x2a3   : > { %v1983_v40 = vpop.f32.mrf.mxu1 }
 0x2ae   : > { %v1875_v61 = vpop.permute.xlu0 %1874 }
 0x2af   : > { %v1898_v20 = vadd.f32 %v1897_v14, %v1875_v61  ;;  %v1912_v4 = vadd.f32 %v1911_v53, %v1875_v61  ;;  %v1940_v42 = vadd.f32 %v1939_v35, %v1875_v61  ;;  %v1982_v46 = vadd.f32 %v1981_v25, %v1875_v61 }
 0x2b1   : > { %2000 = vst [vmem:[%s3855_s7] sm:$0xff] %v1898_v20 }
 0x2b2   : > { %2001 = vst [vmem:[%s3855_s7 + $0x8] sm:$0xff] %v1912_v4 }
 0x2b3   : > { %2003 = vst [vmem:[%s3855_s7 + $0x18] sm:$0xff] %v1940_v42 }
 0x2b4   : > { %2006 = vst [vmem:[%s3855_s7 + $0x30] sm:$0xff] %v1982_v46 }
 0x2b9   : > { %v1880_v50 = vpop.permute.xlu0 %1879 }
 0x2ba   : > { %v1900_v44 = vadd.f32 %v1899_v30, %v1880_v50  ;;  %v1914_v43 = vadd.f32 %v1913_v11, %v1880_v50  ;;  %v1942_v26 = vadd.f32 %v1941_v16, %v1880_v50  ;;  %v1984_v38 = vadd.f32 %v1983_v40, %v1880_v50 }
 0x2bc   : > { %2008 = vst [vmem:[%s3855_s7 + $0x40] sm:$0xff] %v1900_v44 }
 0x2bd   : > { %2009 = vst [vmem:[%s3855_s7 + $0x48] sm:$0xff] %v1914_v43 }
 0x2be   : > { %2011 = vst [vmem:[%s3855_s7 + $0x58] sm:$0xff] %v1942_v26 }
 0x2bf   : > { %2014 = vst [vmem:[%s3855_s7 + $0x70] sm:$0xff] %v1984_v38 }
 0x2c2   : > { %v1953_v63 = vpop.f32.mrf.mxu2 }
 0x2c3   : > { %v1954_v55 = vadd.f32 %v1953_v63, %v1875_v61 }
 0x2c5   : > { %2004 = vst [vmem:[%s3855_s7 + $0x20] sm:$0xff] %v1954_v55 }
 0x2ca   : > { %v1955_v21 = vpop.f32.mrf.mxu2 }
 0x2cb   : > { %v1956_v15 = vadd.f32 %v1955_v21, %v1880_v50 }
 0x2cd   : > { %2012 = vst [vmem:[%s3855_s7 + $0x60] sm:$0xff] %v1956_v15 }
 0x2e5   : > { %v1925_v60 = vpop.f32.mrf.mxu3 }
 0x2e6   : > { %v1926_v48 = vadd.f32 %v1925_v60, %v1875_v61 }
 0x2e8   : > { %2002 = vst [vmem:[%s3855_s7 + $0x10] sm:$0xff] %v1926_v48 }
 0x2ed   : > { %v1927_v27 = vpop.f32.mrf.mxu3 }
 0x2ee   : > { %v1928_v2 = vadd.f32 %v1927_v27, %v1880_v50 }
 0x2f0   : > { %2010 = vst [vmem:[%s3855_s7 + $0x50] sm:$0xff] %v1928_v2 }
 0x302   : > { %v1995_v62 = vpop.f32.mrf.mxu2 }
 0x303   : > { %v1996_v0 = vadd.f32 %v1995_v62, %v1875_v61 }
 0x305   : > { %2007 = vst [vmem:[%s3855_s7 + $0x38] sm:$0xff] %v1996_v0 }
 0x30a   : > { %v1997_v47 = vpop.f32.mrf.mxu2 }
 0x30b   : > { %v1998_v32 = vadd.f32 %v1997_v47, %v1880_v50 }
 0x30d   : > { %2015 = vst [vmem:[%s3855_s7 + $0x78] sm:$0xff] %v1998_v32 }
 0x325   : > { %v1967_v37 = vpop.f32.mrf.mxu3 }
 0x326   : > { %v1968_v23 = vadd.f32 %v1967_v37, %v1875_v61 }
 0x328   : > { %2005 = vst [vmem:[%s3855_s7 + $0x28] sm:$0xff] %v1968_v23 }
 0x32d   : > { %v1969_v58 = vpop.f32.mrf.mxu3 }
 0x32e   : > { %v1970_v57 = vadd.f32 %v1969_v58, %v1880_v50 }
 0x330   : > { %2013 = vst [vmem:[%s3855_s7 + $0x68] sm:$0xff] %v1970_v57 }
 0x331 PF: > { %s16_s23 = sadd.s32 1, %s2769_s23   ;;  %s3905_s21 = smov %s2765_s22 }
 0x332   : > { %p13_p5 = scmp.ge.s32.totalorder %s16_s23, 4   ;;  %s3906_s22 = smov %s3908_s24 }
 0x334   :  { %15 = sbr.rel (!%p13_p5) target bundleno = 2 (0x2), region = 77 }

// kernel: aft_full_forward.2
= control target key start
LH: loop header
LB: loop body
LE: loop exit
PB: predicated region body
PF: predicated region fallthrough
CT: control target
= control target key end

     0   :  { %s3343_s12 = smov 0   ;;  %s3345_s13 = smov 0   ;;  %s4275_s0 = inlined_call_operand.vmem [shape: f32[2,1024,16], index: 0, kind: input, shape index: {}]   ;;  %s4276_s1 = inlined_call_operand.vmem [shape: bf16[16,256], index: 1, kind: input, shape index: {}]   ;;  %s4277_s2 = inlined_call_operand.vmem [shape: f32[1,256], index: 2, kind: input, shape index: {}]   ;;  %s4278_s3 = inlined_call_operand.vmem [shape: f32[2,1,128], index: 3, kind: output, shape index: {}]  }
   0x1   :  { %s3347_s14 = smov 0   ;;  %s3349_s15 = smov 0  }
   0x2   :  { %s3351_s16 = smov 0  }
   0x3 LB: > { %s22_s17 = sadd.s32 1, %s3316_s15  ;;  %p39_p1 = scmp.ne.s32.totalorder %s3308_s13, %s3304_s12  ;;  %s3320_s16 = sphi %s3351_s16, %s13_s16   ;;  %s3316_s15 = sphi %s3349_s15, %s4282_s15   ;;  %s3312_s14 = sphi %s3347_s14, %s4281_s14   ;;  %s3308_s13 = sphi %s3345_s13, %s4280_s13   ;;  %s3304_s12 = sphi %s3343_s12, %s4279_s12  }
   0x4   : > { %p23_p0 = scmp.ge.s32.totalorder %s22_s17, 2  ;;  %p40_p2 = scmp.eq.s32.totalorder %s3320_s16, 0 }
   0x5   : > { %s32_s19 = sadd.s32 1, %s3308_s13  ;;  %p2829_p5 = scmp.ge.s32.totalorder %s3320_s16, 2 }
   0x6   : > { %s4284_s17 = smov (%p23_p0, %s22_s17), 0  ;;  %p41_p3 = por %p40_p2, %p39_p1 }
   0x7   : > { %s29_s18 = ssub.s32 %s3316_s15, %s4284_s17  ;;  %160 = sbr.rel (%p2829_p5) target bundleno = 144 (0x90), region = 24 }
   0x8   : > { %p30_p4 = scmp.eq.s32.totalorder %s29_s18, 0 }
   0xa   : > { %s3378_s20 = scalar_select %p30_p4, %s3308_s13, %s32_s19  }
   0xc   : > { %163 = sbr.rel (!%p41_p3) target bundleno = 144 (0x90), region = 28  ;;  %s165_s21 = sand.u32 (%p41_p3), 1, %s3308_s13  }
   0xd   : > { %s2976_s22 = sshll.u32 (%p41_p3), %s3316_s15, 9  ;;  %s2830_s23 = sshll.u32 (%p41_p3), %s165_s21, 10 }
   0xe   : > { %s3386_s26 = scalar_lea.vmem (%p41_p3), %s4275_s0, %s2976_s22  ;;  %s3391_s27 = scalar_lea.vmem (%p41_p3), [#allocation4], %s2830_s23 }
   0xf   : > { %v453_v0 = vld [vmem:[%s3386_s26] sm:$0xff] (%p41_p3)  ;;  %v455_v1 = vld [vmem:[%s3386_s26 + $0x8] sm:$0xff] (%p41_p3)  ;;  %v457_v2 = vld [vmem:[%s3386_s26 + $0x10] sm:$0xff] (%p41_p3) }
  0x10   : > { %454 = vst [vmem:[%s3391_s27] sm:$0xff] (%p41_p3), %v453_v0  ;;  %v459_v3 = vld [vmem:[%s3386_s26 + $0x18] sm:$0xff] (%p41_p3)  ;;  %v461_v4 = vld [vmem:[%s3386_s26 + $0x20] sm:$0xff] (%p41_p3)  ;;  %v463_v5 = vld [vmem:[%s3386_s26 + $0x28] sm:$0xff] (%p41_p3) }
  0x11   : > { %456 = vst [vmem:[%s3391_s27 + $0x8] sm:$0xff] %v455_v1  ;;  %v465_v6 = vld [vmem:[%s3386_s26 + $0x30] sm:$0xff]  ;;  %v467_v7 = vld [vmem:[%s3386_s26 + $0x38] sm:$0xff]  ;;  %v469_v8 = vld [vmem:[%s3386_s26 + $0x40] sm:$0xff] }
  0x12   : > { %458 = vst [vmem:[%s3391_s27 + $0x10] sm:$0xff] %v457_v2  ;;  %v471_v9 = vld [vmem:[%s3386_s26 + $0x48] sm:$0xff]  ;;  %v473_v10 = vld [vmem:[%s3386_s26 + $0x50] sm:$0xff]  ;;  %v475_v11 = vld [vmem:[%s3386_s26 + $0x58] sm:$0xff] }
  0x13   : > { %460 = vst [vmem:[%s3391_s27 + $0x18] sm:$0xff] %v459_v3  ;;  %v477_v12 = vld [vmem:[%s3386_s26 + $0x60] sm:$0xff]  ;;  %v479_v13 = vld [vmem:[%s3386_s26 + $0x68] sm:$0xff]  ;;  %v481_v14 = vld [vmem:[%s3386_s26 + $0x70] sm:$0xff] }
  0x14   : > { %462 = vst [vmem:[%s3391_s27 + $0x20] sm:$0xff] %v461_v4  ;;  %v483_v15 = vld [vmem:[%s3386_s26 + $0x78] sm:$0xff]  ;;  %v485_v16 = vld [vmem:[%s3386_s26 + $0x80] sm:$0xff]  ;;  %v487_v17 = vld [vmem:[%s3386_s26 + $0x88] sm:$0xff] }
  0x15   : > { %464 = vst [vmem:[%s3391_s27 + $0x28] sm:$0xff] %v463_v5  ;;  %v489_v18 = vld [vmem:[%s3386_s26 + $0x90] sm:$0xff]  ;;  %v491_v19 = vld [vmem:[%s3386_s26 + $0x98] sm:$0xff]  ;;  %v493_v20 = vld [vmem:[%s3386_s26 + $0xa0] sm:$0xff] }
  0x16   : > { %466 = vst [vmem:[%s3391_s27 + $0x30] sm:$0xff] %v465_v6  ;;  %v495_v21 = vld [vmem:[%s3386_s26 + $0xa8] sm:$0xff]  ;;  %v497_v22 = vld [vmem:[%s3386_s26 + $0xb0] sm:$0xff]  ;;  %v499_v23 = vld [vmem:[%s3386_s26 + $0xb8] sm:$0xff] }
  0x17   : > { %468 = vst [vmem:[%s3391_s27 + $0x38] sm:$0xff] %v467_v7  ;;  %v501_v24 = vld [vmem:[%s3386_s26 + $0xc0] sm:$0xff]  ;;  %v503_v25 = vld [vmem:[%s3386_s26 + $0xc8] sm:$0xff]  ;;  %v505_v26 = vld [vmem:[%s3386_s26 + $0xd0] sm:$0xff] }
  0x18   : > { %470 = vst [vmem:[%s3391_s27 + $0x40] sm:$0xff] %v469_v8  ;;  %v507_v27 = vld [vmem:[%s3386_s26 + $0xd8] sm:$0xff]  ;;  %v509_v28 = vld [vmem:[%s3386_s26 + $0xe0] sm:$0xff]  ;;  %v511_v29 = vld [vmem:[%s3386_s26 + $0xe8] sm:$0xff] }
  0x19   : > { %472 = vst [vmem:[%s3391_s27 + $0x48] sm:$0xff] %v471_v9  ;;  %v513_v30 = vld [vmem:[%s3386_s26 + $0xf0] sm:$0xff]  ;;  %v515_v31 = vld [vmem:[%s3386_s26 + $0xf8] sm:$0xff]  ;;  %v517_v32 = vld [vmem:[%s3386_s26 + $0x100] sm:$0xff] }
  0x1a   : > { %474 = vst [vmem:[%s3391_s27 + $0x50] sm:$0xff] %v473_v10  ;;  %v519_v33 = vld [vmem:[%s3386_s26 + $0x108] sm:$0xff]  ;;  %v521_v34 = vld [vmem:[%s3386_s26 + $0x110] sm:$0xff]  ;;  %v523_v35 = vld [vmem:[%s3386_s26 + $0x118] sm:$0xff] }
  0x1b   : > { %476 = vst [vmem:[%s3391_s27 + $0x58] sm:$0xff] %v475_v11  ;;  %v525_v36 = vld [vmem:[%s3386_s26 + $0x120] sm:$0xff]  ;;  %v527_v37 = vld [vmem:[%s3386_s26 + $0x128] sm:$0xff]  ;;  %v529_v38 = vld [vmem:[%s3386_s26 + $0x130] sm:$0xff] }
  0x1c   : > { %478 = vst [vmem:[%s3391_s27 + $0x60] sm:$0xff] %v477_v12  ;;  %v531_v39 = vld [vmem:[%s3386_s26 + $0x138] sm:$0xff]  ;;  %v533_v40 = vld [vmem:[%s3386_s26 + $0x140] sm:$0xff]  ;;  %v535_v41 = vld [vmem:[%s3386_s26 + $0x148] sm:$0xff] }
  0x1d   : > { %480 = vst [vmem:[%s3391_s27 + $0x68] sm:$0xff] %v479_v13  ;;  %v537_v42 = vld [vmem:[%s3386_s26 + $0x150] sm:$0xff]  ;;  %v539_v43 = vld [vmem:[%s3386_s26 + $0x158] sm:$0xff]  ;;  %v541_v44 = vld [vmem:[%s3386_s26 + $0x160] sm:$0xff] }
  0x1e   : > { %482 = vst [vmem:[%s3391_s27 + $0x70] sm:$0xff] %v481_v14  ;;  %v543_v45 = vld [vmem:[%s3386_s26 + $0x168] sm:$0xff]  ;;  %v545_v46 = vld [vmem:[%s3386_s26 + $0x170] sm:$0xff]  ;;  %v547_v47 = vld [vmem:[%s3386_s26 + $0x178] sm:$0xff] }
  0x1f   : > { %484 = vst [vmem:[%s3391_s27 + $0x78] sm:$0xff] %v483_v15  ;;  %v549_v48 = vld [vmem:[%s3386_s26 + $0x180] sm:$0xff]  ;;  %v551_v49 = vld [vmem:[%s3386_s26 + $0x188] sm:$0xff]  ;;  %v553_v50 = vld [vmem:[%s3386_s26 + $0x190] sm:$0xff] }
  0x20   : > { %486 = vst [vmem:[%s3391_s27 + $0x80] sm:$0xff] %v485_v16  ;;  %v555_v51 = vld [vmem:[%s3386_s26 + $0x198] sm:$0xff]  ;;  %v557_v52 = vld [vmem:[%s3386_s26 + $0x1a0] sm:$0xff]  ;;  %v559_v53 = vld [vmem:[%s3386_s26 + $0x1a8] sm:$0xff] }
  0x21   : > { %488 = vst [vmem:[%s3391_s27 + $0x88] sm:$0xff] %v487_v17  ;;  %v561_v54 = vld [vmem:[%s3386_s26 + $0x1b0] sm:$0xff]  ;;  %v563_v55 = vld [vmem:[%s3386_s26 + $0x1b8] sm:$0xff]  ;;  %v565_v56 = vld [vmem:[%s3386_s26 + $0x1c0] sm:$0xff] }
  0x22   : > { %490 = vst [vmem:[%s3391_s27 + $0x90] sm:$0xff] %v489_v18  ;;  %v567_v57 = vld [vmem:[%s3386_s26 + $0x1c8] sm:$0xff]  ;;  %v569_v58 = vld [vmem:[%s3386_s26 + $0x1d0] sm:$0xff]  ;;  %v571_v59 = vld [vmem:[%s3386_s26 + $0x1d8] sm:$0xff] }
  0x23   : > { %492 = vst [vmem:[%s3391_s27 + $0x98] sm:$0xff] %v491_v19  ;;  %v573_v60 = vld [vmem:[%s3386_s26 + $0x1e0] sm:$0xff]  ;;  %v575_v61 = vld [vmem:[%s3386_s26 + $0x1e8] sm:$0xff]  ;;  %v577_v62 = vld [vmem:[%s3386_s26 + $0x1f0] sm:$0xff] }
  0x24   : > { %494 = vst [vmem:[%s3391_s27 + $0xa0] sm:$0xff] %v493_v20  ;;  %v579_v63 = vld [vmem:[%s3386_s26 + $0x1f8] sm:$0xff]  ;;  %v581_v0 = vld [vmem:[%s3386_s26 + $0x400] sm:$0xff]  ;;  %v583_v1 = vld [vmem:[%s3386_s26 + $0x408] sm:$0xff] }
  0x25   : > { %496 = vst [vmem:[%s3391_s27 + $0xa8] sm:$0xff] %v495_v21  ;;  %v585_v2 = vld [vmem:[%s3386_s26 + $0x410] sm:$0xff]  ;;  %v587_v3 = vld [vmem:[%s3386_s26 + $0x418] sm:$0xff]  ;;  %v589_v4 = vld [vmem:[%s3386_s26 + $0x420] sm:$0xff] }
  0x26   : > { %498 = vst [vmem:[%s3391_s27 + $0xb0] sm:$0xff] %v497_v22  ;;  %v591_v5 = vld [vmem:[%s3386_s26 + $0x428] sm:$0xff]  ;;  %v593_v6 = vld [vmem:[%s3386_s26 + $0x430] sm:$0xff]  ;;  %v595_v7 = vld [vmem:[%s3386_s26 + $0x438] sm:$0xff] }
  0x27   : > { %500 = vst [vmem:[%s3391_s27 + $0xb8] sm:$0xff] %v499_v23  ;;  %v597_v8 = vld [vmem:[%s3386_s26 + $0x440] sm:$0xff]  ;;  %v599_v9 = vld [vmem:[%s3386_s26 + $0x448] sm:$0xff]  ;;  %v601_v10 = vld [vmem:[%s3386_s26 + $0x450] sm:$0xff] }
  0x28   : > { %502 = vst [vmem:[%s3391_s27 + $0xc0] sm:$0xff] %v501_v24  ;;  %v603_v11 = vld [vmem:[%s3386_s26 + $0x458] sm:$0xff]  ;;  %v605_v12 = vld [vmem:[%s3386_s26 + $0x460] sm:$0xff]  ;;  %v607_v13 = vld [vmem:[%s3386_s26 + $0x468] sm:$0xff] }
  0x29   : > { %504 = vst [vmem:[%s3391_s27 + $0xc8] sm:$0xff] %v503_v25  ;;  %v609_v14 = vld [vmem:[%s3386_s26 + $0x470] sm:$0xff]  ;;  %v611_v15 = vld [vmem:[%s3386_s26 + $0x478] sm:$0xff]  ;;  %v613_v16 = vld [vmem:[%s3386_s26 + $0x480] sm:$0xff] }
  0x2a   : > { %506 = vst [vmem:[%s3391_s27 + $0xd0] sm:$0xff] %v505_v26  ;;  %v615_v17 = vld [vmem:[%s3386_s26 + $0x488] sm:$0xff]  ;;  %v617_v18 = vld [vmem:[%s3386_s26 + $0x490] sm:$0xff]  ;;  %v619_v19 = vld [vmem:[%s3386_s26 + $0x498] sm:$0xff] }
  0x2b   : > { %508 = vst [vmem:[%s3391_s27 + $0xd8] sm:$0xff] %v507_v27  ;;  %v621_v20 = vld [vmem:[%s3386_s26 + $0x4a0] sm:$0xff]  ;;  %v623_v21 = vld [vmem:[%s3386_s26 + $0x4a8] sm:$0xff]  ;;  %v625_v22 = vld [vmem:[%s3386_s26 + $0x4b0] sm:$0xff] }
  0x2c   : > { %510 = vst [vmem:[%s3391_s27 + $0xe0] sm:$0xff] %v509_v28  ;;  %v627_v23 = vld [vmem:[%s3386_s26 + $0x4b8] sm:$0xff]  ;;  %v629_v24 = vld [vmem:[%s3386_s26 + $0x4c0] sm:$0xff]  ;;  %v631_v25 = vld [vmem:[%s3386_s26 + $0x4c8] sm:$0xff] }
  0x2d   : > { %512 = vst [vmem:[%s3391_s27 + $0xe8] sm:$0xff] %v511_v29  ;;  %v633_v26 = vld [vmem:[%s3386_s26 + $0x4d0] sm:$0xff]  ;;  %v635_v27 = vld [vmem:[%s3386_s26 + $0x4d8] sm:$0xff]  ;;  %v637_v28 = vld [vmem:[%s3386_s26 + $0x4e0] sm:$0xff] }
  0x2e   : > { %514 = vst [vmem:[%s3391_s27 + $0xf0] sm:$0xff] %v513_v30  ;;  %v639_v29 = vld [vmem:[%s3386_s26 + $0x4e8] sm:$0xff]  ;;  %v641_v30 = vld [vmem:[%s3386_s26 + $0x4f0] sm:$0xff] }
  0x2f   : > { %516 = vst [vmem:[%s3391_s27 + $0xf8] sm:$0xff] %v515_v31  ;;  %v643_v31 = vld [vmem:[%s3386_s26 + $0x4f8] sm:$0xff] }
  0x30   : > { %518 = vst [vmem:[%s3391_s27 + $0x100] sm:$0xff] %v517_v32  ;;  %v645_v32 = vld [vmem:[%s3386_s26 + $0x500] sm:$0xff] }
  0x31   : > { %520 = vst [vmem:[%s3391_s27 + $0x108] sm:$0xff] %v519_v33  ;;  %v647_v33 = vld [vmem:[%s3386_s26 + $0x508] sm:$0xff] }
  0x32   : > { %522 = vst [vmem:[%s3391_s27 + $0x110] sm:$0xff] %v521_v34  ;;  %v649_v34 = vld [vmem:[%s3386_s26 + $0x510] sm:$0xff] }
  0x33   : > { %524 = vst [vmem:[%s3391_s27 + $0x118] sm:$0xff] %v523_v35  ;;  %v651_v35 = vld [vmem:[%s3386_s26 + $0x518] sm:$0xff] }
  0x34   : > { %526 = vst [vmem:[%s3391_s27 + $0x120] sm:$0xff] %v525_v36  ;;  %v653_v36 = vld [vmem:[%s3386_s26 + $0x520] sm:$0xff] }
  0x35   : > { %528 = vst [vmem:[%s3391_s27 + $0x128] sm:$0xff] %v527_v37  ;;  %v655_v37 = vld [vmem:[%s3386_s26 + $0x528] sm:$0xff] }
  0x36   : > { %530 = vst [vmem:[%s3391_s27 + $0x130] sm:$0xff] %v529_v38  ;;  %v657_v38 = vld [vmem:[%s3386_s26 + $0x530] sm:$0xff] }
  0x37   : > { %532 = vst [vmem:[%s3391_s27 + $0x138] sm:$0xff] %v531_v39  ;;  %v659_v39 = vld [vmem:[%s3386_s26 + $0x538] sm:$0xff] }
  0x38   : > { %534 = vst [vmem:[%s3391_s27 + $0x140] sm:$0xff] %v533_v40  ;;  %v661_v40 = vld [vmem:[%s3386_s26 + $0x540] sm:$0xff] }
  0x39   : > { %536 = vst [vmem:[%s3391_s27 + $0x148] sm:$0xff] %v535_v41  ;;  %v663_v41 = vld [vmem:[%s3386_s26 + $0x548] sm:$0xff] }
  0x3a   : > { %538 = vst [vmem:[%s3391_s27 + $0x150] sm:$0xff] %v537_v42  ;;  %v665_v42 = vld [vmem:[%s3386_s26 + $0x550] sm:$0xff] }
  0x3b   : > { %540 = vst [vmem:[%s3391_s27 + $0x158] sm:$0xff] %v539_v43  ;;  %v667_v43 = vld [vmem:[%s3386_s26 + $0x558] sm:$0xff] }
  0x3c   : > { %542 = vst [vmem:[%s3391_s27 + $0x160] sm:$0xff] %v541_v44  ;;  %v669_v44 = vld [vmem:[%s3386_s26 + $0x560] sm:$0xff] }
  0x3d   : > { %544 = vst [vmem:[%s3391_s27 + $0x168] sm:$0xff] %v543_v45  ;;  %v671_v45 = vld [vmem:[%s3386_s26 + $0x568] sm:$0xff] }
  0x3e   : > { %546 = vst [vmem:[%s3391_s27 + $0x170] sm:$0xff] %v545_v46  ;;  %v673_v46 = vld [vmem:[%s3386_s26 + $0x570] sm:$0xff] }
  0x3f   : > { %548 = vst [vmem:[%s3391_s27 + $0x178] sm:$0xff] %v547_v47  ;;  %v675_v47 = vld [vmem:[%s3386_s26 + $0x578] sm:$0xff] }
  0x40   : > { %550 = vst [vmem:[%s3391_s27 + $0x180] sm:$0xff] %v549_v48  ;;  %v677_v48 = vld [vmem:[%s3386_s26 + $0x580] sm:$0xff] }
  0x41   : > { %552 = vst [vmem:[%s3391_s27 + $0x188] sm:$0xff] %v551_v49  ;;  %v679_v49 = vld [vmem:[%s3386_s26 + $0x588] sm:$0xff] }
  0x42   : > { %554 = vst [vmem:[%s3391_s27 + $0x190] sm:$0xff] %v553_v50  ;;  %v681_v50 = vld [vmem:[%s3386_s26 + $0x590] sm:$0xff] }
  0x43   : > { %556 = vst [vmem:[%s3391_s27 + $0x198] sm:$0xff] %v555_v51  ;;  %v683_v51 = vld [vmem:[%s3386_s26 + $0x598] sm:$0xff] }
  0x44   : > { %558 = vst [vmem:[%s3391_s27 + $0x1a0] sm:$0xff] %v557_v52  ;;  %v685_v52 = vld [vmem:[%s3386_s26 + $0x5a0] sm:$0xff] }
  0x45   : > { %560 = vst [vmem:[%s3391_s27 + $0x1a8] sm:$0xff] %v559_v53  ;;  %v687_v53 = vld [vmem:[%s3386_s26 + $0x5a8] sm:$0xff] }
  0x46   : > { %562 = vst [vmem:[%s3391_s27 + $0x1b0] sm:$0xff] %v561_v54  ;;  %v689_v54 = vld [vmem:[%s3386_s26 + $0x5b0] sm:$0xff] }
  0x47   : > { %564 = vst [vmem:[%s3391_s27 + $0x1b8] sm:$0xff] %v563_v55  ;;  %v691_v55 = vld [vmem:[%s3386_s26 + $0x5b8] sm:$0xff] }
  0x48   : > { %566 = vst [vmem:[%s3391_s27 + $0x1c0] sm:$0xff] %v565_v56  ;;  %v693_v56 = vld [vmem:[%s3386_s26 + $0x5c0] sm:$0xff] }
  0x49   : > { %568 = vst [vmem:[%s3391_s27 + $0x1c8] sm:$0xff] %v567_v57  ;;  %v695_v57 = vld [vmem:[%s3386_s26 + $0x5c8] sm:$0xff] }
  0x4a   : > { %570 = vst [vmem:[%s3391_s27 + $0x1d0] sm:$0xff] %v569_v58  ;;  %v697_v58 = vld [vmem:[%s3386_s26 + $0x5d0] sm:$0xff] }
  0x4b   : > { %572 = vst [vmem:[%s3391_s27 + $0x1d8] sm:$0xff] %v571_v59  ;;  %v699_v59 = vld [vmem:[%s3386_s26 + $0x5d8] sm:$0xff] }
  0x4c   : > { %574 = vst [vmem:[%s3391_s27 + $0x1e0] sm:$0xff] %v573_v60  ;;  %v701_v60 = vld [vmem:[%s3386_s26 + $0x5e0] sm:$0xff] }
  0x4d   : > { %576 = vst [vmem:[%s3391_s27 + $0x1e8] sm:$0xff] %v575_v61  ;;  %v703_v61 = vld [vmem:[%s3386_s26 + $0x5e8] sm:$0xff] }
  0x4e   : > { %578 = vst [vmem:[%s3391_s27 + $0x1f0] sm:$0xff] %v577_v62  ;;  %v705_v62 = vld [vmem:[%s3386_s26 + $0x5f0] sm:$0xff] }
  0x4f   : > { %580 = vst [vmem:[%s3391_s27 + $0x1f8] sm:$0xff] %v579_v63  ;;  %v707_v63 = vld [vmem:[%s3386_s26 + $0x5f8] sm:$0xff] }
  0x50   : > { %582 = vst [vmem:[%s3391_s27 + $0x200] sm:$0xff] %v581_v0 }
  0x51   : > { %584 = vst [vmem:[%s3391_s27 + $0x208] sm:$0xff] %v583_v1 }
  0x52   : > { %586 = vst [vmem:[%s3391_s27 + $0x210] sm:$0xff] %v585_v2 }
  0x53   : > { %588 = vst [vmem:[%s3391_s27 + $0x218] sm:$0xff] %v587_v3 }
  0x54   : > { %590 = vst [vmem:[%s3391_s27 + $0x220] sm:$0xff] %v589_v4 }
  0x55   : > { %592 = vst [vmem:[%s3391_s27 + $0x228] sm:$0xff] %v591_v5 }
  0x56   : > { %594 = vst [vmem:[%s3391_s27 + $0x230] sm:$0xff] %v593_v6 }
  0x57   : > { %596 = vst [vmem:[%s3391_s27 + $0x238] sm:$0xff] %v595_v7 }
  0x58   : > { %598 = vst [vmem:[%s3391_s27 + $0x240] sm:$0xff] %v597_v8 }
  0x59   : > { %600 = vst [vmem:[%s3391_s27 + $0x248] sm:$0xff] %v599_v9 }
  0x5a   : > { %602 = vst [vmem:[%s3391_s27 + $0x250] sm:$0xff] %v601_v10 }
  0x5b   : > { %604 = vst [vmem:[%s3391_s27 + $0x258] sm:$0xff] %v603_v11 }
  0x5c   : > { %606 = vst [vmem:[%s3391_s27 + $0x260] sm:$0xff] %v605_v12 }
  0x5d   : > { %608 = vst [vmem:[%s3391_s27 + $0x268] sm:$0xff] %v607_v13 }
  0x5e   : > { %610 = vst [vmem:[%s3391_s27 + $0x270] sm:$0xff] %v609_v14 }
  0x5f   : > { %612 = vst [vmem:[%s3391_s27 + $0x278] sm:$0xff] %v611_v15 }
  0x60   : > { %614 = vst [vmem:[%s3391_s27 + $0x280] sm:$0xff] %v613_v16 }
  0x61   : > { %616 = vst [vmem:[%s3391_s27 + $0x288] sm:$0xff] %v615_v17 }
  0x62   : > { %618 = vst [vmem:[%s3391_s27 + $0x290] sm:$0xff] %v617_v18 }
  0x63   : > { %620 = vst [vmem:[%s3391_s27 + $0x298] sm:$0xff] %v619_v19 }
  0x64   : > { %622 = vst [vmem:[%s3391_s27 + $0x2a0] sm:$0xff] %v621_v20 }
  0x65   : > { %624 = vst [vmem:[%s3391_s27 + $0x2a8] sm:$0xff] %v623_v21 }
  0x66   : > { %626 = vst [vmem:[%s3391_s27 + $0x2b0] sm:$0xff] %v625_v22 }
  0x67   : > { %628 = vst [vmem:[%s3391_s27 + $0x2b8] sm:$0xff] %v627_v23 }
  0x68   : > { %630 = vst [vmem:[%s3391_s27 + $0x2c0] sm:$0xff] %v629_v24 }
  0x69   : > { %632 = vst [vmem:[%s3391_s27 + $0x2c8] sm:$0xff] %v631_v25 }
  0x6a   : > { %634 = vst [vmem:[%s3391_s27 + $0x2d0] sm:$0xff] %v633_v26 }
  0x6b   : > { %636 = vst [vmem:[%s3391_s27 + $0x2d8] sm:$0xff] %v635_v27 }
  0x6c   : > { %638 = vst [vmem:[%s3391_s27 + $0x2e0] sm:$0xff] %v637_v28 }
  0x6d   : > { %640 = vst [vmem:[%s3391_s27 + $0x2e8] sm:$0xff] %v639_v29 }
  0x6e   : > { %642 = vst [vmem:[%s3391_s27 + $0x2f0] sm:$0xff] %v641_v30 }
  0x6f   : > { %644 = vst [vmem:[%s3391_s27 + $0x2f8] sm:$0xff] %v643_v31 }
  0x70   : > { %646 = vst [vmem:[%s3391_s27 + $0x300] sm:$0xff] %v645_v32 }
  0x71   : > { %648 = vst [vmem:[%s3391_s27 + $0x308] sm:$0xff] %v647_v33 }
  0x72   : > { %650 = vst [vmem:[%s3391_s27 + $0x310] sm:$0xff] %v649_v34 }
  0x73   : > { %652 = vst [vmem:[%s3391_s27 + $0x318] sm:$0xff] %v651_v35 }
  0x74   : > { %654 = vst [vmem:[%s3391_s27 + $0x320] sm:$0xff] %v653_v36 }
  0x75   : > { %656 = vst [vmem:[%s3391_s27 + $0x328] sm:$0xff] %v655_v37 }
  0x76   : > { %658 = vst [vmem:[%s3391_s27 + $0x330] sm:$0xff] %v657_v38 }
  0x77   : > { %660 = vst [vmem:[%s3391_s27 + $0x338] sm:$0xff] %v659_v39 }
  0x78   : > { %662 = vst [vmem:[%s3391_s27 + $0x340] sm:$0xff] %v661_v40 }
  0x79   : > { %664 = vst [vmem:[%s3391_s27 + $0x348] sm:$0xff] %v663_v41 }
  0x7a   : > { %666 = vst [vmem:[%s3391_s27 + $0x350] sm:$0xff] %v665_v42 }
  0x7b   : > { %668 = vst [vmem:[%s3391_s27 + $0x358] sm:$0xff] %v667_v43 }
  0x7c   : > { %670 = vst [vmem:[%s3391_s27 + $0x360] sm:$0xff] %v669_v44 }
  0x7d   : > { %672 = vst [vmem:[%s3391_s27 + $0x368] sm:$0xff] %v671_v45 }
  0x7e   : > { %674 = vst [vmem:[%s3391_s27 + $0x370] sm:$0xff] %v673_v46 }
  0x7f   : > { %676 = vst [vmem:[%s3391_s27 + $0x378] sm:$0xff] %v675_v47 }
  0x80   : > { %678 = vst [vmem:[%s3391_s27 + $0x380] sm:$0xff] %v677_v48 }
  0x81   : > { %680 = vst [vmem:[%s3391_s27 + $0x388] sm:$0xff] %v679_v49 }
  0x82   : > { %682 = vst [vmem:[%s3391_s27 + $0x390] sm:$0xff] %v681_v50 }
  0x83   : > { %684 = vst [vmem:[%s3391_s27 + $0x398] sm:$0xff] %v683_v51 }
  0x84   : > { %686 = vst [vmem:[%s3391_s27 + $0x3a0] sm:$0xff] %v685_v52 }
  0x85   : > { %688 = vst [vmem:[%s3391_s27 + $0x3a8] sm:$0xff] %v687_v53 }
  0x86   : > { %690 = vst [vmem:[%s3391_s27 + $0x3b0] sm:$0xff] %v689_v54 }
  0x87   : > { %692 = vst [vmem:[%s3391_s27 + $0x3b8] sm:$0xff] %v691_v55 }
  0x88   : > { %694 = vst [vmem:[%s3391_s27 + $0x3c0] sm:$0xff] %v693_v56 }
  0x89   : > { %696 = vst [vmem:[%s3391_s27 + $0x3c8] sm:$0xff] %v695_v57 }
  0x8a   : > { %698 = vst [vmem:[%s3391_s27 + $0x3d0] sm:$0xff] %v697_v58 }
  0x8b   : > { %700 = vst [vmem:[%s3391_s27 + $0x3d8] sm:$0xff] %v699_v59 }
  0x8c   : > { %702 = vst [vmem:[%s3391_s27 + $0x3e0] sm:$0xff] %v701_v60 }
  0x8d   : > { %704 = vst [vmem:[%s3391_s27 + $0x3e8] sm:$0xff] %v703_v61 }
  0x8e   : > { %706 = vst [vmem:[%s3391_s27 + $0x3f0] sm:$0xff] %v705_v62 }
  0x8f   : > { %708 = vst [vmem:[%s3391_s27 + $0x3f8] sm:$0xff] %v707_v63 }
  0x90 PF: > { %p2833_p6 = scmp.ge.s32.totalorder %s3320_s16, 1  ;;  %p713_p7 = scmp.lt.s32.totalorder %s3320_s16, 3 }
  0x92   : > { %p714_p8 = pnand %p2833_p6, %p713_p7 }
  0x93   : > { %s720_s28 = sand.u32 (!%p714_p8), 1, %s3304_s12   ;;  %p2835_p9 = scmp.ne.s32.totalorder (!%p714_p8), %s3312_s14, 0 }
  0x94   : > { %717 = sbr.rel (%p714_p8) target bundleno = 866 (0x362), region = 66  ;;  %s2834_s29 = sshll.u32 (!%p714_p8), %s720_s28, 10 }
  0x95   : > { %s3649_s30 = scalar_lea.vmem (!%p714_p8), [#allocation4], %s2834_s29 }
  0x99   : > { %769 = sbr.rel (%p2835_p9) target bundleno = 163 (0xa3), region = 74 }
  0x9e   : > { %v3322_v0 = vmov 0.0  }
  0x9f   : > { %770 = vst [vmem:[#allocation2] sm:$0x1] %v3322_v0 }
  0xa0   : > { %771 = vst [vmem:[#allocation2 + $0x1] sm:$0x1] %v3322_v0 }
  0xa1   : > { %772 = vst [vmem:[#allocation3] sm:$0x1] %v3322_v0 }
  0xa2   : > { %773 = vst [vmem:[#allocation3 + $0x1] sm:$0x1] %v3322_v0 }
  0xa3 PF: > { %v2838_v1 = vld [vmem:[%s4276_s1] sm:$0xf]  ;;  %v2978_v2 = vld [vmem:[%s4276_s1 + $0x4] sm:$0xf0]  ;;  %v775_v5 = vld [vmem:[%s3649_s30 + $0x8] sm:$0xff]  ;;  %vm984_vm0 = vcmask 130048  }
  0xa4   : > { %v774_v3 = vld [vmem:[%s3649_s30] sm:$0xff]  ;;  %v2839_v4 = vor.u32 %v2978_v2, %v2838_v1  ;;  %v839_v7 = vld [vmem:[%s3649_s30 + $0x208] sm:$0xff]  ;;  %v776_v13 = vld [vmem:[%s3649_s30 + $0x10] sm:$0xff]  ;;  %p2972_p10 = scmp.ne.s32.totalorder %s3312_s14, 1 }
  0xa5   : > { %v838_v6 = vld [vmem:[%s3649_s30 + $0x200] sm:$0xff]  ;;  %v902_v8 = vpack.c.bf16 %v775_v5, %v774_v3  ;;  %v2840_v11 = vld [vmem:[%s4276_s1 + $0x8] sm:$0xf0]  ;;  %v777_v14 = vld [vmem:[%s3649_s30 + $0x18] sm:$0xff] }
  0xa6   : > { %v934_v9 = vpack.c.bf16 %v839_v7, %v838_v6  ;;  %v2977_v10 = vld [vmem:[%s4276_s1 + $0x4] sm:$0xf]  ;;  %1184 = vmatpush.bf16.msra.mxu0 %v2839_v4  ;;  %2979 = vmatpush.bf16.msra.mxu2 %v2839_v4  ;;  %v840_v15 = vld [vmem:[%s3649_s30 + $0x210] sm:$0xff]  ;;  %v841_v16 = vld [vmem:[%s3649_s30 + $0x218] sm:$0xff]  ;;  %v903_v17 = vpack.c.bf16 %v777_v14, %v776_v13 }
  0xa7   : > { %v2843_v12 = vor.u32 %v2977_v10, %v2840_v11  ;;  %v935_v18 = vpack.c.bf16 %v841_v16, %v840_v15  ;;  %v778_v19 = vld [vmem:[%s3649_s30 + $0x20] sm:$0xff]  ;;  %v779_v20 = vld [vmem:[%s3649_s30 + $0x28] sm:$0xff]  ;;  %v780_v25 = vld [vmem:[%s3649_s30 + $0x30] sm:$0xff] }
  0xa8   : > { %v842_v21 = vld [vmem:[%s3649_s30 + $0x220] sm:$0xff]  ;;  %v843_v22 = vld [vmem:[%s3649_s30 + $0x228] sm:$0xff]  ;;  %v904_v23 = vpack.c.bf16 %v779_v20, %v778_v19  ;;  %v781_v26 = vld [vmem:[%s3649_s30 + $0x38] sm:$0xff] }
  0xa9   : > { %2980 = vmatpush.bf16.msra.mxu3 %v2843_v12  ;;  %1513 = vmatpush.bf16.msra.mxu1 %v2843_v12  ;;  %v936_v24 = vpack.c.bf16 %v843_v22, %v842_v21  ;;  %v844_v27 = vld [vmem:[%s3649_s30 + $0x230] sm:$0xff]  ;;  %v845_v28 = vld [vmem:[%s3649_s30 + $0x238] sm:$0xff]  ;;  %v905_v29 = vpack.c.bf16 %v781_v26, %v780_v25  ;;  %v782_v31 = vld [vmem:[%s3649_s30 + $0x40] sm:$0xff] }
  0xaa   : > { %2844 = vmatmul.msk.bf16.vlgmr.msra.gmra.mxu0 %vm984_vm0, %v902_v8  ;;  %2876 = vmatmul.msk.bf16.vlgmr.msra.gmra.mxu2 %vm984_vm0, %v934_v9  ;;  %v937_v30 = vpack.c.bf16 %v845_v28, %v844_v27  ;;  %v783_v32 = vld [vmem:[%s3649_s30 + $0x48] sm:$0xff]  ;;  %v846_v33 = vld [vmem:[%s3649_s30 + $0x240] sm:$0xff]  ;;  %v784_v37 = vld [vmem:[%s3649_s30 + $0x50] sm:$0xff] }
  0xab   : > { %v847_v34 = vld [vmem:[%s3649_s30 + $0x248] sm:$0xff]  ;;  %v906_v35 = vpack.c.bf16 %v783_v32, %v782_v31  ;;  %v785_v38 = vld [vmem:[%s3649_s30 + $0x58] sm:$0xff]  ;;  %v848_v39 = vld [vmem:[%s3649_s30 + $0x250] sm:$0xff] }
  0xac   : > { %2940 = vmatmul.msk.bf16.vlgmr.msra.gmra.mxu3 %vm984_vm0, %v934_v9  ;;  %2908 = vmatmul.msk.bf16.vlgmr.msra.gmra.mxu1 %vm984_vm0, %v902_v8  ;;  %v938_v36 = vpack.c.bf16 %v847_v34, %v846_v33  ;;  %v849_v40 = vld [vmem:[%s3649_s30 + $0x258] sm:$0xff]  ;;  %v907_v41 = vpack.c.bf16 %v785_v38, %v784_v37  ;;  %v786_v43 = vld [vmem:[%s3649_s30 + $0x60] sm:$0xff]  ;;  %v787_v44 = vld [vmem:[%s3649_s30 + $0x68] sm:$0xff] }
  0xad   : > { %v939_v42 = vpack.c.bf16 %v849_v40, %v848_v39  ;;  %v850_v45 = vld [vmem:[%s3649_s30 + $0x260] sm:$0xff]  ;;  %v851_v46 = vld [vmem:[%s3649_s30 + $0x268] sm:$0xff]  ;;  %v908_v47 = vpack.c.bf16 %v787_v44, %v786_v43  ;;  %v788_v49 = vld [vmem:[%s3649_s30 + $0x70] sm:$0xff] }
  0xae   : > { %v940_v48 = vpack.c.bf16 %v851_v46, %v850_v45  ;;  %v789_v50 = vld [vmem:[%s3649_s30 + $0x78] sm:$0xff]  ;;  %v852_v51 = vld [vmem:[%s3649_s30 + $0x270] sm:$0xff]  ;;  %v790_v55 = vld [vmem:[%s3649_s30 + $0x80] sm:$0xff] }
  0xaf   : > { %v853_v52 = vld [vmem:[%s3649_s30 + $0x278] sm:$0xff]  ;;  %v909_v53 = vpack.c.bf16 %v789_v50, %v788_v49  ;;  %v791_v56 = vld [vmem:[%s3649_s30 + $0x88] sm:$0xff]  ;;  %v854_v57 = vld [vmem:[%s3649_s30 + $0x280] sm:$0xff] }
  0xb0   : > { %v941_v54 = vpack.c.bf16 %v853_v52, %v852_v51  ;;  %v855_v58 = vld [vmem:[%s3649_s30 + $0x288] sm:$0xff]  ;;  %v968_v59 = vld [vmem:[%s4277_s2] sm:$0x3]  ;;  %v910_v60 = vpack.c.bf16 %v791_v56, %v790_v55  ;;  %v792_v10 = vld [vmem:[%s3649_s30 + $0x90] sm:$0xff] }
  0xb1   : > { %v942_v61 = vpack.c.bf16 %v855_v58, %v854_v57  ;;  %v3735_v63 = vperm.slane %v968_v59, 0  ;;  %v793_v11 = vld [vmem:[%s3649_s30 + $0x98] sm:$0xff]  ;;  %v856_v12 = vld [vmem:[%s3649_s30 + $0x290] sm:$0xff]  ;;  %v3747_v16 = vperm.slane %v968_v59, 1  ;;  %v795_v43 = vld [vmem:[%s3649_s30 + $0xa8] sm:$0xff] }
  0xb2   : > { %v857_v13 = vld [vmem:[%s3649_s30 + $0x298] sm:$0xff] }
  0xb3   : > { %v943_v21 = vpack.c.bf16 %v857_v13, %v856_v12 }
  0xba   : > { %2845 = vmatmul.msk.bf16.gmra.mxu0 %vm984_vm0, %v903_v17  ;;  %2877 = vmatmul.msk.bf16.gmra.mxu2 %vm984_vm0, %v935_v18 }
  0xbc   : > { %2941 = vmatmul.msk.bf16.gmra.mxu3 %vm984_vm0, %v935_v18  ;;  %2909 = vmatmul.msk.bf16.gmra.mxu1 %vm984_vm0, %v903_v17  ;;  %v911_v18 = vpack.c.bf16 %v793_v11, %v792_v10 }
  0xca   : > { %2846 = vmatmul.msk.bf16.gmra.mxu0 %vm984_vm0, %v904_v23  ;;  %2878 = vmatmul.msk.bf16.gmra.mxu2 %vm984_vm0, %v936_v24 }
  0xcc   : > { %2942 = vmatmul.msk.bf16.gmra.mxu3 %vm984_vm0, %v936_v24  ;;  %2910 = vmatmul.msk.bf16.gmra.mxu1 %vm984_vm0, %v904_v23 }
  0xda   : > { %2847 = vmatmul.msk.bf16.gmra.mxu0 %vm984_vm0, %v905_v29  ;;  %2879 = vmatmul.msk.bf16.gmra.mxu2 %vm984_vm0, %v937_v30 }
  0xdc   : > { %2943 = vmatmul.msk.bf16.gmra.mxu3 %vm984_vm0, %v937_v30  ;;  %2911 = vmatmul.msk.bf16.gmra.mxu1 %vm984_vm0, %v905_v29 }
  0xea   : > { %2848 = vmatmul.msk.bf16.gmra.mxu0 %vm984_vm0, %v906_v35  ;;  %2880 = vmatmul.msk.bf16.gmra.mxu2 %vm984_vm0, %v938_v36 }
  0xec   : > { %2944 = vmatmul.msk.bf16.gmra.mxu3 %vm984_vm0, %v938_v36  ;;  %2912 = vmatmul.msk.bf16.gmra.mxu1 %vm984_vm0, %v906_v35 }
  0xfa   : > { %2849 = vmatmul.msk.bf16.gmra.mxu0 %vm984_vm0, %v907_v41  ;;  %2881 = vmatmul.msk.bf16.gmra.mxu2 %vm984_vm0, %v939_v42 }
  0xfc   : > { %2945 = vmatmul.msk.bf16.gmra.mxu3 %vm984_vm0, %v939_v42  ;;  %2913 = vmatmul.msk.bf16.gmra.mxu1 %vm984_vm0, %v907_v41  ;;  %v794_v42 = vld [vmem:[%s3649_s30 + $0xa0] sm:$0xff] }
 0x10a   : > { %2850 = vmatmul.msk.bf16.gmra.mxu0 %vm984_vm0, %v908_v47  ;;  %2882 = vmatmul.msk.bf16.gmra.mxu2 %vm984_vm0, %v940_v48 }
 0x10c   : > { %2946 = vmatmul.msk.bf16.gmra.mxu3 %vm984_vm0, %v940_v48  ;;  %2914 = vmatmul.msk.bf16.gmra.mxu1 %vm984_vm0, %v908_v47  ;;  %v858_v47 = vld [vmem:[%s3649_s30 + $0x2a0] sm:$0xff]  ;;  %v859_v48 = vld [vmem:[%s3649_s30 + $0x2a8] sm:$0xff] }
 0x11a   : > { %2851 = vmatmul.msk.bf16.gmra.mxu0 %vm984_vm0, %v909_v53  ;;  %2883 = vmatmul.msk.bf16.gmra.mxu2 %vm984_vm0, %v941_v54 }
 0x11c   : > { %2947 = vmatmul.msk.bf16.gmra.mxu3 %vm984_vm0, %v941_v54  ;;  %2915 = vmatmul.msk.bf16.gmra.mxu1 %vm984_vm0, %v909_v53  ;;  %v912_v54 = vpack.c.bf16 %v795_v43, %v794_v42 }
 0x127   : > { %v1186_v62 = vpop.f32.mrf.mxu0 }
 0x128   : > { %v1187_v1 = vadd.f32 %v1186_v62, %v3735_v63 }
 0x129   : > { %v1515_v0 = vpop.f32.mrf.mxu1 }
 0x12a   : > { %2852 = vmatmul.msk.bf16.gmra.mxu0 %vm984_vm0, %v910_v60  ;;  %2884 = vmatmul.msk.bf16.gmra.mxu2 %vm984_vm0, %v942_v61  ;;  %v1516_v25 = vadd.f32 %v1515_v0, %v3747_v16 }
 0x12c   : > { %2948 = vmatmul.msk.bf16.gmra.mxu3 %vm984_vm0, %v942_v61  ;;  %2916 = vmatmul.msk.bf16.gmra.mxu1 %vm984_vm0, %v910_v60  ;;  %v944_v60 = vpack.c.bf16 %v859_v48, %v858_v47 }
 0x12d   : > { %v1346_v2 = vpop.f32.mrf.mxu2 }
 0x12e   : > { %v1347_v3 = vadd.f32 %v1346_v2, %v3735_v63 }
 0x12f   : > { %v1188_v4 = vpop.f32.mrf.mxu0  ;;  %v1675_v5 = vpop.f32.mrf.mxu3 }
 0x130   : > { %v1835_v6 = vmax.f32 %v1187_v1, %v1347_v3  ;;  %v1189_v19 = vadd.f32 %v1188_v4, %v3735_v63  ;;  %v1676_v27 = vadd.f32 %v1675_v5, %v3747_v16 }
 0x131   : > { %v1517_v7 = vpop.f32.mrf.mxu1 }
 0x132   : > { %v1899_v8 = vsub.f32 %v1187_v1, %v1835_v6  ;;  %v1963_v9 = vsub.f32 %v1347_v3, %v1835_v6  ;;  %v1518_v49 = vadd.f32 %v1517_v7, %v3747_v16 }
 0x134   : > { %v2027_v14 = vmul.f32 1.442695, %v1899_v8  ;;  %v2155_v15 = vmul.f32 1.442695, %v1963_v9 }
 0x135   : > { %v1348_v17 = vpop.f32.mrf.mxu2 }
 0x136   : > { %3022 = vpow2.f32 %v2027_v14  ;;  %v1349_v20 = vadd.f32 %v1348_v17, %v3735_v63 }
 0x137   : > { %3024 = vpow2.f32 %v2155_v15  ;;  %v1191_v22 = vpop.f32.mrf.mxu0  ;;  %v1677_v23 = vpop.f32.mrf.mxu3 }
 0x138   : > { %v1836_v24 = vmax.f32 %v1189_v19, %v1349_v20  ;;  %v1192_v33 = vadd.f32 %v1191_v22, %v3735_v63  ;;  %v1678_v51 = vadd.f32 %v1677_v23, %v3747_v16 }
 0x139   : > { %v1520_v26 = vpop.f32.mrf.mxu1 }
 0x13a   : > { %v1900_v28 = vsub.f32 %v1189_v19, %v1836_v24  ;;  %v1964_v29 = vsub.f32 %v1349_v20, %v1836_v24  ;;  %2853 = vmatmul.msk.bf16.gmra.mxu0 %vm984_vm0, %v911_v18  ;;  %2885 = vmatmul.msk.bf16.gmra.mxu2 %vm984_vm0, %v943_v21  ;;  %v1521_v6 = vadd.f32 %v1520_v26, %v3747_v16 }
 0x13c   : > { %v3023_v30 = vpop.eup %3022  ;;  %v2029_v31 = vmul.f32 1.442695, %v1900_v28  ;;  %v2157_v32 = vmul.f32 1.442695, %v1964_v29  ;;  %2949 = vmatmul.msk.bf16.gmra.mxu3 %vm984_vm0, %v943_v21  ;;  %2917 = vmatmul.msk.bf16.gmra.mxu1 %vm984_vm0, %v911_v18  ;;  %v796_v28 = vld [vmem:[%s3649_s30 + $0xb0] sm:$0xff]  ;;  %v797_v29 = vld [vmem:[%s3649_s30 + $0xb8] sm:$0xff] }
 0x13d   : > { %v3025_v34 = vpop.eup %3024  ;;  %v2285_v35 = vmul.f32 %v3023_v30, %v1516_v25  ;;  %v1351_v36 = vpop.f32.mrf.mxu2 }
 0x13e   : > { %v2349_v37 = vmul.f32 %v3025_v34, %v1676_v27  ;;  %3026 = vpow2.f32 %v2029_v31  ;;  %v1352_v38 = vadd.f32 %v1351_v36, %v3735_v63 }
 0x13f   : > { %3028 = vpow2.f32 %v2157_v32  ;;  %v1193_v39 = vpop.f32.mrf.mxu0  ;;  %v1680_v40 = vpop.f32.mrf.mxu3 }
 0x140   : > { %v1837_v41 = vmax.f32 %v1192_v33, %v1352_v38  ;;  %v1194_v58 = vadd.f32 %v1193_v39, %v3735_v63  ;;  %v1681_v8 = vadd.f32 %v1680_v40, %v3747_v16  ;;  %v913_v40 = vpack.c.bf16 %v797_v29, %v796_v28 }
 0x141   : > { %v1522_v44 = vpop.f32.mrf.mxu1 }
 0x142   : > { %v1901_v45 = vsub.f32 %v1192_v33, %v1837_v41  ;;  %v1965_v46 = vsub.f32 %v1352_v38, %v1837_v41  ;;  %v860_v33 = vld [vmem:[%s3649_s30 + $0x2b0] sm:$0xff] }
 0x144   : > { %v3027_v50 = vpop.eup %3026  ;;  %v2031_v52 = vmul.f32 1.442695, %v1901_v45  ;;  %v2159_v53 = vmul.f32 1.442695, %v1965_v46 }
 0x145   : > { %v3029_v55 = vpop.eup %3028  ;;  %v2557_v56 = vadd.f32 %v3027_v50, %v3023_v30  ;;  %v2286_v57 = vmul.f32 %v3027_v50, %v1518_v49  ;;  %v1353_v59 = vpop.f32.mrf.mxu2 }
 0x146   : > { %v2626_v61 = vadd.f32 %v3029_v55, %v3025_v34  ;;  %v2350_v62 = vmul.f32 %v3029_v55, %v1678_v51  ;;  %3030 = vpow2.f32 %v2031_v52  ;;  %v1354_v0 = vadd.f32 %v1353_v59, %v3735_v63  ;;  %v861_v34 = vld [vmem:[%s3649_s30 + $0x2b8] sm:$0xff] }
 0x147   : > { %v2413_v1 = vadd.f32 %v2286_v57, %v2285_v35  ;;  %3032 = vpow2.f32 %v2159_v53  ;;  %v1196_v2 = vpop.f32.mrf.mxu0  ;;  %v1682_v3 = vpop.f32.mrf.mxu3  ;;  %v1523_v35 = vadd.f32 %v1522_v44, %v3747_v16  ;;  %v945_v47 = vpack.c.bf16 %v861_v34, %v860_v33 }
 0x148   : > { %v2482_v4 = vadd.f32 %v2350_v62, %v2349_v37  ;;  %v1838_v5 = vmax.f32 %v1194_v58, %v1354_v0  ;;  %v1197_v14 = vadd.f32 %v1196_v2, %v3735_v63  ;;  %v1683_v37 = vadd.f32 %v1682_v3, %v3747_v16 }
 0x149   : > { %v1525_v7 = vpop.f32.mrf.mxu1 }
 0x14a   : > { %v1902_v9 = vsub.f32 %v1194_v58, %v1838_v5  ;;  %v1966_v10 = vsub.f32 %v1354_v0, %v1838_v5  ;;  %2854 = vmatmul.msk.bf16.gmra.mxu0 %vm984_vm0, %v912_v54  ;;  %2886 = vmatmul.msk.bf16.gmra.mxu2 %vm984_vm0, %v944_v60  ;;  %v1526_v55 = vadd.f32 %v1525_v7, %v3747_v16 }
 0x14c   : > { %v3031_v11 = vpop.eup %3030  ;;  %v2033_v12 = vmul.f32 1.442695, %v1902_v9  ;;  %v2161_v13 = vmul.f32 1.442695, %v1966_v10  ;;  %2950 = vmatmul.msk.bf16.gmra.mxu3 %vm984_vm0, %v944_v60  ;;  %2918 = vmatmul.msk.bf16.gmra.mxu1 %vm984_vm0, %v912_v54 }
 0x14d   : > { %v3033_v15 = vpop.eup %3032  ;;  %v2558_v17 = vadd.f32 %v3031_v11, %v2557_v56  ;;  %v2287_v18 = vmul.f32 %v3031_v11, %v1521_v6  ;;  %v1356_v19 = vpop.f32.mrf.mxu2 }
 0x14e   : > { %v2627_v20 = vadd.f32 %v3033_v15, %v2626_v61  ;;  %v2351_v21 = vmul.f32 %v3033_v15, %v1681_v8  ;;  %3034 = vpow2.f32 %v2033_v12  ;;  %v1357_v22 = vadd.f32 %v1356_v19, %v3735_v63  ;;  %v862_v19 = vld [vmem:[%s3649_s30 + $0x2c0] sm:$0xff] }
 0x14f   : > { %v2414_v23 = vadd.f32 %v2413_v1, %v2287_v18  ;;  %3036 = vpow2.f32 %v2161_v13  ;;  %v1198_v24 = vpop.f32.mrf.mxu0  ;;  %v1685_v25 = vpop.f32.mrf.mxu3  ;;  %v798_v13 = vld [vmem:[%s3649_s30 + $0xc0] sm:$0xff] }
 0x150   : > { %v2483_v26 = vadd.f32 %v2482_v4, %v2351_v21  ;;  %v1839_v27 = vmax.f32 %v1197_v14, %v1357_v22  ;;  %v1199_v45 = vadd.f32 %v1198_v24, %v3735_v63  ;;  %v1686_v57 = vadd.f32 %v1685_v25, %v3747_v16 }
 0x151   : > { %v1527_v30 = vpop.f32.mrf.mxu1 }
 0x152   : > { %v1903_v31 = vsub.f32 %v1197_v14, %v1839_v27  ;;  %v1967_v32 = vsub.f32 %v1357_v22, %v1839_v27  ;;  %v799_v14 = vld [vmem:[%s3649_s30 + $0xc8] sm:$0xff]  ;;  %v1528_v21 = vadd.f32 %v1527_v30, %v3747_v16 }
 0x154   : > { %v3035_v36 = vpop.eup %3034  ;;  %v2035_v38 = vmul.f32 1.442695, %v1903_v31  ;;  %v2163_v39 = vmul.f32 1.442695, %v1967_v32 }
 0x155   : > { %v3037_v41 = vpop.eup %3036  ;;  %v2559_v42 = vadd.f32 %v3035_v36, %v2558_v17  ;;  %v2288_v43 = vmul.f32 %v3035_v36, %v1523_v35  ;;  %v1358_v46 = vpop.f32.mrf.mxu2 }
 0x156   : > { %v2628_v48 = vadd.f32 %v3037_v41, %v2627_v20  ;;  %v2352_v49 = vmul.f32 %v3037_v41, %v1683_v37  ;;  %3038 = vpow2.f32 %v2035_v38  ;;  %v1359_v50 = vadd.f32 %v1358_v46, %v3735_v63  ;;  %v863_v20 = vld [vmem:[%s3649_s30 + $0x2c8] sm:$0xff] }
 0x157   : > { %v2415_v51 = vadd.f32 %v2414_v23, %v2288_v43  ;;  %3040 = vpow2.f32 %v2163_v39  ;;  %v1201_v44 = vpop.f32.mrf.mxu0  ;;  %v1687_v52 = vpop.f32.mrf.mxu3  ;;  %v946_v33 = vpack.c.bf16 %v863_v20, %v862_v19 }
 0x158   : > { %v2484_v53 = vadd.f32 %v2483_v26, %v2352_v49  ;;  %v1840_v54 = vmax.f32 %v1199_v45, %v1359_v50  ;;  %v1202_v0 = vadd.f32 %v1201_v44, %v3735_v63  ;;  %v1688_v23 = vadd.f32 %v1687_v52, %v3747_v16 }
 0x159   : > { %v1530_v56 = vpop.f32.mrf.mxu1  ;;  %v914_v26 = vpack.c.bf16 %v799_v14, %v798_v13 }
 0x15a   : > { %v1904_v58 = vsub.f32 %v1199_v45, %v1840_v54  ;;  %v1968_v59 = vsub.f32 %v1359_v50, %v1840_v54  ;;  %2855 = vmatmul.msk.bf16.gmra.mxu0 %vm984_vm0, %v913_v40  ;;  %2887 = vmatmul.msk.bf16.gmra.mxu2 %vm984_vm0, %v945_v47  ;;  %v1531_v41 = vadd.f32 %v1530_v56, %v3747_v16 }
 0x15c   : > { %v3039_v60 = vpop.eup %3038  ;;  %v2037_v61 = vmul.f32 1.442695, %v1904_v58  ;;  %v2165_v62 = vmul.f32 1.442695, %v1968_v59  ;;  %2951 = vmatmul.msk.bf16.gmra.mxu3 %vm984_vm0, %v945_v47  ;;  %2919 = vmatmul.msk.bf16.gmra.mxu1 %vm984_vm0, %v913_v40 }
 0x15d   : > { %v3041_v1 = vpop.eup %3040  ;;  %v2560_v2 = vadd.f32 %v3039_v60, %v2559_v42  ;;  %v2289_v3 = vmul.f32 %v3039_v60, %v1526_v55  ;;  %v1361_v4 = vpop.f32.mrf.mxu2 }
 0x15e   : > { %v2629_v5 = vadd.f32 %v3041_v1, %v2628_v48  ;;  %v2353_v6 = vmul.f32 %v3041_v1, %v1686_v57  ;;  %3042 = vpow2.f32 %v2037_v61  ;;  %v1362_v7 = vadd.f32 %v1361_v4, %v3735_v63  ;;  %v864_v4 = vld [vmem:[%s3649_s30 + $0x2d0] sm:$0xff] }
 0x15f   : > { %v2416_v8 = vadd.f32 %v2415_v51, %v2289_v3  ;;  %3044 = vpow2.f32 %v2165_v62  ;;  %v1203_v9 = vpop.f32.mrf.mxu0  ;;  %v1690_v10 = vpop.f32.mrf.mxu3  ;;  %v800_v62 = vld [vmem:[%s3649_s30 + $0xd0] sm:$0xff] }
 0x160   : > { %v2485_v11 = vadd.f32 %v2484_v53, %v2353_v6  ;;  %v1841_v12 = vmax.f32 %v1202_v0, %v1362_v7  ;;  %v1204_v31 = vadd.f32 %v1203_v9, %v3735_v63  ;;  %v1691_v43 = vadd.f32 %v1690_v10, %v3747_v16 }
 0x161   : > { %v1532_v15 = vpop.f32.mrf.mxu1 }
 0x162   : > { %v1905_v17 = vsub.f32 %v1202_v0, %v1841_v12  ;;  %v1969_v18 = vsub.f32 %v1362_v7, %v1841_v12  ;;  %v801_v0 = vld [vmem:[%s3649_s30 + $0xd8] sm:$0xff]  ;;  %v1533_v6 = vadd.f32 %v1532_v15, %v3747_v16 }
 0x164   : > { %v3043_v22 = vpop.eup %3042  ;;  %v2039_v24 = vmul.f32 1.442695, %v1905_v17  ;;  %v2167_v25 = vmul.f32 1.442695, %v1969_v18 }
 0x165   : > { %v3045_v27 = vpop.eup %3044  ;;  %v2561_v28 = vadd.f32 %v3043_v22, %v2560_v2  ;;  %v2290_v29 = vmul.f32 %v3043_v22, %v1528_v21  ;;  %v1363_v32 = vpop.f32.mrf.mxu2 }
 0x166   : > { %v2630_v34 = vadd.f32 %v3045_v27, %v2629_v5  ;;  %v2354_v35 = vmul.f32 %v3045_v27, %v1688_v23  ;;  %3046 = vpow2.f32 %v2039_v24  ;;  %v1364_v36 = vadd.f32 %v1363_v32, %v3735_v63  ;;  %v865_v5 = vld [vmem:[%s3649_s30 + $0x2d8] sm:$0xff] }
 0x167   : > { %v2417_v37 = vadd.f32 %v2416_v8, %v2290_v29  ;;  %3048 = vpow2.f32 %v2167_v25  ;;  %v1206_v30 = vpop.f32.mrf.mxu0  ;;  %v1692_v38 = vpop.f32.mrf.mxu3  ;;  %v947_v19 = vpack.c.bf16 %v865_v5, %v864_v4 }
 0x168   : > { %v2486_v39 = vadd.f32 %v2485_v11, %v2354_v35  ;;  %v1842_v40 = vmax.f32 %v1204_v31, %v1364_v36  ;;  %v1207_v50 = vadd.f32 %v1206_v30, %v3735_v63  ;;  %v1693_v8 = vadd.f32 %v1692_v38, %v3747_v16 }
 0x169   : > { %v1535_v42 = vpop.f32.mrf.mxu1  ;;  %v915_v11 = vpack.c.bf16 %v801_v0, %v800_v62 }
 0x16a   : > { %v1906_v45 = vsub.f32 %v1204_v31, %v1842_v40  ;;  %v1970_v46 = vsub.f32 %v1364_v36, %v1842_v40  ;;  %2856 = vmatmul.msk.bf16.gmra.mxu0 %vm984_vm0, %v914_v26  ;;  %2888 = vmatmul.msk.bf16.gmra.mxu2 %vm984_vm0, %v946_v33  ;;  %v1536_v27 = vadd.f32 %v1535_v42, %v3747_v16 }
 0x16c   : > { %v3047_v47 = vpop.eup %3046  ;;  %v2041_v48 = vmul.f32 1.442695, %v1906_v45  ;;  %v2169_v49 = vmul.f32 1.442695, %v1970_v46  ;;  %2952 = vmatmul.msk.bf16.gmra.mxu3 %vm984_vm0, %v946_v33  ;;  %2920 = vmatmul.msk.bf16.gmra.mxu1 %vm984_vm0, %v914_v26 }
 0x16d   : > { %v3049_v51 = vpop.eup %3048  ;;  %v2562_v44 = vadd.f32 %v3047_v47, %v2561_v28  ;;  %v2291_v52 = vmul.f32 %v3047_v47, %v1531_v41  ;;  %v1366_v53 = vpop.f32.mrf.mxu2 }
 0x16e   : > { %v2631_v54 = vadd.f32 %v3049_v51, %v2630_v34  ;;  %v2355_v55 = vmul.f32 %v3049_v51, %v1691_v43  ;;  %3050 = vpow2.f32 %v2041_v48  ;;  %v1367_v56 = vadd.f32 %v1366_v53, %v3735_v63  ;;  %v866_v53 = vld [vmem:[%s3649_s30 + $0x2e0] sm:$0xff] }
 0x16f   : > { %v2418_v57 = vadd.f32 %v2417_v37, %v2291_v52  ;;  %3052 = vpow2.f32 %v2169_v49  ;;  %v1208_v58 = vpop.f32.mrf.mxu0  ;;  %v1695_v59 = vpop.f32.mrf.mxu3  ;;  %v802_v49 = vld [vmem:[%s3649_s30 + $0xe0] sm:$0xff] }
 0x170   : > { %v2487_v60 = vadd.f32 %v2486_v39, %v2355_v55  ;;  %v1843_v61 = vmax.f32 %v1207_v50, %v1367_v56  ;;  %v1209_v17 = vadd.f32 %v1208_v58, %v3735_v63  ;;  %v1696_v29 = vadd.f32 %v1695_v59, %v3747_v16 }
 0x171   : > { %v1537_v1 = vpop.f32.mrf.mxu1 }
 0x172   : > { %v1907_v2 = vsub.f32 %v1207_v50, %v1843_v61  ;;  %v1971_v3 = vsub.f32 %v1367_v56, %v1843_v61  ;;  %v803_v50 = vld [vmem:[%s3649_s30 + $0xe8] sm:$0xff]  ;;  %v1538_v55 = vadd.f32 %v1537_v1, %v3747_v16 }
 0x174   : > { %v3051_v7 = vpop.eup %3050  ;;  %v2043_v9 = vmul.f32 1.442695, %v1907_v2  ;;  %v2171_v10 = vmul.f32 1.442695, %v1971_v3 }
 0x175   : > { %v3053_v12 = vpop.eup %3052  ;;  %v2563_v13 = vadd.f32 %v3051_v7, %v2562_v44  ;;  %v2292_v14 = vmul.f32 %v3051_v7, %v1533_v6  ;;  %v1368_v18 = vpop.f32.mrf.mxu2 }
 0x176   : > { %v2632_v20 = vadd.f32 %v3053_v12, %v2631_v54  ;;  %v2356_v21 = vmul.f32 %v3053_v12, %v1693_v8  ;;  %3054 = vpow2.f32 %v2043_v9  ;;  %v1369_v22 = vadd.f32 %v1368_v18, %v3735_v63  ;;  %v867_v54 = vld [vmem:[%s3649_s30 + $0x2e8] sm:$0xff] }
 0x177   : > { %v2419_v23 = vadd.f32 %v2418_v57, %v2292_v14  ;;  %3056 = vpow2.f32 %v2171_v10  ;;  %v1211_v15 = vpop.f32.mrf.mxu0  ;;  %v1697_v24 = vpop.f32.mrf.mxu3  ;;  %v948_v4 = vpack.c.bf16 %v867_v54, %v866_v53 }
 0x178   : > { %v2488_v25 = vadd.f32 %v2487_v60, %v2356_v21  ;;  %v1844_v26 = vmax.f32 %v1209_v17, %v1369_v22  ;;  %v1212_v36 = vadd.f32 %v1211_v15, %v3735_v63  ;;  %v1698_v57 = vadd.f32 %v1697_v24, %v3747_v16 }
 0x179   : > { %v1540_v28 = vpop.f32.mrf.mxu1  ;;  %v916_v60 = vpack.c.bf16 %v803_v50, %v802_v49 }
 0x17a   : > { %v1908_v31 = vsub.f32 %v1209_v17, %v1844_v26  ;;  %v1972_v32 = vsub.f32 %v1369_v22, %v1844_v26  ;;  %2857 = vmatmul.msk.bf16.gmra.mxu0 %vm984_vm0, %v915_v11  ;;  %2889 = vmatmul.msk.bf16.gmra.mxu2 %vm984_vm0, %v947_v19  ;;  %v1541_v12 = vadd.f32 %v1540_v28, %v3747_v16 }
 0x17c   : > { %v3055_v33 = vpop.eup %3054  ;;  %v2045_v34 = vmul.f32 1.442695, %v1908_v31  ;;  %v2173_v35 = vmul.f32 1.442695, %v1972_v32  ;;  %2953 = vmatmul.msk.bf16.gmra.mxu3 %vm984_vm0, %v947_v19  ;;  %2921 = vmatmul.msk.bf16.gmra.mxu1 %vm984_vm0, %v915_v11 }
 0x17d   : > { %v3057_v37 = vpop.eup %3056  ;;  %v2564_v30 = vadd.f32 %v3055_v33, %v2563_v13  ;;  %v2293_v38 = vmul.f32 %v3055_v33, %v1536_v27  ;;  %v1371_v39 = vpop.f32.mrf.mxu2 }
 0x17e   : > { %v2633_v40 = vadd.f32 %v3057_v37, %v2632_v20  ;;  %v2357_v41 = vmul.f32 %v3057_v37, %v1696_v29  ;;  %3058 = vpow2.f32 %v2045_v34  ;;  %v1372_v42 = vadd.f32 %v1371_v39, %v3735_v63  ;;  %v868_v39 = vld [vmem:[%s3649_s30 + $0x2f0] sm:$0xff] }
 0x17f   : > { %v2420_v43 = vadd.f32 %v2419_v23, %v2293_v38  ;;  %3060 = vpow2.f32 %v2173_v35  ;;  %v1213_v45 = vpop.f32.mrf.mxu0  ;;  %v1700_v46 = vpop.f32.mrf.mxu3  ;;  %v804_v35 = vld [vmem:[%s3649_s30 + $0xf0] sm:$0xff] }
 0x180   : > { %v2489_v47 = vadd.f32 %v2488_v25, %v2357_v41  ;;  %v1845_v48 = vmax.f32 %v1212_v36, %v1372_v42  ;;  %v1214_v2 = vadd.f32 %v1213_v45, %v3735_v63  ;;  %v1701_v14 = vadd.f32 %v1700_v46, %v3747_v16 }
 0x181   : > { %v1542_v51 = vpop.f32.mrf.mxu1 }
 0x182   : > { %v1909_v44 = vsub.f32 %v1212_v36, %v1845_v48  ;;  %v1973_v52 = vsub.f32 %v1372_v42, %v1845_v48  ;;  %v805_v36 = vld [vmem:[%s3649_s30 + $0xf8] sm:$0xff]  ;;  %v1543_v41 = vadd.f32 %v1542_v51, %v3747_v16 }
 0x184   : > { %v3059_v56 = vpop.eup %3058  ;;  %v2047_v58 = vmul.f32 1.442695, %v1909_v44  ;;  %v2175_v59 = vmul.f32 1.442695, %v1973_v52 }
 0x185   : > { %v3061_v61 = vpop.eup %3060  ;;  %v2565_v62 = vadd.f32 %v3059_v56, %v2564_v30  ;;  %v2294_v0 = vmul.f32 %v3059_v56, %v1538_v55  ;;  %v1373_v3 = vpop.f32.mrf.mxu2 }
 0x186   : > { %v2634_v5 = vadd.f32 %v3061_v61, %v2633_v40  ;;  %v2358_v6 = vmul.f32 %v3061_v61, %v1698_v57  ;;  %3062 = vpow2.f32 %v2047_v58  ;;  %v1374_v7 = vadd.f32 %v1373_v3, %v3735_v63  ;;  %v869_v40 = vld [vmem:[%s3649_s30 + $0x2f8] sm:$0xff] }
 0x187   : > { %v2421_v8 = vadd.f32 %v2420_v43, %v2294_v0  ;;  %3064 = vpow2.f32 %v2175_v59  ;;  %v1216_v1 = vpop.f32.mrf.mxu0  ;;  %v1702_v9 = vpop.f32.mrf.mxu3  ;;  %v949_v53 = vpack.c.bf16 %v869_v40, %v868_v39 }
 0x188   : > { %v2490_v10 = vadd.f32 %v2489_v47, %v2358_v6  ;;  %v1846_v11 = vmax.f32 %v1214_v2, %v1374_v7  ;;  %v1217_v22 = vadd.f32 %v1216_v1, %v3735_v63  ;;  %v1703_v43 = vadd.f32 %v1702_v9, %v3747_v16 }
 0x189   : > { %v1545_v13 = vpop.f32.mrf.mxu1  ;;  %v917_v47 = vpack.c.bf16 %v805_v36, %v804_v35 }
 0x18a   : > { %v1910_v17 = vsub.f32 %v1214_v2, %v1846_v11  ;;  %v1974_v18 = vsub.f32 %v1374_v7, %v1846_v11  ;;  %2858 = vmatmul.msk.bf16.gmra.mxu0 %vm984_vm0, %v916_v60  ;;  %2890 = vmatmul.msk.bf16.gmra.mxu2 %vm984_vm0, %v948_v4  ;;  %v1546_v61 = vadd.f32 %v1545_v13, %v3747_v16 }
 0x18c   : > { %v3063_v19 = vpop.eup %3062  ;;  %v2049_v20 = vmul.f32 1.442695, %v1910_v17  ;;  %v2177_v21 = vmul.f32 1.442695, %v1974_v18  ;;  %2954 = vmatmul.msk.bf16.gmra.mxu3 %vm984_vm0, %v948_v4  ;;  %2922 = vmatmul.msk.bf16.gmra.mxu1 %vm984_vm0, %v916_v60 }
 0x18d   : > { %v3065_v23 = vpop.eup %3064  ;;  %v2566_v15 = vadd.f32 %v3063_v19, %v2565_v62  ;;  %v2295_v24 = vmul.f32 %v3063_v19, %v1541_v12  ;;  %v1376_v25 = vpop.f32.mrf.mxu2 }
 0x18e   : > { %v2635_v26 = vadd.f32 %v3065_v23, %v2634_v5  ;;  %v2359_v27 = vmul.f32 %v3065_v23, %v1701_v14  ;;  %3066 = vpow2.f32 %v2049_v20  ;;  %v1377_v28 = vadd.f32 %v1376_v25, %v3735_v63  ;;  %v870_v25 = vld [vmem:[%s3649_s30 + $0x300] sm:$0xff] }
 0x18f   : > { %v2422_v29 = vadd.f32 %v2421_v8, %v2295_v24  ;;  %3068 = vpow2.f32 %v2177_v21  ;;  %v1218_v31 = vpop.f32.mrf.mxu0  ;;  %v1705_v32 = vpop.f32.mrf.mxu3  ;;  %v806_v21 = vld [vmem:[%s3649_s30 + $0x100] sm:$0xff] }
 0x190   : > { %v2491_v33 = vadd.f32 %v2490_v10, %v2359_v27  ;;  %v1847_v34 = vmax.f32 %v1217_v22, %v1377_v28  ;;  %v1219_v44 = vadd.f32 %v1218_v31, %v3735_v63  ;;  %v1706_v0 = vadd.f32 %v1705_v32, %v3747_v16 }
 0x191   : > { %v1547_v37 = vpop.f32.mrf.mxu1 }
 0x192   : > { %v1911_v30 = vsub.f32 %v1217_v22, %v1847_v34  ;;  %v1975_v38 = vsub.f32 %v1377_v28, %v1847_v34  ;;  %v807_v22 = vld [vmem:[%s3649_s30 + $0x108] sm:$0xff]  ;;  %v1548_v27 = vadd.f32 %v1547_v37, %v3747_v16 }
 0x194   : > { %v3067_v42 = vpop.eup %3066  ;;  %v2051_v45 = vmul.f32 1.442695, %v1911_v30  ;;  %v2179_v46 = vmul.f32 1.442695, %v1975_v38 }
 0x195   : > { %v3069_v48 = vpop.eup %3068  ;;  %v2567_v49 = vadd.f32 %v3067_v42, %v2566_v15  ;;  %v2296_v50 = vmul.f32 %v3067_v42, %v1543_v41  ;;  %v1378_v52 = vpop.f32.mrf.mxu2 }
 0x196   : > { %v2636_v54 = vadd.f32 %v3069_v48, %v2635_v26  ;;  %v2360_v55 = vmul.f32 %v3069_v48, %v1703_v43  ;;  %3070 = vpow2.f32 %v2051_v45  ;;  %v1379_v56 = vadd.f32 %v1378_v52, %v3735_v63  ;;  %v871_v26 = vld [vmem:[%s3649_s30 + $0x308] sm:$0xff] }
 0x197   : > { %v2423_v57 = vadd.f32 %v2422_v29, %v2296_v50  ;;  %3072 = vpow2.f32 %v2179_v46  ;;  %v1221_v51 = vpop.f32.mrf.mxu0  ;;  %v1707_v58 = vpop.f32.mrf.mxu3  ;;  %v950_v39 = vpack.c.bf16 %v871_v26, %v870_v25 }
 0x198   : > { %v2492_v59 = vadd.f32 %v2491_v33, %v2360_v55  ;;  %v1848_v60 = vmax.f32 %v1219_v44, %v1379_v56  ;;  %v1222_v7 = vadd.f32 %v1221_v51, %v3735_v63  ;;  %v1708_v29 = vadd.f32 %v1707_v58, %v3747_v16 }
 0x199   : > { %v1550_v62 = vpop.f32.mrf.mxu1  ;;  %v918_v33 = vpack.c.bf16 %v807_v22, %v806_v21 }
 0x19a   : > { %v1912_v2 = vsub.f32 %v1219_v44, %v1848_v60  ;;  %v1976_v3 = vsub.f32 %v1379_v56, %v1848_v60  ;;  %2859 = vmatmul.msk.bf16.gmra.mxu0 %vm984_vm0, %v917_v47  ;;  %2891 = vmatmul.msk.bf16.gmra.mxu2 %vm984_vm0, %v949_v53  ;;  %v1551_v48 = vadd.f32 %v1550_v62, %v3747_v16 }
 0x19c   : > { %v3071_v4 = vpop.eup %3070  ;;  %v2053_v5 = vmul.f32 1.442695, %v1912_v2  ;;  %v2181_v6 = vmul.f32 1.442695, %v1976_v3  ;;  %2955 = vmatmul.msk.bf16.gmra.mxu3 %vm984_vm0, %v949_v53  ;;  %2923 = vmatmul.msk.bf16.gmra.mxu1 %vm984_vm0, %v917_v47 }
 0x19d   : > { %v3073_v8 = vpop.eup %3072  ;;  %v2568_v1 = vadd.f32 %v3071_v4, %v2567_v49  ;;  %v2297_v9 = vmul.f32 %v3071_v4, %v1546_v61  ;;  %v1381_v10 = vpop.f32.mrf.mxu2 }
 0x19e   : > { %v2637_v11 = vadd.f32 %v3073_v8, %v2636_v54  ;;  %v2361_v12 = vmul.f32 %v3073_v8, %v1706_v0  ;;  %3074 = vpow2.f32 %v2053_v5  ;;  %v1382_v13 = vadd.f32 %v1381_v10, %v3735_v63  ;;  %v872_v10 = vld [vmem:[%s3649_s30 + $0x310] sm:$0xff] }
 0x19f   : > { %v2424_v14 = vadd.f32 %v2423_v57, %v2297_v9  ;;  %3076 = vpow2.f32 %v2181_v6  ;;  %v1223_v17 = vpop.f32.mrf.mxu0  ;;  %v1710_v18 = vpop.f32.mrf.mxu3  ;;  %v808_v6 = vld [vmem:[%s3649_s30 + $0x110] sm:$0xff] }
 0x1a0   : > { %v2493_v19 = vadd.f32 %v2492_v59, %v2361_v12  ;;  %v1849_v20 = vmax.f32 %v1222_v7, %v1382_v13  ;;  %v1224_v30 = vadd.f32 %v1223_v17, %v3735_v63  ;;  %v1711_v50 = vadd.f32 %v1710_v18, %v3747_v16 }
 0x1a1   : > { %v1552_v23 = vpop.f32.mrf.mxu1 }
 0x1a2   : > { %v1913_v15 = vsub.f32 %v1222_v7, %v1849_v20  ;;  %v1977_v24 = vsub.f32 %v1382_v13, %v1849_v20  ;;  %v809_v7 = vld [vmem:[%s3649_s30 + $0x118] sm:$0xff]  ;;  %v1553_v12 = vadd.f32 %v1552_v23, %v3747_v16 }
 0x1a4   : > { %v3075_v28 = vpop.eup %3074  ;;  %v2055_v31 = vmul.f32 1.442695, %v1913_v15  ;;  %v2183_v32 = vmul.f32 1.442695, %v1977_v24 }
 0x1a5   : > { %v3077_v34 = vpop.eup %3076  ;;  %v2569_v35 = vadd.f32 %v3075_v28, %v2568_v1  ;;  %v2298_v36 = vmul.f32 %v3075_v28, %v1548_v27  ;;  %v1383_v38 = vpop.f32.mrf.mxu2 }
 0x1a6   : > { %v2638_v40 = vadd.f32 %v3077_v34, %v2637_v11  ;;  %v2362_v41 = vmul.f32 %v3077_v34, %v1708_v29  ;;  %3078 = vpow2.f32 %v2055_v31  ;;  %v1384_v42 = vadd.f32 %v1383_v38, %v3735_v63  ;;  %v873_v11 = vld [vmem:[%s3649_s30 + $0x318] sm:$0xff] }
 0x1a7   : > { %v2425_v43 = vadd.f32 %v2424_v14, %v2298_v36  ;;  %3080 = vpow2.f32 %v2183_v32  ;;  %v1226_v37 = vpop.f32.mrf.mxu0  ;;  %v1712_v45 = vpop.f32.mrf.mxu3  ;;  %v951_v25 = vpack.c.bf16 %v873_v11, %v872_v10 }
 0x1a8   : > { %v2494_v46 = vadd.f32 %v2493_v19, %v2362_v41  ;;  %v1850_v47 = vmax.f32 %v1224_v30, %v1384_v42  ;;  %v1227_v56 = vadd.f32 %v1226_v37, %v3735_v63  ;;  %v1713_v14 = vadd.f32 %v1712_v45, %v3747_v16 }
 0x1a9   : > { %v1555_v49 = vpop.f32.mrf.mxu1  ;;  %v919_v19 = vpack.c.bf16 %v809_v7, %v808_v6 }
 0x1aa   : > { %v1914_v44 = vsub.f32 %v1224_v30, %v1850_v47  ;;  %v1978_v52 = vsub.f32 %v1384_v42, %v1850_v47  ;;  %2860 = vmatmul.msk.bf16.gmra.mxu0 %vm984_vm0, %v918_v33  ;;  %2892 = vmatmul.msk.bf16.gmra.mxu2 %vm984_vm0, %v950_v39  ;;  %v1556_v34 = vadd.f32 %v1555_v49, %v3747_v16 }
 0x1ac   : > { %v3079_v53 = vpop.eup %3078  ;;  %v2057_v54 = vmul.f32 1.442695, %v1914_v44  ;;  %v2185_v55 = vmul.f32 1.442695, %v1978_v52  ;;  %2956 = vmatmul.msk.bf16.gmra.mxu3 %vm984_vm0, %v950_v39  ;;  %2924 = vmatmul.msk.bf16.gmra.mxu1 %vm984_vm0, %v918_v33 }
 0x1ad   : > { %v3081_v57 = vpop.eup %3080  ;;  %v2570_v51 = vadd.f32 %v3079_v53, %v2569_v35  ;;  %v2299_v58 = vmul.f32 %v3079_v53, %v1551_v48  ;;  %v1386_v59 = vpop.f32.mrf.mxu2 }
 0x1ae   : > { %v2639_v60 = vadd.f32 %v3081_v57, %v2638_v40  ;;  %v2363_v61 = vmul.f32 %v3081_v57, %v1711_v50  ;;  %3082 = vpow2.f32 %v2057_v54  ;;  %v1387_v62 = vadd.f32 %v1386_v59, %v3735_v63  ;;  %v874_v59 = vld [vmem:[%s3649_s30 + $0x320] sm:$0xff] }
 0x1af   : > { %v2426_v0 = vadd.f32 %v2425_v43, %v2299_v58  ;;  %3084 = vpow2.f32 %v2185_v55  ;;  %v1228_v2 = vpop.f32.mrf.mxu0  ;;  %v1715_v3 = vpop.f32.mrf.mxu3  ;;  %v810_v55 = vld [vmem:[%s3649_s30 + $0x120] sm:$0xff] }
 0x1b0   : > { %v2495_v4 = vadd.f32 %v2494_v46, %v2363_v61  ;;  %v1851_v5 = vmax.f32 %v1227_v56, %v1387_v62  ;;  %v1229_v15 = vadd.f32 %v1228_v2, %v3735_v63  ;;  %v1716_v36 = vadd.f32 %v1715_v3, %v3747_v16 }
 0x1b1   : > { %v1557_v8 = vpop.f32.mrf.mxu1 }
 0x1b2   : > { %v1915_v1 = vsub.f32 %v1227_v56, %v1851_v5  ;;  %v1979_v9 = vsub.f32 %v1387_v62, %v1851_v5  ;;  %v811_v56 = vld [vmem:[%s3649_s30 + $0x128] sm:$0xff]  ;;  %v1558_v61 = vadd.f32 %v1557_v8, %v3747_v16 }
 0x1b4   : > { %v3083_v13 = vpop.eup %3082  ;;  %v2059_v17 = vmul.f32 1.442695, %v1915_v1  ;;  %v2187_v18 = vmul.f32 1.442695, %v1979_v9 }
 0x1b5   : > { %v3085_v20 = vpop.eup %3084  ;;  %v2571_v21 = vadd.f32 %v3083_v13, %v2570_v51  ;;  %v2300_v22 = vmul.f32 %v3083_v13, %v1553_v12  ;;  %v1388_v24 = vpop.f32.mrf.mxu2 }
 0x1b6   : > { %v2640_v26 = vadd.f32 %v3085_v20, %v2639_v60  ;;  %v2364_v27 = vmul.f32 %v3085_v20, %v1713_v14  ;;  %3086 = vpow2.f32 %v2059_v17  ;;  %v1389_v28 = vadd.f32 %v1388_v24, %v3735_v63  ;;  %v875_v60 = vld [vmem:[%s3649_s30 + $0x328] sm:$0xff] }
 0x1b7   : > { %v2427_v29 = vadd.f32 %v2426_v0, %v2300_v22  ;;  %3088 = vpow2.f32 %v2187_v18  ;;  %v1231_v23 = vpop.f32.mrf.mxu0  ;;  %v1717_v31 = vpop.f32.mrf.mxu3  ;;  %v952_v10 = vpack.c.bf16 %v875_v60, %v874_v59 }
 0x1b8   : > { %v2496_v32 = vadd.f32 %v2495_v4, %v2364_v27  ;;  %v1852_v33 = vmax.f32 %v1229_v15, %v1389_v28  ;;  %v1232_v42 = vadd.f32 %v1231_v23, %v3735_v63  ;;  %v1718_v0 = vadd.f32 %v1717_v31, %v3747_v16 }
 0x1b9   : > { %v1560_v35 = vpop.f32.mrf.mxu1  ;;  %v920_v4 = vpack.c.bf16 %v811_v56, %v810_v55 }
 0x1ba   : > { %v1916_v30 = vsub.f32 %v1229_v15, %v1852_v33  ;;  %v1980_v38 = vsub.f32 %v1389_v28, %v1852_v33  ;;  %2861 = vmatmul.msk.bf16.gmra.mxu0 %vm984_vm0, %v919_v19  ;;  %2893 = vmatmul.msk.bf16.gmra.mxu2 %vm984_vm0, %v951_v25  ;;  %v1561_v20 = vadd.f32 %v1560_v35, %v3747_v16 }
 0x1bc   : > { %v3087_v39 = vpop.eup %3086  ;;  %v2061_v40 = vmul.f32 1.442695, %v1916_v30  ;;  %v2189_v41 = vmul.f32 1.442695, %v1980_v38  ;;  %2957 = vmatmul.msk.bf16.gmra.mxu3 %vm984_vm0, %v951_v25  ;;  %2925 = vmatmul.msk.bf16.gmra.mxu1 %vm984_vm0, %v919_v19 }
 0x1bd   : > { %v3089_v43 = vpop.eup %3088  ;;  %v2572_v37 = vadd.f32 %v3087_v39, %v2571_v21  ;;  %v2301_v45 = vmul.f32 %v3087_v39, %v1556_v34  ;;  %v1391_v46 = vpop.f32.mrf.mxu2 }
 0x1be   : > { %v2641_v47 = vadd.f32 %v3089_v43, %v2640_v26  ;;  %v2365_v48 = vmul.f32 %v3089_v43, %v1716_v36  ;;  %3090 = vpow2.f32 %v2061_v40  ;;  %v1392_v49 = vadd.f32 %v1391_v46, %v3735_v63  ;;  %v876_v46 = vld [vmem:[%s3649_s30 + $0x330] sm:$0xff] }
 0x1bf   : > { %v2428_v50 = vadd.f32 %v2427_v29, %v2301_v45  ;;  %3092 = vpow2.f32 %v2189_v41  ;;  %v1233_v44 = vpop.f32.mrf.mxu0  ;;  %v1720_v52 = vpop.f32.mrf.mxu3  ;;  %v812_v41 = vld [vmem:[%s3649_s30 + $0x130] sm:$0xff] }
 0x1c0   : > { %v2497_v53 = vadd.f32 %v2496_v32, %v2365_v48  ;;  %v1853_v54 = vmax.f32 %v1232_v42, %v1392_v49  ;;  %v1234_v1 = vadd.f32 %v1233_v44, %v3735_v63  ;;  %v1721_v22 = vadd.f32 %v1720_v52, %v3747_v16 }
 0x1c1   : > { %v1562_v57 = vpop.f32.mrf.mxu1 }
 0x1c2   : > { %v1917_v51 = vsub.f32 %v1232_v42, %v1853_v54  ;;  %v1981_v58 = vsub.f32 %v1392_v49, %v1853_v54  ;;  %v813_v42 = vld [vmem:[%s3649_s30 + $0x138] sm:$0xff]  ;;  %v1563_v48 = vadd.f32 %v1562_v57, %v3747_v16 }
 0x1c4   : > { %v3091_v62 = vpop.eup %3090  ;;  %v2063_v2 = vmul.f32 1.442695, %v1917_v51  ;;  %v2191_v3 = vmul.f32 1.442695, %v1981_v58 }
 0x1c5   : > { %v3093_v5 = vpop.eup %3092  ;;  %v2573_v6 = vadd.f32 %v3091_v62, %v2572_v37  ;;  %v2302_v7 = vmul.f32 %v3091_v62, %v1558_v61  ;;  %v1393_v9 = vpop.f32.mrf.mxu2 }
 0x1c6   : > { %v2642_v11 = vadd.f32 %v3093_v5, %v2641_v47  ;;  %v2366_v12 = vmul.f32 %v3093_v5, %v1718_v0  ;;  %3094 = vpow2.f32 %v2063_v2  ;;  %v1394_v13 = vadd.f32 %v1393_v9, %v3735_v63  ;;  %v877_v47 = vld [vmem:[%s3649_s30 + $0x338] sm:$0xff] }
 0x1c7   : > { %v2429_v14 = vadd.f32 %v2428_v50, %v2302_v7  ;;  %3096 = vpow2.f32 %v2191_v3  ;;  %v1236_v8 = vpop.f32.mrf.mxu0  ;;  %v1722_v17 = vpop.f32.mrf.mxu3  ;;  %v953_v59 = vpack.c.bf16 %v877_v47, %v876_v46 }
 0x1c8   : > { %v2498_v18 = vadd.f32 %v2497_v53, %v2366_v12  ;;  %v1854_v19 = vmax.f32 %v1234_v1, %v1394_v13  ;;  %v1237_v28 = vadd.f32 %v1236_v8, %v3735_v63  ;;  %v1723_v50 = vadd.f32 %v1722_v17, %v3747_v16 }
 0x1c9   : > { %v1565_v21 = vpop.f32.mrf.mxu1  ;;  %v921_v53 = vpack.c.bf16 %v813_v42, %v812_v41 }
 0x1ca   : > { %v1918_v15 = vsub.f32 %v1234_v1, %v1854_v19  ;;  %v1982_v24 = vsub.f32 %v1394_v13, %v1854_v19  ;;  %2862 = vmatmul.msk.bf16.gmra.mxu0 %vm984_vm0, %v920_v4  ;;  %2894 = vmatmul.msk.bf16.gmra.mxu2 %vm984_vm0, %v952_v10  ;;  %v1566_v5 = vadd.f32 %v1565_v21, %v3747_v16 }
 0x1cc   : > { %v3095_v25 = vpop.eup %3094  ;;  %v2065_v26 = vmul.f32 1.442695, %v1918_v15  ;;  %v2193_v27 = vmul.f32 1.442695, %v1982_v24  ;;  %2958 = vmatmul.msk.bf16.gmra.mxu3 %vm984_vm0, %v952_v10  ;;  %2926 = vmatmul.msk.bf16.gmra.mxu1 %vm984_vm0, %v920_v4 }
 0x1cd   : > { %v3097_v29 = vpop.eup %3096  ;;  %v2574_v23 = vadd.f32 %v3095_v25, %v2573_v6  ;;  %v2303_v31 = vmul.f32 %v3095_v25, %v1561_v20  ;;  %v1396_v32 = vpop.f32.mrf.mxu2 }
 0x1ce   : > { %v2643_v33 = vadd.f32 %v3097_v29, %v2642_v11  ;;  %v2367_v34 = vmul.f32 %v3097_v29, %v1721_v22  ;;  %3098 = vpow2.f32 %v2065_v26  ;;  %v1397_v35 = vadd.f32 %v1396_v32, %v3735_v63  ;;  %v878_v32 = vld [vmem:[%s3649_s30 + $0x340] sm:$0xff] }
 0x1cf   : > { %v2430_v36 = vadd.f32 %v2429_v14, %v2303_v31  ;;  %3100 = vpow2.f32 %v2193_v27  ;;  %v1238_v30 = vpop.f32.mrf.mxu0  ;;  %v1725_v38 = vpop.f32.mrf.mxu3  ;;  %v814_v27 = vld [vmem:[%s3649_s30 + $0x140] sm:$0xff] }
 0x1d0   : > { %v2499_v39 = vadd.f32 %v2498_v18, %v2367_v34  ;;  %v1855_v40 = vmax.f32 %v1237_v28, %v1397_v35  ;;  %v1239_v51 = vadd.f32 %v1238_v30, %v3735_v63  ;;  %v1726_v7 = vadd.f32 %v1725_v38, %v3747_v16 }
 0x1d1   : > { %v1567_v43 = vpop.f32.mrf.mxu1 }
 0x1d2   : > { %v1919_v37 = vsub.f32 %v1237_v28, %v1855_v40  ;;  %v1983_v45 = vsub.f32 %v1397_v35, %v1855_v40  ;;  %v815_v28 = vld [vmem:[%s3649_s30 + $0x148] sm:$0xff]  ;;  %v1568_v34 = vadd.f32 %v1567_v43, %v3747_v16 }
 0x1d4   : > { %v3099_v49 = vpop.eup %3098  ;;  %v2067_v44 = vmul.f32 1.442695, %v1919_v37  ;;  %v2195_v52 = vmul.f32 1.442695, %v1983_v45 }
 0x1d5   : > { %v3101_v54 = vpop.eup %3100  ;;  %v2575_v55 = vadd.f32 %v3099_v49, %v2574_v23  ;;  %v2304_v56 = vmul.f32 %v3099_v49, %v1563_v48  ;;  %v1398_v58 = vpop.f32.mrf.mxu2 }
 0x1d6   : > { %v2644_v60 = vadd.f32 %v3101_v54, %v2643_v33  ;;  %v2368_v61 = vmul.f32 %v3101_v54, %v1723_v50  ;;  %3102 = vpow2.f32 %v2067_v44  ;;  %v1399_v62 = vadd.f32 %v1398_v58, %v3735_v63  ;;  %v879_v33 = vld [vmem:[%s3649_s30 + $0x348] sm:$0xff] }
 0x1d7   : > { %v2431_v0 = vadd.f32 %v2430_v36, %v2304_v56  ;;  %3104 = vpow2.f32 %v2195_v52  ;;  %v1241_v57 = vpop.f32.mrf.mxu0  ;;  %v1727_v2 = vpop.f32.mrf.mxu3  ;;  %v954_v46 = vpack.c.bf16 %v879_v33, %v878_v32 }
 0x1d8   : > { %v2500_v3 = vadd.f32 %v2499_v39, %v2368_v61  ;;  %v1856_v4 = vmax.f32 %v1239_v51, %v1399_v62  ;;  %v1242_v13 = vadd.f32 %v1241_v57, %v3735_v63  ;;  %v1728_v36 = vadd.f32 %v1727_v2, %v3747_v16 }
 0x1d9   : > { %v1570_v6 = vpop.f32.mrf.mxu1  ;;  %v922_v39 = vpack.c.bf16 %v815_v28, %v814_v27 }
 0x1da   : > { %v1920_v1 = vsub.f32 %v1239_v51, %v1856_v4  ;;  %v1984_v9 = vsub.f32 %v1399_v62, %v1856_v4  ;;  %2863 = vmatmul.msk.bf16.gmra.mxu0 %vm984_vm0, %v921_v53  ;;  %2895 = vmatmul.msk.bf16.gmra.mxu2 %vm984_vm0, %v953_v59  ;;  %v1571_v54 = vadd.f32 %v1570_v6, %v3747_v16 }
 0x1dc   : > { %v3103_v10 = vpop.eup %3102  ;;  %v2069_v11 = vmul.f32 1.442695, %v1920_v1  ;;  %v2197_v12 = vmul.f32 1.442695, %v1984_v9  ;;  %2959 = vmatmul.msk.bf16.gmra.mxu3 %vm984_vm0, %v953_v59  ;;  %2927 = vmatmul.msk.bf16.gmra.mxu1 %vm984_vm0, %v921_v53 }
 0x1dd   : > { %v3105_v14 = vpop.eup %3104  ;;  %v2576_v8 = vadd.f32 %v3103_v10, %v2575_v55  ;;  %v2305_v17 = vmul.f32 %v3103_v10, %v1566_v5  ;;  %v1401_v18 = vpop.f32.mrf.mxu2 }
 0x1de   : > { %v2645_v19 = vadd.f32 %v3105_v14, %v2644_v60  ;;  %v2369_v20 = vmul.f32 %v3105_v14, %v1726_v7  ;;  %3106 = vpow2.f32 %v2069_v11  ;;  %v1402_v21 = vadd.f32 %v1401_v18, %v3735_v63  ;;  %v880_v18 = vld [vmem:[%s3649_s30 + $0x350] sm:$0xff] }
 0x1df   : > { %v2432_v22 = vadd.f32 %v2431_v0, %v2305_v17  ;;  %3108 = vpow2.f32 %v2197_v12  ;;  %v1243_v15 = vpop.f32.mrf.mxu0  ;;  %v1730_v24 = vpop.f32.mrf.mxu3  ;;  %v816_v12 = vld [vmem:[%s3649_s30 + $0x150] sm:$0xff] }
 0x1e0   : > { %v2501_v25 = vadd.f32 %v2500_v3, %v2369_v20  ;;  %v1857_v26 = vmax.f32 %v1242_v13, %v1402_v21  ;;  %v1244_v37 = vadd.f32 %v1243_v15, %v3735_v63  ;;  %v1731_v56 = vadd.f32 %v1730_v24, %v3747_v16 }
 0x1e1   : > { %v1572_v29 = vpop.f32.mrf.mxu1 }
 0x1e2   : > { %v1921_v23 = vsub.f32 %v1242_v13, %v1857_v26  ;;  %v1985_v31 = vsub.f32 %v1402_v21, %v1857_v26  ;;  %v817_v13 = vld [vmem:[%s3649_s30 + $0x158] sm:$0xff]  ;;  %v1573_v20 = vadd.f32 %v1572_v29, %v3747_v16 }
 0x1e4   : > { %v3107_v35 = vpop.eup %3106  ;;  %v2071_v30 = vmul.f32 1.442695, %v1921_v23  ;;  %v2199_v38 = vmul.f32 1.442695, %v1985_v31 }
 0x1e5   : > { %v3109_v40 = vpop.eup %3108  ;;  %v2577_v41 = vadd.f32 %v3107_v35, %v2576_v8  ;;  %v2306_v42 = vmul.f32 %v3107_v35, %v1568_v34  ;;  %v1403_v45 = vpop.f32.mrf.mxu2 }
 0x1e6   : > { %v2646_v47 = vadd.f32 %v3109_v40, %v2645_v19  ;;  %v2370_v48 = vmul.f32 %v3109_v40, %v1728_v36  ;;  %3110 = vpow2.f32 %v2071_v30  ;;  %v1404_v49 = vadd.f32 %v1403_v45, %v3735_v63  ;;  %v881_v19 = vld [vmem:[%s3649_s30 + $0x358] sm:$0xff] }
 0x1e7   : > { %v2433_v50 = vadd.f32 %v2432_v22, %v2306_v42  ;;  %3112 = vpow2.f32 %v2199_v38  ;;  %v1246_v43 = vpop.f32.mrf.mxu0  ;;  %v1732_v44 = vpop.f32.mrf.mxu3  ;;  %v955_v32 = vpack.c.bf16 %v881_v19, %v880_v18 }
 0x1e8   : > { %v2502_v52 = vadd.f32 %v2501_v25, %v2370_v48  ;;  %v1858_v53 = vmax.f32 %v1244_v37, %v1404_v49  ;;  %v1247_v62 = vadd.f32 %v1246_v43, %v3735_v63  ;;  %v1733_v22 = vadd.f32 %v1732_v44, %v3747_v16 }
 0x1e9   : > { %v1575_v55 = vpop.f32.mrf.mxu1  ;;  %v923_v25 = vpack.c.bf16 %v817_v13, %v816_v12 }
 0x1ea   : > { %v1922_v51 = vsub.f32 %v1244_v37, %v1858_v53  ;;  %v1986_v58 = vsub.f32 %v1404_v49, %v1858_v53  ;;  %2864 = vmatmul.msk.bf16.gmra.mxu0 %vm984_vm0, %v922_v39  ;;  %2896 = vmatmul.msk.bf16.gmra.mxu2 %vm984_vm0, %v954_v46  ;;  %v1576_v40 = vadd.f32 %v1575_v55, %v3747_v16 }
 0x1ec   : > { %v3111_v59 = vpop.eup %3110  ;;  %v2073_v60 = vmul.f32 1.442695, %v1922_v51  ;;  %v2201_v61 = vmul.f32 1.442695, %v1986_v58  ;;  %2960 = vmatmul.msk.bf16.gmra.mxu3 %vm984_vm0, %v954_v46  ;;  %2928 = vmatmul.msk.bf16.gmra.mxu1 %vm984_vm0, %v922_v39 }
 0x1ed   : > { %v3113_v0 = vpop.eup %3112  ;;  %v2578_v57 = vadd.f32 %v3111_v59, %v2577_v41  ;;  %v2307_v2 = vmul.f32 %v3111_v59, %v1571_v54  ;;  %v1406_v3 = vpop.f32.mrf.mxu2 }
 0x1ee   : > { %v2647_v4 = vadd.f32 %v3113_v0, %v2646_v47  ;;  %v2371_v5 = vmul.f32 %v3113_v0, %v1731_v56  ;;  %3114 = vpow2.f32 %v2073_v60  ;;  %v1407_v6 = vadd.f32 %v1406_v3, %v3735_v63  ;;  %v882_v3 = vld [vmem:[%s3649_s30 + $0x360] sm:$0xff] }
 0x1ef   : > { %v2434_v7 = vadd.f32 %v2433_v50, %v2307_v2  ;;  %3116 = vpow2.f32 %v2201_v61  ;;  %v1248_v1 = vpop.f32.mrf.mxu0  ;;  %v1735_v9 = vpop.f32.mrf.mxu3  ;;  %v818_v61 = vld [vmem:[%s3649_s30 + $0x160] sm:$0xff] }
 0x1f0   : > { %v2503_v10 = vadd.f32 %v2502_v52, %v2371_v5  ;;  %v1859_v11 = vmax.f32 %v1247_v62, %v1407_v6  ;;  %v1249_v23 = vadd.f32 %v1248_v1, %v3735_v63  ;;  %v1736_v42 = vadd.f32 %v1735_v9, %v3747_v16 }
 0x1f1   : > { %v1577_v14 = vpop.f32.mrf.mxu1 }
 0x1f2   : > { %v1923_v8 = vsub.f32 %v1247_v62, %v1859_v11  ;;  %v1987_v17 = vsub.f32 %v1407_v6, %v1859_v11  ;;  %v819_v62 = vld [vmem:[%s3649_s30 + $0x168] sm:$0xff]  ;;  %v1578_v5 = vadd.f32 %v1577_v14, %v3747_v16 }
 0x1f4   : > { %v3115_v21 = vpop.eup %3114  ;;  %v2075_v15 = vmul.f32 1.442695, %v1923_v8  ;;  %v2203_v24 = vmul.f32 1.442695, %v1987_v17 }
 0x1f5   : > { %v3117_v26 = vpop.eup %3116  ;;  %v2579_v27 = vadd.f32 %v3115_v21, %v2578_v57  ;;  %v2308_v28 = vmul.f32 %v3115_v21, %v1573_v20  ;;  %v1408_v31 = vpop.f32.mrf.mxu2 }
 0x1f6   : > { %v2648_v33 = vadd.f32 %v3117_v26, %v2647_v4  ;;  %v2372_v34 = vmul.f32 %v3117_v26, %v1733_v22  ;;  %3118 = vpow2.f32 %v2075_v15  ;;  %v1409_v35 = vadd.f32 %v1408_v31, %v3735_v63  ;;  %v883_v4 = vld [vmem:[%s3649_s30 + $0x368] sm:$0xff] }
 0x1f7   : > { %v2435_v36 = vadd.f32 %v2434_v7, %v2308_v28  ;;  %3120 = vpow2.f32 %v2203_v24  ;;  %v1251_v29 = vpop.f32.mrf.mxu0  ;;  %v1737_v30 = vpop.f32.mrf.mxu3  ;;  %v956_v18 = vpack.c.bf16 %v883_v4, %v882_v3 }
 0x1f8   : > { %v2504_v38 = vadd.f32 %v2503_v10, %v2372_v34  ;;  %v1860_v39 = vmax.f32 %v1249_v23, %v1409_v35  ;;  %v1252_v49 = vadd.f32 %v1251_v29, %v3735_v63  ;;  %v1738_v7 = vadd.f32 %v1737_v30, %v3747_v16 }
 0x1f9   : > { %v1580_v41 = vpop.f32.mrf.mxu1  ;;  %v924_v10 = vpack.c.bf16 %v819_v62, %v818_v61 }
 0x1fa   : > { %v1924_v37 = vsub.f32 %v1249_v23, %v1860_v39  ;;  %v1988_v45 = vsub.f32 %v1409_v35, %v1860_v39  ;;  %2865 = vmatmul.msk.bf16.gmra.mxu0 %vm984_vm0, %v923_v25  ;;  %2897 = vmatmul.msk.bf16.gmra.mxu2 %vm984_vm0, %v955_v32  ;;  %v1581_v26 = vadd.f32 %v1580_v41, %v3747_v16 }
 0x1fc   : > { %v3119_v46 = vpop.eup %3118  ;;  %v2077_v47 = vmul.f32 1.442695, %v1924_v37  ;;  %v2205_v48 = vmul.f32 1.442695, %v1988_v45  ;;  %2961 = vmatmul.msk.bf16.gmra.mxu3 %vm984_vm0, %v955_v32  ;;  %2929 = vmatmul.msk.bf16.gmra.mxu1 %vm984_vm0, %v923_v25 }
 0x1fd   : > { %v3121_v50 = vpop.eup %3120  ;;  %v2580_v43 = vadd.f32 %v3119_v46, %v2579_v27  ;;  %v2309_v44 = vmul.f32 %v3119_v46, %v1576_v40  ;;  %v1411_v52 = vpop.f32.mrf.mxu2 }
 0x1fe   : > { %v2649_v53 = vadd.f32 %v3121_v50, %v2648_v33  ;;  %v2373_v54 = vmul.f32 %v3121_v50, %v1736_v42  ;;  %3122 = vpow2.f32 %v2077_v47  ;;  %v1412_v55 = vadd.f32 %v1411_v52, %v3735_v63  ;;  %v884_v52 = vld [vmem:[%s3649_s30 + $0x370] sm:$0xff] }
 0x1ff   : > { %v2436_v56 = vadd.f32 %v2435_v36, %v2309_v44  ;;  %3124 = vpow2.f32 %v2205_v48  ;;  %v1253_v51 = vpop.f32.mrf.mxu0  ;;  %v1740_v58 = vpop.f32.mrf.mxu3  ;;  %v820_v48 = vld [vmem:[%s3649_s30 + $0x170] sm:$0xff] }
 0x200   : > { %v2505_v59 = vadd.f32 %v2504_v38, %v2373_v54  ;;  %v1861_v60 = vmax.f32 %v1252_v49, %v1412_v55  ;;  %v1254_v8 = vadd.f32 %v1253_v51, %v3735_v63  ;;  %v1741_v28 = vadd.f32 %v1740_v58, %v3747_v16 }
 0x201   : > { %v1582_v0 = vpop.f32.mrf.mxu1 }
 0x202   : > { %v1925_v57 = vsub.f32 %v1252_v49, %v1861_v60  ;;  %v1989_v2 = vsub.f32 %v1412_v55, %v1861_v60  ;;  %v821_v49 = vld [vmem:[%s3649_s30 + $0x178] sm:$0xff]  ;;  %v1583_v54 = vadd.f32 %v1582_v0, %v3747_v16 }
 0x204   : > { %v3123_v6 = vpop.eup %3122  ;;  %v2079_v1 = vmul.f32 1.442695, %v1925_v57  ;;  %v2207_v9 = vmul.f32 1.442695, %v1989_v2 }
 0x205   : > { %v3125_v11 = vpop.eup %3124  ;;  %v2581_v12 = vadd.f32 %v3123_v6, %v2580_v43  ;;  %v2310_v13 = vmul.f32 %v3123_v6, %v1578_v5  ;;  %v1413_v17 = vpop.f32.mrf.mxu2 }
 0x206   : > { %v2650_v19 = vadd.f32 %v3125_v11, %v2649_v53  ;;  %v2374_v20 = vmul.f32 %v3125_v11, %v1738_v7  ;;  %3126 = vpow2.f32 %v2079_v1  ;;  %v1414_v21 = vadd.f32 %v1413_v17, %v3735_v63  ;;  %v885_v53 = vld [vmem:[%s3649_s30 + $0x378] sm:$0xff] }
 0x207   : > { %v2437_v22 = vadd.f32 %v2436_v56, %v2310_v13  ;;  %3128 = vpow2.f32 %v2207_v9  ;;  %v1256_v14 = vpop.f32.mrf.mxu0  ;;  %v1742_v15 = vpop.f32.mrf.mxu3  ;;  %v957_v3 = vpack.c.bf16 %v885_v53, %v884_v52 }
 0x208   : > { %v2506_v24 = vadd.f32 %v2505_v59, %v2374_v20  ;;  %v1862_v25 = vmax.f32 %v1254_v8, %v1414_v21  ;;  %v1257_v35 = vadd.f32 %v1256_v14, %v3735_v63  ;;  %v1743_v56 = vadd.f32 %v1742_v15, %v3747_v16 }
 0x209   : > { %v1585_v27 = vpop.f32.mrf.mxu1  ;;  %v925_v59 = vpack.c.bf16 %v821_v49, %v820_v48 }
 0x20a   : > { %v1926_v23 = vsub.f32 %v1254_v8, %v1862_v25  ;;  %v1990_v31 = vsub.f32 %v1414_v21, %v1862_v25  ;;  %2866 = vmatmul.msk.bf16.gmra.mxu0 %vm984_vm0, %v924_v10  ;;  %2898 = vmatmul.msk.bf16.gmra.mxu2 %vm984_vm0, %v956_v18  ;;  %v1586_v11 = vadd.f32 %v1585_v27, %v3747_v16 }
 0x20c   : > { %v3127_v32 = vpop.eup %3126  ;;  %v2081_v33 = vmul.f32 1.442695, %v1926_v23  ;;  %v2209_v34 = vmul.f32 1.442695, %v1990_v31  ;;  %2962 = vmatmul.msk.bf16.gmra.mxu3 %vm984_vm0, %v956_v18  ;;  %2930 = vmatmul.msk.bf16.gmra.mxu1 %vm984_vm0, %v924_v10 }
 0x20d   : > { %v3129_v36 = vpop.eup %3128  ;;  %v2582_v29 = vadd.f32 %v3127_v32, %v2581_v12  ;;  %v2311_v30 = vmul.f32 %v3127_v32, %v1581_v26  ;;  %v1416_v38 = vpop.f32.mrf.mxu2 }
 0x20e   : > { %v2651_v39 = vadd.f32 %v3129_v36, %v2650_v19  ;;  %v2375_v40 = vmul.f32 %v3129_v36, %v1741_v28  ;;  %3130 = vpow2.f32 %v2081_v33  ;;  %v1417_v41 = vadd.f32 %v1416_v38, %v3735_v63  ;;  %v886_v38 = vld [vmem:[%s3649_s30 + $0x380] sm:$0xff] }
 0x20f   : > { %v2438_v42 = vadd.f32 %v2437_v22, %v2311_v30  ;;  %3132 = vpow2.f32 %v2209_v34  ;;  %v1258_v37 = vpop.f32.mrf.mxu0  ;;  %v1745_v45 = vpop.f32.mrf.mxu3  ;;  %v822_v34 = vld [vmem:[%s3649_s30 + $0x180] sm:$0xff] }
 0x210   : > { %v2507_v46 = vadd.f32 %v2506_v24, %v2375_v40  ;;  %v1863_v47 = vmax.f32 %v1257_v35, %v1417_v41  ;;  %v1259_v57 = vadd.f32 %v1258_v37, %v3735_v63  ;;  %v1746_v13 = vadd.f32 %v1745_v45, %v3747_v16 }
 0x211   : > { %v1587_v50 = vpop.f32.mrf.mxu1 }
 0x212   : > { %v1927_v43 = vsub.f32 %v1257_v35, %v1863_v47  ;;  %v1991_v44 = vsub.f32 %v1417_v41, %v1863_v47  ;;  %v823_v35 = vld [vmem:[%s3649_s30 + $0x188] sm:$0xff]  ;;  %v1588_v40 = vadd.f32 %v1587_v50, %v3747_v16 }
 0x214   : > { %v3131_v55 = vpop.eup %3130  ;;  %v2083_v51 = vmul.f32 1.442695, %v1927_v43  ;;  %v2211_v58 = vmul.f32 1.442695, %v1991_v44 }
 0x215   : > { %v3133_v60 = vpop.eup %3132  ;;  %v2583_v61 = vadd.f32 %v3131_v55, %v2582_v29  ;;  %v2312_v62 = vmul.f32 %v3131_v55, %v1583_v54  ;;  %v1418_v2 = vpop.f32.mrf.mxu2 }
 0x216   : > { %v2652_v4 = vadd.f32 %v3133_v60, %v2651_v39  ;;  %v2376_v5 = vmul.f32 %v3133_v60, %v1743_v56  ;;  %3134 = vpow2.f32 %v2083_v51  ;;  %v1419_v6 = vadd.f32 %v1418_v2, %v3735_v63  ;;  %v887_v39 = vld [vmem:[%s3649_s30 + $0x388] sm:$0xff] }
 0x217   : > { %v2439_v7 = vadd.f32 %v2438_v42, %v2312_v62  ;;  %3136 = vpow2.f32 %v2211_v58  ;;  %v1261_v0 = vpop.f32.mrf.mxu0  ;;  %v1747_v1 = vpop.f32.mrf.mxu3  ;;  %v958_v52 = vpack.c.bf16 %v887_v39, %v886_v38 }
 0x218   : > { %v2508_v9 = vadd.f32 %v2507_v46, %v2376_v5  ;;  %v1864_v10 = vmax.f32 %v1259_v57, %v1419_v6  ;;  %v1262_v21 = vadd.f32 %v1261_v0, %v3735_v63  ;;  %v1748_v42 = vadd.f32 %v1747_v1, %v3747_v16 }
 0x219   : > { %v1590_v12 = vpop.f32.mrf.mxu1  ;;  %v926_v46 = vpack.c.bf16 %v823_v35, %v822_v34 }
 0x21a   : > { %v1928_v8 = vsub.f32 %v1259_v57, %v1864_v10  ;;  %v1992_v17 = vsub.f32 %v1419_v6, %v1864_v10  ;;  %2867 = vmatmul.msk.bf16.gmra.mxu0 %vm984_vm0, %v925_v59  ;;  %2899 = vmatmul.msk.bf16.gmra.mxu2 %vm984_vm0, %v957_v3  ;;  %v1591_v60 = vadd.f32 %v1590_v12, %v3747_v16 }
 0x21c   : > { %v3135_v18 = vpop.eup %3134  ;;  %v2085_v19 = vmul.f32 1.442695, %v1928_v8  ;;  %v2213_v20 = vmul.f32 1.442695, %v1992_v17  ;;  %2963 = vmatmul.msk.bf16.gmra.mxu3 %vm984_vm0, %v957_v3  ;;  %2931 = vmatmul.msk.bf16.gmra.mxu1 %vm984_vm0, %v925_v59 }
 0x21d   : > { %v3137_v22 = vpop.eup %3136  ;;  %v2584_v14 = vadd.f32 %v3135_v18, %v2583_v61  ;;  %v2313_v15 = vmul.f32 %v3135_v18, %v1586_v11  ;;  %v1421_v24 = vpop.f32.mrf.mxu2 }
 0x21e   : > { %v2653_v25 = vadd.f32 %v3137_v22, %v2652_v4  ;;  %v2377_v26 = vmul.f32 %v3137_v22, %v1746_v13  ;;  %3138 = vpow2.f32 %v2085_v19  ;;  %v1422_v27 = vadd.f32 %v1421_v24, %v3735_v63  ;;  %v888_v24 = vld [vmem:[%s3649_s30 + $0x390] sm:$0xff] }
 0x21f   : > { %v2440_v28 = vadd.f32 %v2439_v7, %v2313_v15  ;;  %3140 = vpow2.f32 %v2213_v20  ;;  %v1263_v23 = vpop.f32.mrf.mxu0  ;;  %v1750_v31 = vpop.f32.mrf.mxu3  ;;  %v824_v20 = vld [vmem:[%s3649_s30 + $0x190] sm:$0xff] }
 0x220   : > { %v2509_v32 = vadd.f32 %v2508_v9, %v2377_v26  ;;  %v1865_v33 = vmax.f32 %v1262_v21, %v1422_v27  ;;  %v1264_v43 = vadd.f32 %v1263_v23, %v3735_v63  ;;  %v1751_v62 = vadd.f32 %v1750_v31, %v3747_v16 }
 0x221   : > { %v1592_v36 = vpop.f32.mrf.mxu1 }
 0x222   : > { %v1929_v29 = vsub.f32 %v1262_v21, %v1865_v33  ;;  %v1993_v30 = vsub.f32 %v1422_v27, %v1865_v33  ;;  %v825_v21 = vld [vmem:[%s3649_s30 + $0x198] sm:$0xff]  ;;  %v1593_v26 = vadd.f32 %v1592_v36, %v3747_v16 }
 0x224   : > { %v3139_v41 = vpop.eup %3138  ;;  %v2087_v37 = vmul.f32 1.442695, %v1929_v29  ;;  %v2215_v45 = vmul.f32 1.442695, %v1993_v30 }
 0x225   : > { %v3141_v47 = vpop.eup %3140  ;;  %v2585_v48 = vadd.f32 %v3139_v41, %v2584_v14  ;;  %v2314_v49 = vmul.f32 %v3139_v41, %v1588_v40  ;;  %v1423_v44 = vpop.f32.mrf.mxu2 }
 0x226   : > { %v2654_v53 = vadd.f32 %v3141_v47, %v2653_v25  ;;  %v2378_v54 = vmul.f32 %v3141_v47, %v1748_v42  ;;  %3142 = vpow2.f32 %v2087_v37  ;;  %v1424_v55 = vadd.f32 %v1423_v44, %v3735_v63  ;;  %v889_v25 = vld [vmem:[%s3649_s30 + $0x398] sm:$0xff] }
 0x227   : > { %v2441_v56 = vadd.f32 %v2440_v28, %v2314_v49  ;;  %3144 = vpow2.f32 %v2215_v45  ;;  %v1266_v50 = vpop.f32.mrf.mxu0  ;;  %v1752_v51 = vpop.f32.mrf.mxu3  ;;  %v959_v38 = vpack.c.bf16 %v889_v25, %v888_v24 }
 0x228   : > { %v2510_v58 = vadd.f32 %v2509_v32, %v2378_v54  ;;  %v1866_v59 = vmax.f32 %v1264_v43, %v1424_v55  ;;  %v1267_v6 = vadd.f32 %v1266_v50, %v3735_v63  ;;  %v1753_v28 = vadd.f32 %v1752_v51, %v3747_v16 }
 0x229   : > { %v1595_v61 = vpop.f32.mrf.mxu1  ;;  %v927_v32 = vpack.c.bf16 %v825_v21, %v824_v20 }
 0x22a   : > { %v1930_v57 = vsub.f32 %v1264_v43, %v1866_v59  ;;  %v1994_v2 = vsub.f32 %v1424_v55, %v1866_v59  ;;  %2868 = vmatmul.msk.bf16.gmra.mxu0 %vm984_vm0, %v926_v46  ;;  %2900 = vmatmul.msk.bf16.gmra.mxu2 %vm984_vm0, %v958_v52  ;;  %v1596_v47 = vadd.f32 %v1595_v61, %v3747_v16 }
 0x22c   : > { %v3143_v3 = vpop.eup %3142  ;;  %v2089_v4 = vmul.f32 1.442695, %v1930_v57  ;;  %v2217_v5 = vmul.f32 1.442695, %v1994_v2  ;;  %2964 = vmatmul.msk.bf16.gmra.mxu3 %vm984_vm0, %v958_v52  ;;  %2932 = vmatmul.msk.bf16.gmra.mxu1 %vm984_vm0, %v926_v46 }
 0x22d   : > { %v3145_v7 = vpop.eup %3144  ;;  %v2586_v0 = vadd.f32 %v3143_v3, %v2585_v48  ;;  %v2315_v1 = vmul.f32 %v3143_v3, %v1591_v60  ;;  %v1426_v9 = vpop.f32.mrf.mxu2 }
 0x22e   : > { %v2655_v10 = vadd.f32 %v3145_v7, %v2654_v53  ;;  %v2379_v11 = vmul.f32 %v3145_v7, %v1751_v62  ;;  %3146 = vpow2.f32 %v2089_v4  ;;  %v1427_v12 = vadd.f32 %v1426_v9, %v3735_v63  ;;  %v890_v9 = vld [vmem:[%s3649_s30 + $0x3a0] sm:$0xff] }
 0x22f   : > { %v2442_v13 = vadd.f32 %v2441_v56, %v2315_v1  ;;  %3148 = vpow2.f32 %v2217_v5  ;;  %v1268_v8 = vpop.f32.mrf.mxu0  ;;  %v1755_v17 = vpop.f32.mrf.mxu3  ;;  %v826_v5 = vld [vmem:[%s3649_s30 + $0x1a0] sm:$0xff] }
 0x230   : > { %v2511_v18 = vadd.f32 %v2510_v58, %v2379_v11  ;;  %v1867_v19 = vmax.f32 %v1267_v6, %v1427_v12  ;;  %v1269_v29 = vadd.f32 %v1268_v8, %v3735_v63  ;;  %v1756_v49 = vadd.f32 %v1755_v17, %v3747_v16 }
 0x231   : > { %v1597_v22 = vpop.f32.mrf.mxu1 }
 0x232   : > { %v1931_v14 = vsub.f32 %v1267_v6, %v1867_v19  ;;  %v1995_v15 = vsub.f32 %v1427_v12, %v1867_v19  ;;  %v827_v6 = vld [vmem:[%s3649_s30 + $0x1a8] sm:$0xff]  ;;  %v1598_v11 = vadd.f32 %v1597_v22, %v3747_v16 }
 0x234   : > { %v3147_v27 = vpop.eup %3146  ;;  %v2091_v23 = vmul.f32 1.442695, %v1931_v14  ;;  %v2219_v31 = vmul.f32 1.442695, %v1995_v15 }
 0x235   : > { %v3149_v33 = vpop.eup %3148  ;;  %v2587_v34 = vadd.f32 %v3147_v27, %v2586_v0  ;;  %v2316_v35 = vmul.f32 %v3147_v27, %v1593_v26  ;;  %v1428_v30 = vpop.f32.mrf.mxu2 }
 0x236   : > { %v2656_v39 = vadd.f32 %v3149_v33, %v2655_v10  ;;  %v2380_v40 = vmul.f32 %v3149_v33, %v1753_v28  ;;  %3150 = vpow2.f32 %v2091_v23  ;;  %v1429_v41 = vadd.f32 %v1428_v30, %v3735_v63  ;;  %v891_v10 = vld [vmem:[%s3649_s30 + $0x3a8] sm:$0xff] }
 0x237   : > { %v2443_v42 = vadd.f32 %v2442_v13, %v2316_v35  ;;  %3152 = vpow2.f32 %v2219_v31  ;;  %v1271_v36 = vpop.f32.mrf.mxu0  ;;  %v1757_v37 = vpop.f32.mrf.mxu3  ;;  %v960_v24 = vpack.c.bf16 %v891_v10, %v890_v9 }
 0x238   : > { %v2512_v45 = vadd.f32 %v2511_v18, %v2380_v40  ;;  %v1868_v46 = vmax.f32 %v1269_v29, %v1429_v41  ;;  %v1272_v55 = vadd.f32 %v1271_v36, %v3735_v63  ;;  %v1758_v13 = vadd.f32 %v1757_v37, %v3747_v16 }
 0x239   : > { %v1600_v48 = vpop.f32.mrf.mxu1  ;;  %v928_v18 = vpack.c.bf16 %v827_v6, %v826_v5 }
 0x23a   : > { %v1932_v43 = vsub.f32 %v1269_v29, %v1868_v46  ;;  %v1996_v44 = vsub.f32 %v1429_v41, %v1868_v46  ;;  %2869 = vmatmul.msk.bf16.gmra.mxu0 %vm984_vm0, %v927_v32  ;;  %2901 = vmatmul.msk.bf16.gmra.mxu2 %vm984_vm0, %v959_v38  ;;  %v1601_v33 = vadd.f32 %v1600_v48, %v3747_v16 }
 0x23c   : > { %v3151_v52 = vpop.eup %3150  ;;  %v2093_v53 = vmul.f32 1.442695, %v1932_v43  ;;  %v2221_v54 = vmul.f32 1.442695, %v1996_v44  ;;  %2965 = vmatmul.msk.bf16.gmra.mxu3 %vm984_vm0, %v959_v38  ;;  %2933 = vmatmul.msk.bf16.gmra.mxu1 %vm984_vm0, %v927_v32 }
 0x23d   : > { %v3153_v56 = vpop.eup %3152  ;;  %v2588_v50 = vadd.f32 %v3151_v52, %v2587_v34  ;;  %v2317_v51 = vmul.f32 %v3151_v52, %v1596_v47  ;;  %v1431_v58 = vpop.f32.mrf.mxu2 }
 0x23e   : > { %v2657_v59 = vadd.f32 %v3153_v56, %v2656_v39  ;;  %v2381_v60 = vmul.f32 %v3153_v56, %v1756_v49  ;;  %3154 = vpow2.f32 %v2093_v53  ;;  %v1432_v61 = vadd.f32 %v1431_v58, %v3735_v63  ;;  %v892_v58 = vld [vmem:[%s3649_s30 + $0x3b0] sm:$0xff] }
 0x23f   : > { %v2444_v62 = vadd.f32 %v2443_v42, %v2317_v51  ;;  %3156 = vpow2.f32 %v2221_v54  ;;  %v1273_v57 = vpop.f32.mrf.mxu0  ;;  %v1760_v2 = vpop.f32.mrf.mxu3  ;;  %v828_v54 = vld [vmem:[%s3649_s30 + $0x1b0] sm:$0xff] }
 0x240   : > { %v2513_v3 = vadd.f32 %v2512_v45, %v2381_v60  ;;  %v1869_v4 = vmax.f32 %v1272_v55, %v1432_v61  ;;  %v1274_v14 = vadd.f32 %v1273_v57, %v3735_v63  ;;  %v1761_v35 = vadd.f32 %v1760_v2, %v3747_v16 }
 0x241   : > { %v1602_v7 = vpop.f32.mrf.mxu1 }
 0x242   : > { %v1933_v0 = vsub.f32 %v1272_v55, %v1869_v4  ;;  %v1997_v1 = vsub.f32 %v1432_v61, %v1869_v4  ;;  %v829_v55 = vld [vmem:[%s3649_s30 + $0x1b8] sm:$0xff]  ;;  %v1603_v60 = vadd.f32 %v1602_v7, %v3747_v16 }
 0x244   : > { %v3155_v12 = vpop.eup %3154  ;;  %v2095_v8 = vmul.f32 1.442695, %v1933_v0  ;;  %v2223_v17 = vmul.f32 1.442695, %v1997_v1 }
 0x245   : > { %v3157_v19 = vpop.eup %3156  ;;  %v2589_v20 = vadd.f32 %v3155_v12, %v2588_v50  ;;  %v2318_v21 = vmul.f32 %v3155_v12, %v1598_v11  ;;  %v1433_v15 = vpop.f32.mrf.mxu2 }
 0x246   : > { %v2658_v25 = vadd.f32 %v3157_v19, %v2657_v59  ;;  %v2382_v26 = vmul.f32 %v3157_v19, %v1758_v13  ;;  %3158 = vpow2.f32 %v2095_v8  ;;  %v1434_v27 = vadd.f32 %v1433_v15, %v3735_v63  ;;  %v893_v59 = vld [vmem:[%s3649_s30 + $0x3b8] sm:$0xff] }
 0x247   : > { %v2445_v28 = vadd.f32 %v2444_v62, %v2318_v21  ;;  %3160 = vpow2.f32 %v2223_v17  ;;  %v1276_v22 = vpop.f32.mrf.mxu0  ;;  %v1762_v23 = vpop.f32.mrf.mxu3  ;;  %v961_v9 = vpack.c.bf16 %v893_v59, %v892_v58 }
 0x248   : > { %v2514_v31 = vadd.f32 %v2513_v3, %v2382_v26  ;;  %v1870_v32 = vmax.f32 %v1274_v14, %v1434_v27  ;;  %v1277_v41 = vadd.f32 %v1276_v22, %v3735_v63  ;;  %v1763_v62 = vadd.f32 %v1762_v23, %v3747_v16 }
 0x249   : > { %v1605_v34 = vpop.f32.mrf.mxu1  ;;  %v929_v3 = vpack.c.bf16 %v829_v55, %v828_v54 }
 0x24a   : > { %v1934_v29 = vsub.f32 %v1274_v14, %v1870_v32  ;;  %v1998_v30 = vsub.f32 %v1434_v27, %v1870_v32  ;;  %2870 = vmatmul.msk.bf16.gmra.mxu0 %vm984_vm0, %v928_v18  ;;  %2902 = vmatmul.msk.bf16.gmra.mxu2 %vm984_vm0, %v960_v24  ;;  %v1606_v19 = vadd.f32 %v1605_v34, %v3747_v16 }
 0x24c   : > { %v3159_v38 = vpop.eup %3158  ;;  %v2097_v39 = vmul.f32 1.442695, %v1934_v29  ;;  %v2225_v40 = vmul.f32 1.442695, %v1998_v30  ;;  %2966 = vmatmul.msk.bf16.gmra.mxu3 %vm984_vm0, %v960_v24  ;;  %2934 = vmatmul.msk.bf16.gmra.mxu1 %vm984_vm0, %v928_v18 }
 0x24d   : > { %v3161_v42 = vpop.eup %3160  ;;  %v2590_v36 = vadd.f32 %v3159_v38, %v2589_v20  ;;  %v2319_v37 = vmul.f32 %v3159_v38, %v1601_v33  ;;  %v1436_v45 = vpop.f32.mrf.mxu2 }
 0x24e   : > { %v2659_v46 = vadd.f32 %v3161_v42, %v2658_v25  ;;  %v2383_v47 = vmul.f32 %v3161_v42, %v1761_v35  ;;  %3162 = vpow2.f32 %v2097_v39  ;;  %v1437_v48 = vadd.f32 %v1436_v45, %v3735_v63  ;;  %v894_v45 = vld [vmem:[%s3649_s30 + $0x3c0] sm:$0xff] }
 0x24f   : > { %v2446_v49 = vadd.f32 %v2445_v28, %v2319_v37  ;;  %3164 = vpow2.f32 %v2225_v40  ;;  %v1278_v43 = vpop.f32.mrf.mxu0  ;;  %v1765_v44 = vpop.f32.mrf.mxu3  ;;  %v830_v40 = vld [vmem:[%s3649_s30 + $0x1c0] sm:$0xff] }
 0x250   : > { %v2515_v52 = vadd.f32 %v2514_v31, %v2383_v47  ;;  %v1871_v53 = vmax.f32 %v1277_v41, %v1437_v48  ;;  %v1279_v0 = vadd.f32 %v1278_v43, %v3735_v63  ;;  %v1766_v21 = vadd.f32 %v1765_v44, %v3747_v16 }
 0x251   : > { %v1607_v56 = vpop.f32.mrf.mxu1 }
 0x252   : > { %v1935_v50 = vsub.f32 %v1277_v41, %v1871_v53  ;;  %v1999_v51 = vsub.f32 %v1437_v48, %v1871_v53  ;;  %v831_v41 = vld [vmem:[%s3649_s30 + $0x1c8] sm:$0xff]  ;;  %v1608_v47 = vadd.f32 %v1607_v56, %v3747_v16 }
 0x254   : > { %v3163_v61 = vpop.eup %3162  ;;  %v2099_v57 = vmul.f32 1.442695, %v1935_v50  ;;  %v2227_v2 = vmul.f32 1.442695, %v1999_v51 }
 0x255   : > { %v3165_v4 = vpop.eup %3164  ;;  %v2591_v5 = vadd.f32 %v3163_v61, %v2590_v36  ;;  %v2320_v6 = vmul.f32 %v3163_v61, %v1603_v60  ;;  %v1438_v1 = vpop.f32.mrf.mxu2 }
 0x256   : > { %v2660_v10 = vadd.f32 %v3165_v4, %v2659_v46  ;;  %v2384_v11 = vmul.f32 %v3165_v4, %v1763_v62  ;;  %3166 = vpow2.f32 %v2099_v57  ;;  %v1439_v12 = vadd.f32 %v1438_v1, %v3735_v63  ;;  %v895_v46 = vld [vmem:[%s3649_s30 + $0x3c8] sm:$0xff] }
 0x257   : > { %v2447_v13 = vadd.f32 %v2446_v49, %v2320_v6  ;;  %3168 = vpow2.f32 %v2227_v2  ;;  %v1281_v7 = vpop.f32.mrf.mxu0  ;;  %v1767_v8 = vpop.f32.mrf.mxu3  ;;  %v962_v58 = vpack.c.bf16 %v895_v46, %v894_v45 }
 0x258   : > { %v2516_v17 = vadd.f32 %v2515_v52, %v2384_v11  ;;  %v1872_v18 = vmax.f32 %v1279_v0, %v1439_v12  ;;  %v1282_v27 = vadd.f32 %v1281_v7, %v3735_v63  ;;  %v1768_v49 = vadd.f32 %v1767_v8, %v3747_v16 }
 0x259   : > { %v1610_v20 = vpop.f32.mrf.mxu1  ;;  %v930_v52 = vpack.c.bf16 %v831_v41, %v830_v40 }
 0x25a   : > { %v1936_v14 = vsub.f32 %v1279_v0, %v1872_v18  ;;  %v2000_v15 = vsub.f32 %v1439_v12, %v1872_v18  ;;  %2871 = vmatmul.msk.bf16.gmra.mxu0 %vm984_vm0, %v929_v3  ;;  %2903 = vmatmul.msk.bf16.gmra.mxu2 %vm984_vm0, %v961_v9  ;;  %v1611_v4 = vadd.f32 %v1610_v20, %v3747_v16 }
 0x25c   : > { %v3167_v24 = vpop.eup %3166  ;;  %v2101_v25 = vmul.f32 1.442695, %v1936_v14  ;;  %v2229_v26 = vmul.f32 1.442695, %v2000_v15  ;;  %2967 = vmatmul.msk.bf16.gmra.mxu3 %vm984_vm0, %v961_v9  ;;  %2935 = vmatmul.msk.bf16.gmra.mxu1 %vm984_vm0, %v929_v3 }
 0x25d   : > { %v3169_v28 = vpop.eup %3168  ;;  %v2592_v22 = vadd.f32 %v3167_v24, %v2591_v5  ;;  %v2321_v23 = vmul.f32 %v3167_v24, %v1606_v19  ;;  %v1441_v31 = vpop.f32.mrf.mxu2 }
 0x25e   : > { %v2661_v32 = vadd.f32 %v3169_v28, %v2660_v10  ;;  %v2385_v33 = vmul.f32 %v3169_v28, %v1766_v21  ;;  %3170 = vpow2.f32 %v2101_v25  ;;  %v1442_v34 = vadd.f32 %v1441_v31, %v3735_v63  ;;  %v896_v31 = vld [vmem:[%s3649_s30 + $0x3d0] sm:$0xff] }
 0x25f   : > { %v2448_v35 = vadd.f32 %v2447_v13, %v2321_v23  ;;  %3172 = vpow2.f32 %v2229_v26  ;;  %v1283_v29 = vpop.f32.mrf.mxu0  ;;  %v1770_v30 = vpop.f32.mrf.mxu3  ;;  %v832_v26 = vld [vmem:[%s3649_s30 + $0x1d0] sm:$0xff] }
 0x260   : > { %v2517_v38 = vadd.f32 %v2516_v17, %v2385_v33  ;;  %v1873_v39 = vmax.f32 %v1282_v27, %v1442_v34  ;;  %v1284_v50 = vadd.f32 %v1283_v29, %v3735_v63  ;;  %v1771_v6 = vadd.f32 %v1770_v30, %v3747_v16 }
 0x261   : > { %v1612_v42 = vpop.f32.mrf.mxu1 }
 0x262   : > { %v1937_v36 = vsub.f32 %v1282_v27, %v1873_v39  ;;  %v2001_v37 = vsub.f32 %v1442_v34, %v1873_v39  ;;  %v833_v27 = vld [vmem:[%s3649_s30 + $0x1d8] sm:$0xff]  ;;  %v1613_v33 = vadd.f32 %v1612_v42, %v3747_v16 }
 0x264   : > { %v3171_v48 = vpop.eup %3170  ;;  %v2103_v43 = vmul.f32 1.442695, %v1937_v36  ;;  %v2231_v44 = vmul.f32 1.442695, %v2001_v37 }
 0x265   : > { %v3173_v53 = vpop.eup %3172  ;;  %v2593_v54 = vadd.f32 %v3171_v48, %v2592_v22  ;;  %v2322_v55 = vmul.f32 %v3171_v48, %v1608_v47  ;;  %v1443_v51 = vpop.f32.mrf.mxu2 }
 0x266   : > { %v2662_v59 = vadd.f32 %v3173_v53, %v2661_v32  ;;  %v2386_v60 = vmul.f32 %v3173_v53, %v1768_v49  ;;  %3174 = vpow2.f32 %v2103_v43  ;;  %v1444_v61 = vadd.f32 %v1443_v51, %v3735_v63  ;;  %v897_v32 = vld [vmem:[%s3649_s30 + $0x3d8] sm:$0xff] }
 0x267   : > { %v2449_v62 = vadd.f32 %v2448_v35, %v2322_v55  ;;  %3176 = vpow2.f32 %v2231_v44  ;;  %v1286_v56 = vpop.f32.mrf.mxu0  ;;  %v1772_v57 = vpop.f32.mrf.mxu3  ;;  %v963_v45 = vpack.c.bf16 %v897_v32, %v896_v31 }
 0x268   : > { %v2518_v2 = vadd.f32 %v2517_v38, %v2386_v60  ;;  %v1874_v3 = vmax.f32 %v1284_v50, %v1444_v61  ;;  %v1287_v12 = vadd.f32 %v1286_v56, %v3735_v63  ;;  %v1773_v35 = vadd.f32 %v1772_v57, %v3747_v16 }
 0x269   : > { %v1615_v5 = vpop.f32.mrf.mxu1  ;;  %v931_v38 = vpack.c.bf16 %v833_v27, %v832_v26 }
 0x26a   : > { %v1938_v0 = vsub.f32 %v1284_v50, %v1874_v3  ;;  %v2002_v1 = vsub.f32 %v1444_v61, %v1874_v3  ;;  %2872 = vmatmul.msk.bf16.gmra.mxu0 %vm984_vm0, %v930_v52  ;;  %2904 = vmatmul.msk.bf16.gmra.mxu2 %vm984_vm0, %v962_v58  ;;  %v1616_v53 = vadd.f32 %v1615_v5, %v3747_v16 }
 0x26c   : > { %v3175_v9 = vpop.eup %3174  ;;  %v2105_v10 = vmul.f32 1.442695, %v1938_v0  ;;  %v2233_v11 = vmul.f32 1.442695, %v2002_v1  ;;  %2968 = vmatmul.msk.bf16.gmra.mxu3 %vm984_vm0, %v962_v58  ;;  %2936 = vmatmul.msk.bf16.gmra.mxu1 %vm984_vm0, %v930_v52 }
 0x26d   : > { %v3177_v13 = vpop.eup %3176  ;;  %v2594_v7 = vadd.f32 %v3175_v9, %v2593_v54  ;;  %v2323_v8 = vmul.f32 %v3175_v9, %v1611_v4  ;;  %v1446_v17 = vpop.f32.mrf.mxu2 }
 0x26e   : > { %v2663_v18 = vadd.f32 %v3177_v13, %v2662_v59  ;;  %v2387_v19 = vmul.f32 %v3177_v13, %v1771_v6  ;;  %3178 = vpow2.f32 %v2105_v10  ;;  %v1447_v20 = vadd.f32 %v1446_v17, %v3735_v63  ;;  %v898_v17 = vld [vmem:[%s3649_s30 + $0x3e0] sm:$0xff] }
 0x26f   : > { %v2450_v21 = vadd.f32 %v2449_v62, %v2323_v8  ;;  %3180 = vpow2.f32 %v2233_v11  ;;  %v1288_v14 = vpop.f32.mrf.mxu0  ;;  %v1775_v15 = vpop.f32.mrf.mxu3  ;;  %v834_v11 = vld [vmem:[%s3649_s30 + $0x1e0] sm:$0xff] }
 0x270   : > { %v2519_v24 = vadd.f32 %v2518_v2, %v2387_v19  ;;  %v1875_v25 = vmax.f32 %v1287_v12, %v1447_v20  ;;  %v1289_v36 = vadd.f32 %v1288_v14, %v3735_v63  ;;  %v1776_v55 = vadd.f32 %v1775_v15, %v3747_v16 }
 0x271   : > { %v1617_v28 = vpop.f32.mrf.mxu1 }
 0x272   : > { %v1939_v22 = vsub.f32 %v1287_v12, %v1875_v25  ;;  %v2003_v23 = vsub.f32 %v1447_v20, %v1875_v25  ;;  %v835_v12 = vld [vmem:[%s3649_s30 + $0x1e8] sm:$0xff]  ;;  %v1618_v19 = vadd.f32 %v1617_v28, %v3747_v16 }
 0x274   : > { %v3179_v34 = vpop.eup %3178  ;;  %v2107_v29 = vmul.f32 1.442695, %v1939_v22  ;;  %v2235_v30 = vmul.f32 1.442695, %v2003_v23 }
 0x275   : > { %v3181_v39 = vpop.eup %3180  ;;  %v2595_v40 = vadd.f32 %v3179_v34, %v2594_v7  ;;  %v2324_v41 = vmul.f32 %v3179_v34, %v1613_v33  ;;  %v1448_v37 = vpop.f32.mrf.mxu2 }
 0x276   : > { %v2664_v46 = vadd.f32 %v3181_v39, %v2663_v18  ;;  %v2388_v47 = vmul.f32 %v3181_v39, %v1773_v35  ;;  %3182 = vpow2.f32 %v2107_v29  ;;  %v1449_v48 = vadd.f32 %v1448_v37, %v3735_v63  ;;  %v899_v18 = vld [vmem:[%s3649_s30 + $0x3e8] sm:$0xff] }
 0x277   : > { %v2451_v49 = vadd.f32 %v2450_v21, %v2324_v41  ;;  %3184 = vpow2.f32 %v2235_v30  ;;  %v1291_v42 = vpop.f32.mrf.mxu0  ;;  %v1777_v43 = vpop.f32.mrf.mxu3  ;;  %v964_v31 = vpack.c.bf16 %v899_v18, %v898_v17 }
 0x278   : > { %v2520_v44 = vadd.f32 %v2519_v24, %v2388_v47  ;;  %v1876_v52 = vmax.f32 %v1289_v36, %v1449_v48  ;;  %v1292_v61 = vadd.f32 %v1291_v42, %v3735_v63  ;;  %v1778_v21 = vadd.f32 %v1777_v43, %v3747_v16 }
 0x279   : > { %v1620_v54 = vpop.f32.mrf.mxu1  ;;  %v932_v24 = vpack.c.bf16 %v835_v12, %v834_v11 }
 0x27a   : > { %v1940_v50 = vsub.f32 %v1289_v36, %v1876_v52  ;;  %v2004_v51 = vsub.f32 %v1449_v48, %v1876_v52  ;;  %2873 = vmatmul.msk.bf16.gmra.mxu0 %vm984_vm0, %v931_v38  ;;  %2905 = vmatmul.msk.bf16.gmra.mxu2 %vm984_vm0, %v963_v45  ;;  %v1621_v39 = vadd.f32 %v1620_v54, %v3747_v16 }
 0x27c   : > { %v3183_v58 = vpop.eup %3182  ;;  %v2109_v59 = vmul.f32 1.442695, %v1940_v50  ;;  %v2237_v60 = vmul.f32 1.442695, %v2004_v51  ;;  %2969 = vmatmul.msk.bf16.gmra.mxu3 %vm984_vm0, %v963_v45  ;;  %2937 = vmatmul.msk.bf16.gmra.mxu1 %vm984_vm0, %v931_v38 }
 0x27d   : > { %v3185_v62 = vpop.eup %3184  ;;  %v2596_v56 = vadd.f32 %v3183_v58, %v2595_v40  ;;  %v2325_v57 = vmul.f32 %v3183_v58, %v1616_v53  ;;  %v1451_v2 = vpop.f32.mrf.mxu2 }
 0x27e   : > { %v2665_v3 = vadd.f32 %v3185_v62, %v2664_v46  ;;  %v2389_v4 = vmul.f32 %v3185_v62, %v1776_v55  ;;  %3186 = vpow2.f32 %v2109_v59  ;;  %v1452_v5 = vadd.f32 %v1451_v2, %v3735_v63  ;;  %v900_v2 = vld [vmem:[%s3649_s30 + $0x3f0] sm:$0xff] }
 0x27f   : > { %v2452_v6 = vadd.f32 %v2451_v49, %v2325_v57  ;;  %3188 = vpow2.f32 %v2237_v60  ;;  %v1293_v0 = vpop.f32.mrf.mxu0  ;;  %v1780_v1 = vpop.f32.mrf.mxu3  ;;  %v836_v60 = vld [vmem:[%s3649_s30 + $0x1f0] sm:$0xff] }
 0x280   : > { %v2521_v9 = vadd.f32 %v2520_v44, %v2389_v4  ;;  %v1877_v10 = vmax.f32 %v1292_v61, %v1452_v5  ;;  %v1294_v22 = vadd.f32 %v1293_v0, %v3735_v63  ;;  %v1781_v41 = vadd.f32 %v1780_v1, %v3747_v16 }
 0x281   : > { %v1622_v13 = vpop.f32.mrf.mxu1 }
 0x282   : > { %v1941_v7 = vsub.f32 %v1292_v61, %v1877_v10  ;;  %v2005_v8 = vsub.f32 %v1452_v5, %v1877_v10  ;;  %v837_v61 = vld [vmem:[%s3649_s30 + $0x1f8] sm:$0xff]  ;;  %v1623_v4 = vadd.f32 %v1622_v13, %v3747_v16 }
 0x284   : > { %v3187_v20 = vpop.eup %3186  ;;  %v2111_v14 = vmul.f32 1.442695, %v1941_v7  ;;  %v2239_v15 = vmul.f32 1.442695, %v2005_v8 }
 0x285   : > { %v3189_v25 = vpop.eup %3188  ;;  %v2597_v26 = vadd.f32 %v3187_v20, %v2596_v56  ;;  %v2326_v27 = vmul.f32 %v3187_v20, %v1618_v19  ;;  %v1453_v23 = vpop.f32.mrf.mxu2 }
 0x286   : > { %v2666_v32 = vadd.f32 %v3189_v25, %v2665_v3  ;;  %v2390_v33 = vmul.f32 %v3189_v25, %v1778_v21  ;;  %3190 = vpow2.f32 %v2111_v14  ;;  %v1454_v34 = vadd.f32 %v1453_v23, %v3735_v63  ;;  %v901_v3 = vld [vmem:[%s3649_s30 + $0x3f8] sm:$0xff] }
 0x287   : > { %v2453_v35 = vadd.f32 %v2452_v6, %v2326_v27  ;;  %3192 = vpow2.f32 %v2239_v15  ;;  %v1296_v28 = vpop.f32.mrf.mxu0  ;;  %v1782_v29 = vpop.f32.mrf.mxu3  ;;  %v965_v17 = vpack.c.bf16 %v901_v3, %v900_v2 }
 0x288   : > { %v2522_v30 = vadd.f32 %v2521_v9, %v2390_v33  ;;  %v1878_v38 = vmax.f32 %v1294_v22, %v1454_v34  ;;  %v1297_v48 = vadd.f32 %v1296_v28, %v3735_v63  ;;  %v1783_v6 = vadd.f32 %v1782_v29, %v3747_v16 }
 0x289   : > { %v1625_v40 = vpop.f32.mrf.mxu1  ;;  %v933_v9 = vpack.c.bf16 %v837_v61, %v836_v60 }
 0x28a   : > { %v1942_v36 = vsub.f32 %v1294_v22, %v1878_v38  ;;  %v2006_v37 = vsub.f32 %v1454_v34, %v1878_v38  ;;  %2874 = vmatmul.msk.bf16.gmra.mxu0 %vm984_vm0, %v932_v24  ;;  %2906 = vmatmul.msk.bf16.gmra.mxu2 %vm984_vm0, %v964_v31  ;;  %v1626_v25 = vadd.f32 %v1625_v40, %v3747_v16 }
 0x28c   : > { %v3191_v45 = vpop.eup %3190  ;;  %v2113_v46 = vmul.f32 1.442695, %v1942_v36  ;;  %v2241_v47 = vmul.f32 1.442695, %v2006_v37  ;;  %2970 = vmatmul.msk.bf16.gmra.mxu3 %vm984_vm0, %v964_v31  ;;  %2938 = vmatmul.msk.bf16.gmra.mxu1 %vm984_vm0, %v932_v24 }
 0x28d   : > { %v3193_v49 = vpop.eup %3192  ;;  %v2598_v42 = vadd.f32 %v3191_v45, %v2597_v26  ;;  %v2327_v43 = vmul.f32 %v3191_v45, %v1621_v39  ;;  %v1456_v44 = vpop.f32.mrf.mxu2 }
 0x28e   : > { %v2667_v52 = vadd.f32 %v3193_v49, %v2666_v32  ;;  %v2391_v53 = vmul.f32 %v3193_v49, %v1781_v41  ;;  %3194 = vpow2.f32 %v2113_v46  ;;  %v1457_v54 = vadd.f32 %v1456_v44, %v3735_v63 }
 0x28f   : > { %v2454_v55 = vadd.f32 %v2453_v35, %v2327_v43  ;;  %3196 = vpow2.f32 %v2241_v47  ;;  %v1298_v50 = vpop.f32.mrf.mxu0  ;;  %v1785_v51 = vpop.f32.mrf.mxu3 }
 0x290   : > { %v2523_v58 = vadd.f32 %v2522_v30, %v2391_v53  ;;  %v1879_v59 = vmax.f32 %v1297_v48, %v1457_v54  ;;  %v1299_v7 = vadd.f32 %v1298_v50, %v3735_v63  ;;  %v1786_v27 = vadd.f32 %v1785_v51, %v3747_v16 }
 0x291   : > { %v1627_v62 = vpop.f32.mrf.mxu1 }
 0x292   : > { %v1943_v56 = vsub.f32 %v1297_v48, %v1879_v59  ;;  %v2007_v57 = vsub.f32 %v1457_v54, %v1879_v59 }
 0x294   : > { %v3195_v5 = vpop.eup %3194  ;;  %v2115_v0 = vmul.f32 1.442695, %v1943_v56  ;;  %v2243_v1 = vmul.f32 1.442695, %v2007_v57 }
 0x295   : > { %v3197_v10 = vpop.eup %3196  ;;  %v2599_v11 = vadd.f32 %v3195_v5, %v2598_v42  ;;  %v2328_v12 = vmul.f32 %v3195_v5, %v1623_v4  ;;  %v1458_v8 = vpop.f32.mrf.mxu2  ;;  %v1628_v42 = vadd.f32 %v1627_v62, %v3747_v16 }
 0x296   : > { %v2668_v18 = vadd.f32 %v3197_v10, %v2667_v52  ;;  %v2392_v19 = vmul.f32 %v3197_v10, %v1783_v6  ;;  %3198 = vpow2.f32 %v2115_v0  ;;  %v1459_v20 = vadd.f32 %v1458_v8, %v3735_v63 }
 0x297   : > { %v2455_v21 = vadd.f32 %v2454_v55, %v2328_v12  ;;  %3200 = vpow2.f32 %v2243_v1  ;;  %v1301_v13 = vpop.f32.mrf.mxu0  ;;  %v1787_v14 = vpop.f32.mrf.mxu3 }
 0x298   : > { %v2524_v15 = vadd.f32 %v2523_v58, %v2392_v19  ;;  %v1880_v24 = vmax.f32 %v1299_v7, %v1459_v20  ;;  %v1302_v34 = vadd.f32 %v1301_v13, %v3735_v63  ;;  %v1788_v44 = vadd.f32 %v1787_v14, %v3747_v16 }
 0x299   : > { %v1630_v26 = vpop.f32.mrf.mxu1 }
 0x29a   : > { %v1944_v22 = vsub.f32 %v1299_v7, %v1880_v24  ;;  %v2008_v23 = vsub.f32 %v1459_v20, %v1880_v24  ;;  %2875 = vmatmul.msk.bf16.gmra.mxu0 %vm984_vm0, %v933_v9  ;;  %2907 = vmatmul.msk.bf16.gmra.mxu2 %vm984_vm0, %v965_v17  ;;  %v1631_v4 = vadd.f32 %v1630_v26, %v3747_v16 }
 0x29c   : > { %v3199_v31 = vpop.eup %3198  ;;  %v2117_v32 = vmul.f32 1.442695, %v1944_v22  ;;  %v2245_v33 = vmul.f32 1.442695, %v2008_v23  ;;  %2971 = vmatmul.msk.bf16.gmra.mxu3 %vm984_vm0, %v965_v17  ;;  %2939 = vmatmul.msk.bf16.gmra.mxu1 %vm984_vm0, %v933_v9 }
 0x29d   : > { %v3201_v35 = vpop.eup %3200  ;;  %v2600_v28 = vadd.f32 %v3199_v31, %v2599_v11  ;;  %v2329_v29 = vmul.f32 %v3199_v31, %v1626_v25  ;;  %v1461_v30 = vpop.f32.mrf.mxu2 }
 0x29e   : > { %v2669_v38 = vadd.f32 %v3201_v35, %v2668_v18  ;;  %v2393_v39 = vmul.f32 %v3201_v35, %v1786_v27  ;;  %3202 = vpow2.f32 %v2117_v32  ;;  %v1462_v40 = vadd.f32 %v1461_v30, %v3735_v63 }
 0x29f   : > { %v2456_v41 = vadd.f32 %v2455_v21, %v2329_v29  ;;  %3204 = vpow2.f32 %v2245_v33  ;;  %v1303_v36 = vpop.f32.mrf.mxu0  ;;  %v1790_v37 = vpop.f32.mrf.mxu3 }
 0x2a0   : > { %v2525_v45 = vadd.f32 %v2524_v15, %v2393_v39  ;;  %v1881_v46 = vmax.f32 %v1302_v34, %v1462_v40  ;;  %v1304_v51 = vadd.f32 %v1303_v36, %v3735_v63  ;;  %v1791_v6 = vadd.f32 %v1790_v37, %v3747_v16 }
 0x2a1   : > { %v1632_v47 = vpop.f32.mrf.mxu1 }
 0x2a2   : > { %v1945_v48 = vsub.f32 %v1302_v34, %v1881_v46  ;;  %v2009_v49 = vsub.f32 %v1462_v40, %v1881_v46  ;;  %v1633_v23 = vadd.f32 %v1632_v47, %v3747_v16 }
 0x2a4   : > { %v3203_v43 = vpop.eup %3202  ;;  %v2119_v52 = vmul.f32 1.442695, %v1945_v48  ;;  %v2247_v53 = vmul.f32 1.442695, %v2009_v49 }
 0x2a5   : > { %v3205_v54 = vpop.eup %3204  ;;  %v2601_v55 = vadd.f32 %v3203_v43, %v2600_v28  ;;  %v2330_v50 = vmul.f32 %v3203_v43, %v1628_v42  ;;  %v1463_v58 = vpop.f32.mrf.mxu2 }
 0x2a6   : > { %v2670_v59 = vadd.f32 %v3205_v54, %v2669_v38  ;;  %v2394_v60 = vmul.f32 %v3205_v54, %v1788_v44  ;;  %3206 = vpow2.f32 %v2119_v52  ;;  %v1464_v61 = vadd.f32 %v1463_v58, %v3735_v63 }
 0x2a7   : > { %v2457_v56 = vadd.f32 %v2456_v41, %v2330_v50  ;;  %3208 = vpow2.f32 %v2247_v53  ;;  %v1306_v57 = vpop.f32.mrf.mxu0  ;;  %v1792_v62 = vpop.f32.mrf.mxu3 }
 0x2a8   : > { %v2526_v2 = vadd.f32 %v2525_v45, %v2394_v60  ;;  %v1882_v3 = vmax.f32 %v1304_v51, %v1464_v61  ;;  %v1307_v12 = vadd.f32 %v1306_v57, %v3735_v63  ;;  %v1793_v32 = vadd.f32 %v1792_v62, %v3747_v16 }
 0x2a9   : > { %v1635_v5 = vpop.f32.mrf.mxu1 }
 0x2aa   : > { %v1946_v0 = vsub.f32 %v1304_v51, %v1882_v3  ;;  %v2010_v1 = vsub.f32 %v1464_v61, %v1882_v3  ;;  %v1636_v48 = vadd.f32 %v1635_v5, %v3747_v16 }
 0x2ac   : > { %v3207_v9 = vpop.eup %3206  ;;  %v2121_v10 = vmul.f32 1.442695, %v1946_v0  ;;  %v2249_v11 = vmul.f32 1.442695, %v2010_v1 }
 0x2ad   : > { %v3209_v7 = vpop.eup %3208  ;;  %v2602_v8 = vadd.f32 %v3207_v9, %v2601_v55  ;;  %v2331_v17 = vmul.f32 %v3207_v9, %v1631_v4  ;;  %v1466_v18 = vpop.f32.mrf.mxu2 }
 0x2ae   : > { %v2671_v19 = vadd.f32 %v3209_v7, %v2670_v59  ;;  %v2395_v20 = vmul.f32 %v3209_v7, %v1791_v6  ;;  %3210 = vpow2.f32 %v2121_v10  ;;  %v1467_v21 = vadd.f32 %v1466_v18, %v3735_v63 }
 0x2af   : > { %v2458_v13 = vadd.f32 %v2457_v56, %v2331_v17  ;;  %3212 = vpow2.f32 %v2249_v11  ;;  %v1308_v14 = vpop.f32.mrf.mxu0  ;;  %v1795_v15 = vpop.f32.mrf.mxu3 }
 0x2b0   : > { %v2527_v24 = vadd.f32 %v2526_v2, %v2395_v20  ;;  %v1883_v25 = vmax.f32 %v1307_v12, %v1467_v21  ;;  %v1309_v30 = vadd.f32 %v1308_v14, %v3735_v63  ;;  %v1796_v42 = vadd.f32 %v1795_v15, %v3747_v16 }
 0x2b1   : > { %v1637_v26 = vpop.f32.mrf.mxu1 }
 0x2b2   : > { %v1947_v27 = vsub.f32 %v1307_v12, %v1883_v25  ;;  %v2011_v22 = vsub.f32 %v1467_v21, %v1883_v25  ;;  %v1638_v1 = vadd.f32 %v1637_v26, %v3747_v16 }
 0x2b4   : > { %v3211_v31 = vpop.eup %3210  ;;  %v2123_v33 = vmul.f32 1.442695, %v1947_v27  ;;  %v2251_v34 = vmul.f32 1.442695, %v2011_v22 }
 0x2b5   : > { %v3213_v35 = vpop.eup %3212  ;;  %v2603_v28 = vadd.f32 %v3211_v31, %v2602_v8  ;;  %v2332_v29 = vmul.f32 %v3211_v31, %v1633_v23  ;;  %v1468_v38 = vpop.f32.mrf.mxu2 }
 0x2b6   : > { %v2672_v39 = vadd.f32 %v3213_v35, %v2671_v19  ;;  %v2396_v40 = vmul.f32 %v3213_v35, %v1793_v32  ;;  %3214 = vpow2.f32 %v2123_v33  ;;  %v1469_v41 = vadd.f32 %v1468_v38, %v3735_v63 }
 0x2b7   : > { %v2459_v36 = vadd.f32 %v2458_v13, %v2332_v29  ;;  %3216 = vpow2.f32 %v2251_v34  ;;  %v1311_v37 = vpop.f32.mrf.mxu0  ;;  %v1797_v45 = vpop.f32.mrf.mxu3 }
 0x2b8   : > { %v2528_v46 = vadd.f32 %v2527_v24, %v2396_v40  ;;  %v1884_v47 = vmax.f32 %v1309_v30, %v1469_v41  ;;  %v1312_v55 = vadd.f32 %v1311_v37, %v3735_v63  ;;  %v1798_v10 = vadd.f32 %v1797_v45, %v3747_v16 }
 0x2b9   : > { %v1640_v49 = vpop.f32.mrf.mxu1 }
 0x2ba   : > { %v1948_v43 = vsub.f32 %v1309_v30, %v1884_v47  ;;  %v2012_v44 = vsub.f32 %v1469_v41, %v1884_v47  ;;  %v1641_v27 = vadd.f32 %v1640_v49, %v3747_v16 }
 0x2bc   : > { %v3215_v52 = vpop.eup %3214  ;;  %v2125_v53 = vmul.f32 1.442695, %v1948_v43  ;;  %v2253_v54 = vmul.f32 1.442695, %v2012_v44 }
 0x2bd   : > { %v3217_v50 = vpop.eup %3216  ;;  %v2604_v51 = vadd.f32 %v3215_v52, %v2603_v28  ;;  %v2333_v58 = vmul.f32 %v3215_v52, %v1636_v48  ;;  %v1471_v59 = vpop.f32.mrf.mxu2 }
 0x2be   : > { %v2673_v60 = vadd.f32 %v3217_v50, %v2672_v39  ;;  %v2397_v61 = vmul.f32 %v3217_v50, %v1796_v42  ;;  %3218 = vpow2.f32 %v2125_v53  ;;  %v1472_v56 = vadd.f32 %v1471_v59, %v3735_v63 }
 0x2bf   : > { %v2460_v57 = vadd.f32 %v2459_v36, %v2333_v58  ;;  %3220 = vpow2.f32 %v2253_v54  ;;  %v1313_v62 = vpop.f32.mrf.mxu0  ;;  %v1800_v2 = vpop.f32.mrf.mxu3 }
 0x2c0   : > { %v2529_v3 = vadd.f32 %v2528_v46, %v2397_v61  ;;  %v1885_v4 = vmax.f32 %v1312_v55, %v1472_v56  ;;  %v1314_v18 = vadd.f32 %v1313_v62, %v3735_v63  ;;  %v1801_v23 = vadd.f32 %v1800_v2, %v3747_v16 }
 0x2c1   : > { %v1642_v5 = vpop.f32.mrf.mxu1 }
 0x2c2   : > { %v1949_v6 = vsub.f32 %v1312_v55, %v1885_v4  ;;  %v2013_v0 = vsub.f32 %v1472_v56, %v1885_v4  ;;  %v1643_v44 = vadd.f32 %v1642_v5, %v3747_v16 }
 0x2c4   : > { %v3219_v9 = vpop.eup %3218  ;;  %v2127_v11 = vmul.f32 1.442695, %v1949_v6  ;;  %v2255_v12 = vmul.f32 1.442695, %v2013_v0 }
 0x2c5   : > { %v3221_v7 = vpop.eup %3220  ;;  %v2605_v8 = vadd.f32 %v3219_v9, %v2604_v51  ;;  %v2334_v17 = vmul.f32 %v3219_v9, %v1638_v1  ;;  %v1473_v19 = vpop.f32.mrf.mxu2 }
 0x2c6   : > { %v2674_v20 = vadd.f32 %v3221_v7, %v2673_v60  ;;  %v2398_v21 = vmul.f32 %v3221_v7, %v1798_v10  ;;  %3222 = vpow2.f32 %v2127_v11  ;;  %v1474_v13 = vadd.f32 %v1473_v19, %v3735_v63 }
 0x2c7   : > { %v2461_v14 = vadd.f32 %v2460_v57, %v2334_v17  ;;  %3224 = vpow2.f32 %v2255_v12  ;;  %v1316_v15 = vpop.f32.mrf.mxu0  ;;  %v1802_v24 = vpop.f32.mrf.mxu3 }
 0x2c8   : > { %v2530_v25 = vadd.f32 %v2529_v3, %v2398_v21  ;;  %v1886_v26 = vmax.f32 %v1314_v18, %v1474_v13  ;;  %v1317_v28 = vadd.f32 %v1316_v15, %v3735_v63  ;;  %v1803_v53 = vadd.f32 %v1802_v24, %v3747_v16 }
 0x2c9   : > { %v1645_v22 = vpop.f32.mrf.mxu1 }
 0x2ca   : > { %v1950_v31 = vsub.f32 %v1314_v18, %v1886_v26  ;;  %v2014_v32 = vsub.f32 %v1474_v13, %v1886_v26  ;;  %v1646_v3 = vadd.f32 %v1645_v22, %v3747_v16 }
 0x2cc   : > { %v3223_v33 = vpop.eup %3222  ;;  %v2129_v34 = vmul.f32 1.442695, %v1950_v31  ;;  %v2257_v35 = vmul.f32 1.442695, %v2014_v32 }
 0x2cd   : > { %v3225_v29 = vpop.eup %3224  ;;  %v2606_v30 = vadd.f32 %v3223_v33, %v2605_v8  ;;  %v2335_v38 = vmul.f32 %v3223_v33, %v1641_v27  ;;  %v1476_v39 = vpop.f32.mrf.mxu2 }
 0x2ce   : > { %v2675_v40 = vadd.f32 %v3225_v29, %v2674_v20  ;;  %v2399_v41 = vmul.f32 %v3225_v29, %v1801_v23  ;;  %3226 = vpow2.f32 %v2129_v34  ;;  %v1477_v36 = vadd.f32 %v1476_v39, %v3735_v63 }
 0x2cf   : > { %v2462_v37 = vadd.f32 %v2461_v14, %v2335_v38  ;;  %3228 = vpow2.f32 %v2257_v35  ;;  %v1318_v45 = vpop.f32.mrf.mxu0  ;;  %v1805_v46 = vpop.f32.mrf.mxu3 }
 0x2d0   : > { %v2531_v47 = vadd.f32 %v2530_v25, %v2399_v41  ;;  %v1887_v48 = vmax.f32 %v1317_v28, %v1477_v36  ;;  %v1806_v5 = vadd.f32 %v1805_v46, %v3747_v16  ;;  %v1319_v32 = vadd.f32 %v1318_v45, %v3735_v63 }
 0x2d1   : > { %v4135_v49 = vpop.f32.mrf.mxu1 }
 0x2d2   : > { %v1951_v42 = vsub.f32 %v1317_v28, %v1887_v48  ;;  %v2015_v43 = vsub.f32 %v1477_v36, %v1887_v48 }
 0x2d4   : > { %v3227_v52 = vpop.eup %3226  ;;  %v2131_v54 = vmul.f32 1.442695, %v1951_v42  ;;  %v2259_v55 = vmul.f32 1.442695, %v2015_v43 }
 0x2d5   : > { %v3229_v50 = vpop.eup %3228  ;;  %v2607_v51 = vadd.f32 %v3227_v52, %v2606_v30  ;;  %v2336_v58 = vmul.f32 %v3227_v52, %v1643_v44  ;;  %v1478_v59 = vpop.f32.mrf.mxu2 }
 0x2d6   : > { %v2676_v60 = vadd.f32 %v3229_v50, %v2675_v40  ;;  %v2400_v61 = vmul.f32 %v3229_v50, %v1803_v53  ;;  %3230 = vpow2.f32 %v2131_v54  ;;  %v1479_v22 = vadd.f32 %v1478_v59, %v3735_v63 }
 0x2d7   : > { %v2463_v56 = vadd.f32 %v2462_v37, %v2336_v58  ;;  %3232 = vpow2.f32 %v2259_v55  ;;  %v1321_v57 = vpop.f32.mrf.mxu0  ;;  %v4139_v62 = vpop.f32.mrf.mxu3 }
 0x2d8   : > { %v2532_v2 = vadd.f32 %v2531_v47, %v2400_v61  ;;  %v1888_v33 = vmax.f32 %v1319_v32, %v1479_v22  ;;  %v1322_v34 = vadd.f32 %v1321_v57, %v3735_v63  ;;  %v1648_v57 = vadd.f32 %v4135_v49, %v3747_v16 }
 0x2d9   : > { %v4142_v4 = vpop.f32.mrf.mxu1 }
 0x2da   : > { %v1952_v29 = vsub.f32 %v1319_v32, %v1888_v33  ;;  %v2016_v41 = vsub.f32 %v1479_v22, %v1888_v33  ;;  %v1651_v49 = vadd.f32 %v4142_v4, %v3747_v16 }
 0x2dc   : > { %v3231_v6 = vpop.eup %3230  ;;  %v2133_v37 = vmul.f32 1.442695, %v1952_v29  ;;  %v2261_v47 = vmul.f32 1.442695, %v2016_v41 }
 0x2dd   : > { %v3233_v0 = vpop.eup %3232  ;;  %v4145_v1 = vadd.f32 %v3231_v6, %v2607_v51  ;;  %v2337_v9 = vmul.f32 %v3231_v6, %v1646_v3  ;;  %v1481_v10 = vpop.f32.mrf.mxu2 }
 0x2de   : > { %v4147_v11 = vadd.f32 %v3233_v0, %v2676_v60  ;;  %v2401_v12 = vmul.f32 %v3233_v0, %v1806_v5  ;;  %v1482_v35 = vadd.f32 %v1481_v10, %v3735_v63  ;;  %3234 = vpow2.f32 %v2133_v37 }
 0x2df   : > { %v4149_v7 = vadd.f32 %v2463_v56, %v2337_v9  ;;  %v1323_v8 = vpop.f32.mrf.mxu0  ;;  %v4151_v17 = vpop.f32.mrf.mxu3  ;;  %3236 = vpow2.f32 %v2261_v47  ;;  %v1808_v10 = vadd.f32 %v4139_v62, %v3747_v16 }
 0x2e0   : > { %v4153_v18 = vadd.f32 %v2532_v2, %v2401_v12  ;;  %v1889_v38 = vmax.f32 %v1322_v34, %v1482_v35  ;;  %v1324_v45 = vadd.f32 %v1323_v8, %v3735_v63 }
 0x2e1   : > { %v4155_v19 = vpop.f32.mrf.mxu1 }
 0x2e2   : > { %v1953_v46 = vsub.f32 %v1322_v34, %v1889_v38  ;;  %v2017_v48 = vsub.f32 %v1482_v35, %v1889_v38  ;;  %v1653_v32 = vadd.f32 %v4155_v19, %v3747_v16 }
 0x2e4   : > { %v2135_v44 = vmul.f32 1.442695, %v1953_v46  ;;  %v2263_v55 = vmul.f32 1.442695, %v2017_v48  ;;  %v3235_v56 = vpop.eup %3234 }
 0x2e5   : > { %v1483_v20 = vpop.f32.mrf.mxu2  ;;  %v3237_v9 = vpop.eup %3236  ;;  %v2338_v8 = vmul.f32 %v3235_v56, %v1648_v57  ;;  %v2609_v34 = vadd.f32 %v3235_v56, %v4145_v1 }
 0x2e6   : > { %v1484_v36 = vadd.f32 %v1483_v20, %v3735_v63  ;;  %3238 = vpow2.f32 %v2135_v44  ;;  %v2678_v35 = vadd.f32 %v3237_v9, %v4147_v11 }
 0x2e7   : > { %v1326_v21 = vpop.f32.mrf.mxu0  ;;  %v4157_v13 = vpop.f32.mrf.mxu3  ;;  %3240 = vpow2.f32 %v2263_v55  ;;  %v2465_v4 = vadd.f32 %v4149_v7, %v2338_v8 }
 0x2e8   : > { %v1890_v42 = vmax.f32 %v1324_v45, %v1484_v36  ;;  %v1327_v52 = vadd.f32 %v1326_v21, %v3735_v63  ;;  %v1813_v7 = vadd.f32 %v4157_v13, %v3747_v16 }
 0x2e9   : > { %v4159_v14 = vpop.f32.mrf.mxu1 }
 0x2ea   : > { %v1954_v51 = vsub.f32 %v1324_v45, %v1890_v42  ;;  %v2018_v59 = vsub.f32 %v1484_v36, %v1890_v42 }
 0x2ec   : > { %v2137_v2 = vmul.f32 1.442695, %v1954_v51  ;;  %v2265_v12 = vmul.f32 1.442695, %v2018_v59  ;;  %v3239_v22 = vpop.eup %3238 }
 0x2ed   : > { %v1486_v15 = vpop.f32.mrf.mxu2  ;;  %v3241_v62 = vpop.eup %3240  ;;  %v2339_v45 = vmul.f32 %v3239_v22, %v1651_v49 }
 0x2ee   : > { %v1487_v53 = vadd.f32 %v1486_v15, %v3735_v63  ;;  %3242 = vpow2.f32 %v2137_v2 }
 0x2ef   : > { %v1328_v24 = vpop.f32.mrf.mxu0  ;;  %v4161_v25 = vpop.f32.mrf.mxu3  ;;  %3244 = vpow2.f32 %v2265_v12  ;;  %v2466_v13 = vadd.f32 %v2465_v4, %v2339_v45 }
 0x2f0   : > { %v1891_v60 = vmax.f32 %v1327_v52, %v1487_v53  ;;  %v1329_v3 = vadd.f32 %v1328_v24, %v3735_v63  ;;  %v1811_v24 = vadd.f32 %v4151_v17, %v3747_v16 }
 0x2f1   : > { %v4163_v26 = vpop.f32.mrf.mxu1 }
 0x2f2   : > { %v1955_v20 = vsub.f32 %v1327_v52, %v1891_v60  ;;  %v2019_v21 = vsub.f32 %v1487_v53, %v1891_v60  ;;  %v2403_v47 = vmul.f32 %v3241_v62, %v1811_v24  ;;  %v1658_v12 = vadd.f32 %v4163_v26, %v3747_v16 }
 0x2f4   : > { %v2139_v17 = vmul.f32 1.442695, %v1955_v20  ;;  %v2267_v38 = vmul.f32 1.442695, %v2019_v21  ;;  %v3243_v53 = vpop.eup %3242 }
 0x2f5   : > { %v1488_v27 = vpop.f32.mrf.mxu2 }
 0x2f6   : > { %v1489_v61 = vadd.f32 %v1488_v27, %v3735_v63  ;;  %3246 = vpow2.f32 %v2139_v17 }
 0x2f7   : > { %v1331_v23 = vpop.f32.mrf.mxu0  ;;  %v4166_v31 = vpop.f32.mrf.mxu3  ;;  %3248 = vpow2.f32 %v2267_v38 }
 0x2f8   : > { %v1332_v5 = vadd.f32 %v1331_v23, %v3735_v63  ;;  %v1892_v15 = vmax.f32 %v1329_v3, %v1489_v61  ;;  %v2402_v23 = vmul.f32 %v3237_v9, %v1808_v10  ;;  %v1818_v17 = vadd.f32 %v4166_v31, %v3747_v16 }
 0x2f9   : > { %v4171_v30 = vpop.f32.mrf.mxu1 }
 0x2fa   : > { %v1956_v41 = vsub.f32 %v1329_v3, %v1892_v15  ;;  %v2020_v37 = vsub.f32 %v1489_v61, %v1892_v15  ;;  %v2534_v11 = vadd.f32 %v4153_v18, %v2402_v23  ;;  %v3245_v18 = vpop.eup %3244  ;;  %v2679_v61 = vadd.f32 %v3241_v62, %v2678_v35 }
 0x2fb   : > { %v1816_v3 = vadd.f32 %v4161_v25, %v3747_v16  ;;  %v2404_v9 = vmul.f32 %v3245_v18, %v1813_v7 }
 0x2fc   : > { %v2141_v55 = vmul.f32 1.442695, %v1956_v41  ;;  %v2269_v51 = vmul.f32 1.442695, %v2020_v37  ;;  %v2535_v56 = vadd.f32 %v2534_v11, %v2403_v47  ;;  %v3247_v15 = vpop.eup %3246  ;;  %v2680_v25 = vadd.f32 %v3245_v18, %v2679_v61 }
 0x2fd   : > { %v1491_v28 = vpop.f32.mrf.mxu2  ;;  %v3249_v23 = vpop.eup %3248 }
 0x2fe   : > { %v1492_v6 = vadd.f32 %v1491_v28, %v3735_v63  ;;  %3250 = vpow2.f32 %v2141_v55 }
 0x2ff   : > { %v1333_v39 = vpop.f32.mrf.mxu0  ;;  %v4173_v40 = vpop.f32.mrf.mxu3  ;;  %3252 = vpow2.f32 %v2269_v51 }
 0x300   : > { %v1893_v33 = vmax.f32 %v1332_v5, %v1492_v6  ;;  %v1334_v19 = vadd.f32 %v1333_v39, %v3735_v63  ;;  %v2610_v39 = vadd.f32 %v3239_v22, %v2609_v34  ;;  %v2536_v34 = vadd.f32 %v2535_v56, %v2404_v9 }
 0x301   : > { %v4179_v50 = vpop.f32.mrf.mxu1 }
 0x302   : > { %v1957_v48 = vsub.f32 %v1332_v5, %v1893_v33 }
 0x304   : > { %v2143_v57 = vmul.f32 1.442695, %v1957_v48  ;;  %v3251_v37 = vpop.eup %3250 }
 0x305   : > { %v1493_v43 = vpop.f32.mrf.mxu2  ;;  %v3253_v45 = vpop.eup %3252 }
 0x306   : > { %v1494_v28 = vadd.f32 %v1493_v43, %v3735_v63  ;;  %v2021_v43 = vsub.f32 %v1492_v6, %v1893_v33  ;;  %3254 = vpow2.f32 %v2143_v57  ;;  %v2406_v18 = vmul.f32 %v3253_v45, %v1818_v17 }
 0x307   : > { %v1336_v54 = vpop.f32.mrf.mxu0  ;;  %v4181_v58 = vpop.f32.mrf.mxu3 }
 0x308   : > { %v1337_v46 = vadd.f32 %v1336_v54, %v3735_v63  ;;  %v1894_v44 = vmax.f32 %v1334_v19, %v1494_v28  ;;  %v1656_v54 = vadd.f32 %v4159_v14, %v3747_v16  ;;  %v2271_v5 = vmul.f32 1.442695, %v2021_v43 }
 0x309   : > { %v4200_v29 = vpop.f32.mrf.mxu1  ;;  %v2340_v14 = vmul.f32 %v3243_v53, %v1653_v32  ;;  %v2681_v43 = vadd.f32 %v3249_v23, %v2680_v25 }
 0x30a   : > { %v1958_v6 = vsub.f32 %v1334_v19, %v1894_v44  ;;  %v2022_v10 = vsub.f32 %v1494_v28, %v1894_v44  ;;  %3256 = vpow2.f32 %v2271_v5  ;;  %v2341_v4 = vmul.f32 %v3247_v15, %v1656_v54 }
 0x30b   : > { %v2467_v26 = vadd.f32 %v2466_v13, %v2340_v14  ;;  %v1821_v44 = vadd.f32 %v4173_v40, %v3747_v16  ;;  %v2342_v54 = vmul.f32 %v3251_v37, %v1658_v12  ;;  %v1666_v12 = vadd.f32 %v4200_v29, %v3747_v16 }
 0x30c   : > { %v2145_v32 = vmul.f32 1.442695, %v1958_v6  ;;  %v2273_v35 = vmul.f32 1.442695, %v2022_v10  ;;  %v3255_v7 = vpop.eup %3254  ;;  %v2682_v6 = vadd.f32 %v3253_v45, %v2681_v43 }
 0x30d   : > { %v1496_v0 = vpop.f32.mrf.mxu2 }
 0x30e   : > { %v1497_v1 = vadd.f32 %v1496_v0, %v3735_v63  ;;  %3258 = vpow2.f32 %v2145_v32 }
 0x30f   : > { %v1338_v27 = vpop.f32.mrf.mxu0  ;;  %v4203_v36 = vpop.f32.mrf.mxu3  ;;  %3260 = vpow2.f32 %v2273_v35 }
 0x310   : > { %v1895_v59 = vmax.f32 %v1337_v46, %v1497_v1  ;;  %v1339_v60 = vadd.f32 %v1338_v27, %v3735_v63  ;;  %v2611_v27 = vadd.f32 %v3243_v53, %v2610_v39  ;;  %v3257_v53 = vpop.eup %3256  ;;  %v2468_v39 = vadd.f32 %v2467_v26, %v2341_v4 }
 0x311   : > { %v4223_v21 = vpop.f32.mrf.mxu1 }
 0x312   : > { %v1959_v8 = vsub.f32 %v1337_v46, %v1895_v59  ;;  %v2023_v49 = vsub.f32 %v1497_v1, %v1895_v59  ;;  %v2612_v19 = vadd.f32 %v3247_v15, %v2611_v27  ;;  %v2405_v46 = vmul.f32 %v3249_v23, %v1816_v3 }
 0x313   : > { %v1661_v1 = vadd.f32 %v4171_v30, %v3747_v16 }
 0x314   : > { %v2147_v38 = vmul.f32 1.442695, %v1959_v8  ;;  %v2275_v11 = vmul.f32 1.442695, %v2023_v49  ;;  %v2537_v30 = vadd.f32 %v2536_v34, %v2405_v46  ;;  %v2613_v56 = vadd.f32 %v3251_v37, %v2612_v19  ;;  %v3259_v5 = vpop.eup %3258 }
 0x315   : > { %v1498_v42 = vpop.f32.mrf.mxu2  ;;  %v2343_v57 = vmul.f32 %v3255_v7, %v1661_v1  ;;  %v3261_v9 = vpop.eup %3260  ;;  %v2683_v49 = vadd.f32 %v3257_v53, %v2682_v6 }
 0x316   : > { %v4212_v52 = vadd.f32 %v1498_v42, %v3735_v63  ;;  %3262 = vpow2.f32 %v2147_v38  ;;  %v2538_v10 = vadd.f32 %v2537_v30, %v2406_v18  ;;  %v2614_v8 = vadd.f32 %v3255_v7, %v2613_v56 }
 0x317   : > { %v1341_v2 = vpop.f32.mrf.mxu0  ;;  %v4225_v24 = vpop.f32.mrf.mxu3  ;;  %3264 = vpow2.f32 %v2275_v11 }
 0x318   : > { %v1896_v0 = vmax.f32 %v1339_v60, %v4212_v52  ;;  %v1342_v20 = vadd.f32 %v1341_v2, %v3735_v63  ;;  %v2407_v2 = vmul.f32 %v3257_v53, %v1821_v44  ;;  %v2615_v35 = vadd.f32 %v3259_v5, %v2614_v8 }
 0x319   : > { %v1670_v40 = vpop.f32.mrf.mxu1 }
 0x31a   : > { %v1960_v33 = vsub.f32 %v1339_v60, %v1896_v0  ;;  %v2024_v28 = vsub.f32 %v4212_v52, %v1896_v0  ;;  %v1663_v60 = vadd.f32 %v4179_v50, %v3747_v16  ;;  %v2469_v0 = vadd.f32 %v2468_v39, %v2342_v54 }
 0x31b   : > { %v1823_v50 = vadd.f32 %v4181_v58, %v3747_v16  ;;  %v2539_v23 = vadd.f32 %v2538_v10, %v2407_v2  ;;  %v1668_v58 = vadd.f32 %v4223_v21, %v3747_v16 }
 0x31c   : > { %v2149_v47 = vmul.f32 1.442695, %v1960_v33  ;;  %v2277_v31 = vmul.f32 1.442695, %v2024_v28  ;;  %v2344_v32 = vmul.f32 %v3259_v5, %v1663_v60  ;;  %v2684_v28 = vadd.f32 %v3261_v9, %v2683_v49 }
 0x31d   : > { %v1501_v22 = vpop.f32.mrf.mxu2 }
 0x31e   : > { %v1502_v62 = vadd.f32 %v1501_v22, %v3735_v63  ;;  %3266 = vpow2.f32 %v2149_v47  ;;  %v2470_v22 = vadd.f32 %v2469_v0, %v2343_v57 }
 0x31f   : > { %v1343_v52 = vpop.f32.mrf.mxu0  ;;  %3268 = vpow2.f32 %v2277_v31  ;;  %v1830_v3 = vpop.f32.mrf.mxu3 }
 0x320   : > { %v1897_v41 = vmax.f32 %v1342_v20, %v1502_v62  ;;  %v1344_v61 = vadd.f32 %v1343_v52, %v3735_v63  ;;  %v1831_v37 = vadd.f32 %v1830_v3, %v3747_v16  ;;  %v2471_v46 = vadd.f32 %v2470_v22, %v2344_v32  ;;  %v2555_v22 = vld [vmem:[#allocation3] sm:$0x1] }
 0x322   : > { %v1961_v48 = vsub.f32 %v1342_v20, %v1897_v41  ;;  %v2025_v42 = vsub.f32 %v1502_v62, %v1897_v41  ;;  %v1826_v20 = vadd.f32 %v4203_v36, %v3747_v16  ;;  %v2408_v62 = vmul.f32 %v3261_v9, %v1823_v50 }
 0x323   : > { %v1671_v36 = vadd.f32 %v1670_v40, %v3747_v16  ;;  %v1828_v41 = vadd.f32 %v4225_v24, %v3747_v16 }
 0x324   : > { %v2151_v55 = vmul.f32 1.442695, %v1961_v48  ;;  %v2279_v51 = vmul.f32 1.442695, %v2025_v42  ;;  %v2540_v11 = vadd.f32 %v2539_v23, %v2408_v62  ;;  %v1672_v48 = vpop.f32.mrf.mxu1 }
 0x325   : > { %v1503_v59 = vpop.f32.mrf.mxu2  ;;  %v1673_v54 = vadd.f32 %v1672_v48, %v3747_v16 }
 0x326   : > { %v1504_v13 = vadd.f32 %v1503_v59, %v3735_v63  ;;  %3270 = vpow2.f32 %v2151_v55  ;;  %v3263_v63 = vpop.eup %3262 }
 0x327   : > { %3272 = vpow2.f32 %v2279_v51  ;;  %v3265_v25 = vpop.eup %3264  ;;  %v2345_v4 = vmul.f32 %v3263_v63, %v1666_v12  ;;  %v2616_v1 = vadd.f32 %v3263_v63, %v2615_v35  ;;  %v1832_v44 = vpop.f32.mrf.mxu3 }
 0x328   : > { %v1898_v14 = vmax.f32 %v1344_v61, %v1504_v13  ;;  %v3267_v33 = vpop.eup %3266  ;;  %v2409_v38 = vmul.f32 %v3265_v25, %v1826_v20  ;;  %v2685_v45 = vadd.f32 %v3265_v25, %v2684_v28  ;;  %v1833_v51 = vadd.f32 %v1832_v44, %v3747_v16 }
 0x329   : > { %v3269_v34 = vpop.eup %3268  ;;  %v2346_v21 = vmul.f32 %v3267_v33, %v1668_v58  ;;  %v2472_v42 = vadd.f32 %v2471_v46, %v2345_v4  ;;  %v2617_v7 = vadd.f32 %v3267_v33, %v2616_v1  ;;  %v2556_v33 = vld [vmem:[#allocation3 + $0x1] sm:$0x1]  ;;  %v2284_v4 = vld [vmem:[#allocation2 + $0x1] sm:$0x1] }
 0x32a   : > { %v1962_v15 = vsub.f32 %v1344_v61, %v1898_v14  ;;  %v2026_v27 = vsub.f32 %v1504_v13, %v1898_v14  ;;  %v2410_v47 = vmul.f32 %v3269_v34, %v1828_v41  ;;  %v2541_v31 = vadd.f32 %v2540_v11, %v2409_v38 }
 0x32b   : > { %v2686_v52 = vadd.f32 %v3269_v34, %v2685_v45  ;;  %v2473_v24 = vadd.f32 %v2472_v42, %v2346_v21 }
 0x32c   : > { %v2153_v26 = vmul.f32 1.442695, %v1962_v15  ;;  %v2281_v29 = vmul.f32 1.442695, %v2026_v27  ;;  %v3271_v17 = vpop.eup %3270  ;;  %v2542_v30 = vadd.f32 %v2541_v31, %v2410_v47 }
 0x32d   : > { %v3273_v19 = vpop.eup %3272  ;;  %v2347_v43 = vmul.f32 %v3271_v17, %v1671_v36  ;;  %v2618_v39 = vadd.f32 %v3271_v17, %v2617_v7 }
 0x32e   : > { %3274 = vpow2.f32 %v2153_v26  ;;  %v2411_v53 = vmul.f32 %v3273_v19, %v1831_v37  ;;  %v2687_v18 = vadd.f32 %v3273_v19, %v2686_v52 }
 0x32f   : > { %3276 = vpow2.f32 %v2281_v29  ;;  %v2474_v60 = vadd.f32 %v2473_v24, %v2347_v43  ;;  %v2283_v29 = vld [vmem:[#allocation2] sm:$0x1] }
 0x330   : > { %v2543_v13 = vadd.f32 %v2542_v30, %v2411_v53 }
 0x334   : > { %v3275_v55 = vpop.eup %3274 }
 0x335   : > { %v3277_v59 = vpop.eup %3276  ;;  %v2619_v61 = vadd.f32 %v3275_v55, %v2618_v39  ;;  %v2348_v40 = vmul.f32 %v3275_v55, %v1673_v54 }
 0x336   : > { %v2688_v56 = vadd.f32 %v3277_v59, %v2687_v18  ;;  %v2412_v57 = vmul.f32 %v3277_v59, %v1833_v51 }
 0x337   : > { %v2620_v2 = vrot.slane %v2619_v61, 4  ;;  %v2475_v3 = vadd.f32 %v2474_v60, %v2348_v40 }
 0x338   : > { %v2689_v5 = vrot.slane %v2688_v56, 4  ;;  %v2544_v6 = vadd.f32 %v2543_v13, %v2412_v57 }
 0x339   : > { %v2621_v0 = vadd.f32 %v2620_v2, %v2619_v61  ;;  %v2476_v14 = vrot.slane %v2475_v3, 4 }
 0x33a   : > { %v2690_v9 = vadd.f32 %v2689_v5, %v2688_v56  ;;  %v2545_v10 = vrot.slane %v2544_v6, 4 }
 0x33b   : > { %v2622_v50 = vrot.slane %v2621_v0, 2  ;;  %v2477_v12 = vadd.f32 %v2476_v14, %v2475_v3 }
 0x33c   : > { %v2691_v63 = vrot.slane %v2690_v9, 2  ;;  %v2546_v8 = vadd.f32 %v2545_v10, %v2544_v6 }
 0x33d   : > { %v2623_v16 = vadd.f32 %v2622_v50, %v2621_v0  ;;  %v2478_v20 = vrot.slane %v2477_v12, 2 }
 0x33e   : > { %v2692_v15 = vadd.f32 %v2691_v63, %v2690_v9  ;;  %v2547_v27 = vrot.slane %v2546_v8, 2 }
 0x33f   : > { %v2624_v25 = vrot.slane %v2623_v16, 1  ;;  %v2479_v49 = vadd.f32 %v2478_v20, %v2477_v12 }
 0x340   : > { %v2693_v23 = vrot.slane %v2692_v15, 1  ;;  %v2548_v32 = vadd.f32 %v2547_v27, %v2546_v8 }
 0x341   : > { %v2625_v62 = vadd.f32 %v2624_v25, %v2623_v16  ;;  %v2480_v58 = vrot.slane %v2479_v49, 1 }
 0x342   : > { %v2694_v26 = vadd.f32 %v2693_v23, %v2692_v15  ;;  %v2549_v34 = vrot.slane %v2548_v32, 1 }
 0x343   : > { %v2695_v35 = vadd.f32 %v2625_v62, %v2555_v22  ;;  %v2481_v28 = vadd.f32 %v2480_v58, %v2479_v49 }
 0x344   : > { %v2696_v36 = vadd.f32 %v2694_v26, %v2556_v33  ;;  %v2550_v17 = vadd.f32 %v2549_v34, %v2548_v32  ;;  %2702 = sbr.rel (%p2972_p10) target bundleno = 866 (0x362), region = 78 }
 0x345   : > { %2697 = vst [vmem:[#allocation3] sm:$0x1] %v2695_v35  ;;  %v2551_v38 = vadd.f32 %v2481_v28, %v2283_v29 }
 0x346   : > { %2698 = vst [vmem:[#allocation3 + $0x1] sm:$0x1] %v2696_v36  ;;  %v2552_v41 = vadd.f32 %v2550_v17, %v2284_v4 }
 0x347   : > { %2553 = vst [vmem:[#allocation2] sm:$0x1] %v2551_v38 }
 0x348   : > { %2554 = vst [vmem:[#allocation2 + $0x1] sm:$0x1] %v2552_v41 }
 0x34c   : > { %v2705_v37 = vld [vmem:[#allocation3] sm:$0x1] }
 0x34d   : > { %3278 = vrcp.f32 %v2705_v37  ;;  %v2706_v19 = vld [vmem:[#allocation3 + $0x1] sm:$0x1]  ;;  %vm2712_vm1 = vweird.f32 %v2705_v37  ;;  %v2718_v11 = vand.u32 2147483648, %v2705_v37  ;;  %v2716_v48 = vand.u32 2147483647, %v2705_v37 }
 0x34e   : > { %3280 = vrcp.f32 %v2706_v19  ;;  %v2733_v42 = vand.u32 2147483648, %v2706_v19  ;;  %vm2727_vm3 = vweird.f32 %v2706_v19  ;;  %v2731_v43 = vand.u32 2147483647, %v2706_v19  ;;  %v2703_v39 = vld [vmem:[#allocation2] sm:$0x1] }
 0x34f   : > { %v2719_v31 = vor.u32 1.1754944e-38, %v2718_v11  ;;  %vm2717_vm6 = vcmp.eq.f32.partialorder %v2716_v48, 8.507059e+37  ;;  %v2704_v30 = vld [vmem:[#allocation2 + $0x1] sm:$0x1] }
 0x350   : > { %v2734_v24 = vor.u32 1.1754944e-38, %v2733_v42  ;;  %vm2732_vm8 = vcmp.eq.f32.partialorder %v2731_v43, 8.507059e+37 }
 0x353   : > { %v3279_v46 = vpop.eup %3278 }
 0x354   : > { %v3281_v1 = vpop.eup %3280  ;;  %v2708_v21 = vmul.f32 %v3279_v46, %v2705_v37  ;;  %vm2713_vm2 = vweird.f32 %v3279_v46 }
 0x355   : > { %v2723_v45 = vmul.f32 %v3281_v1, %v2706_v19  ;;  %vm2728_vm4 = vweird.f32 %v3281_v1  ;;  %vm2714_vm5 = vmor %vm2712_vm1, %vm2713_vm2 }
 0x356   : > { %v2709_v47 = vsub.f32 1.0, %v2708_v21  ;;  %vm2729_vm7 = vmor %vm2727_vm3, %vm2728_vm4 }
 0x357   : > { %v2724_v7 = vsub.f32 1.0, %v2723_v45 }
 0x358   : > { %v2710_v44 = vmul.f32 %v3279_v46, %v2709_v47 }
 0x359   : > { %v2725_v52 = vmul.f32 %v3281_v1, %v2724_v7 }
 0x35a   : > { %v2711_v53 = vadd.f32 %v3279_v46, %v2710_v44 }
 0x35b   : > { %v2726_v54 = vadd.f32 %v3281_v1, %v2725_v52 }
 0x35c   : > { %v2715_v55 = vsel %vm2714_vm5, %v3279_v46, %v2711_v53 }
 0x35d   : > { %v2720_v18 = vsel %vm2717_vm6, %v2719_v31, %v2715_v55  ;;  %v2730_v51 = vsel %vm2729_vm7, %v3281_v1, %v2726_v54 }
 0x35e   : > { %v2721_v59 = vmul.f32 %v2720_v18, %v2703_v39  ;;  %v2735_v60 = vsel %vm2732_vm8, %v2734_v24, %v2730_v51 }
 0x35f   : > { %v2736_v61 = vmul.f32 %v2735_v60, %v2704_v30 }
 0x360   : > { %2737 = vst [vmem:[%s4278_s3] sm:$0x1] %v2721_v59 }
 0x361   : > { %2738 = vst [vmem:[%s4278_s3 + $0x1] sm:$0x1] %v2736_v61 }
 0x362 PF: > { %s13_s16 = sadd.s32 1, %s3320_s16   ;;  %s4279_s12 = smov %s3308_s13 }
 0x363   : > { %p10_p11 = scmp.ge.s32.totalorder %s13_s16, 4   ;;  %s4280_s13 = smov %s3378_s20 }
 0x364   : > { %s4281_s14 = smov %s3316_s15  ;;  %s4282_s15 = smov %s4284_s17 }
 0x365   :  { %12 = sbr.rel (!%p10_p11) target bundleno = 3 (0x3), region = 119 }

</bundles_post_ra>
